<compile_context>
chip_gen: v7x
topology: tpu7x:2x2x1
jax: 0.10.0
libtpu: 0.0.40
codegen_flags: <defaults>
</compile_context>

<pallas_src>
import functools
import math

import jax
import jax.numpy as jnp
from jax import lax
from jax.experimental import pallas as pl
from jax.experimental.pallas import tpu as pltpu

_BN_EPS = 1e-5
EXPANSION = 4
LANE = 128
CPAD = 128          # lane-padded width for all 64-channel tensors
_HEAD_ROWS = 8      # sublane-padded rows for the tiny fc output block


def _round_up(x, m):
    return -(-x // m) * m


# ---------------------------------------------------------------------------
# Pallas kernels
# ---------------------------------------------------------------------------

def _stem_kernel(xp_ref, w_ref, b_ref, o_ref, pad_ref, *, hp, wp):
    """Fused conv1(7x7/2) + BN + ReLU + maxpool(3x3/2) for ONE image.

    xp_ref : (1, 4, hp*wp, K)        bf16  im2col patches grouped by output-pixel parity
    w_ref  : (K, CPAD)               bf16  conv weight, BN scale folded (pad cols zero)
    b_ref  : (1, CPAD)               f32   BN shift (pad cols zero)
    o_ref  : (1, hp, wp, CPAD)       bf16  maxpooled output
    pad_ref: (4, hp+1, wp+1, CPAD)   f32   conv output in de-interleaved (row-parity,
             col-parity) layout, including the maxpool zero border (ReLU >= 0 so a
             zero border is equivalent to -inf padding).
    """
    c = w_ref.shape[1]
    pad_ref[...] = jnp.zeros_like(pad_ref)
    # conv output row oy = 2m + py maps to padded row oy+1:
    #   py=0 -> (pair-slot 1, offset 0) ; py=1 -> (pair-slot 0, offset 1)
    place = ((1, 0), (0, 1))
    for py in range(2):
        sy, a0 = place[py]
        for px in range(2):
            sx, c0 = place[px]
            h = jnp.dot(xp_ref[0, py * 2 + px], w_ref[...],
                        preferred_element_type=jnp.float32)
            h = jnp.maximum(h + b_ref[...], 0.0)                     # (hp*wp, c) f32
            pad_ref[sy * 2 + sx, a0:a0 + hp, c0:c0 + wp, :] = h.reshape(hp, wp, c)
    # maxpool tap d covers padded row 2y+d:
    #   d=0 -> (slot 0, offset 0) ; d=1 -> (slot 1, offset 0) ; d=2 -> (slot 0, offset 1)
    taps = ((0, 0), (1, 0), (0, 1))
    out = None
    for dy in range(3):
        sy, a0 = taps[dy]
        for dx in range(3):
            sx, c0 = taps[dx]
            t = pad_ref[sy * 2 + sx, a0:a0 + hp, c0:c0 + wp, :]
            out = t if out is None else jnp.maximum(out, t)
    o_ref[0] = out.astype(o_ref.dtype)


def _make_bottleneck_kernel(has_ds, final_head, h, w, cmid):
    """Fused Bottleneck (conv1 -> conv2 3x3 -> conv3 + residual + ReLU) for ONE image.

    Optionally also computes the 1x1 downsample branch (has_ds) and the fused
    global-avgpool + fc head (final_head). All intermediates stay in VMEM/vregs.
    """
    m = h * w

    def kernel(*refs):
        (x_ref, w1, b1, w2, b2, w3, b3), rest = refs[:7], refs[7:]
        i = 0
        if has_ds:
            wd, bd = rest[i], rest[i + 1]
            i += 2
        if final_head:
            wfc, bfc = rest[i], rest[i + 1]
            i += 2
        o_ref, pad_ref = rest[i], rest[i + 1]

        cin = x_ref.shape[-1]
        x2d = x_ref[0].reshape(m, cin)                                # bf16
        # conv1 1x1 + BN + ReLU (scale folded into w1)
        h1 = jnp.dot(x2d, w1[...], preferred_element_type=jnp.float32) + b1[...]
        h1 = jnp.maximum(h1, 0.0)
        # conv2 3x3/1 pad=1 + BN + ReLU: taps read from a zero-padded VMEM scratch
        pad_ref[...] = jnp.zeros_like(pad_ref)
        pad_ref[1:h + 1, 1:w + 1, :] = h1.astype(pad_ref.dtype).reshape(h, w, cmid)
        acc = jnp.zeros((m, cmid), jnp.float32)
        for t in range(9):
            dy, dx = divmod(t, 3)
            tap = pad_ref[dy:dy + h, dx:dx + w, :].reshape(m, cmid)
            acc = acc + jnp.dot(tap, w2[t], preferred_element_type=jnp.float32)
        h2 = jnp.maximum(acc + b2[...], 0.0).astype(jnp.bfloat16)
        # conv3 1x1 + BN
        h3 = jnp.dot(h2, w3[...], preferred_element_type=jnp.float32) + b3[...]
        # residual (identity or 1x1 downsample conv + BN)
        if has_ds:
            res = jnp.dot(x2d, wd[...], preferred_element_type=jnp.float32) + bd[...]
        else:
            res = x2d.astype(jnp.float32)
        out = jnp.maximum(h3 + res, 0.0)                              # (m, 256) f32
        if final_head:
            # fused global average pool + fc
            pooled = jnp.mean(out, axis=0, keepdims=True)             # (1, 256)
            y = jnp.dot(pooled.astype(jnp.bfloat16), wfc[...],
                        preferred_element_type=jnp.float32) + bfc[...]
            o_ref[...] = jnp.broadcast_to(y.reshape(1, 1, -1),
                                          o_ref.shape).astype(o_ref.dtype)
        else:
            o_ref[0] = out.astype(o_ref.dtype).reshape(h, w, out.shape[-1])

    return kernel


# ---------------------------------------------------------------------------
# Pallas wrappers
# ---------------------------------------------------------------------------

def _stem_call(patches, w, b, hp, wp):
    n, _, m4, k = patches.shape
    c = w.shape[1]
    kernel = functools.partial(_stem_kernel, hp=hp, wp=wp)
    flops = 2 * n * 4 * m4 * k * c
    bytes_accessed = (int(patches.size) * 2 + int(w.size) * 2 + int(b.size) * 4
                      + n * hp * wp * c * 2)
    return pl.pallas_call(
        kernel,
        out_shape=jax.ShapeDtypeStruct((n, hp, wp, c), jnp.bfloat16),
        grid=(n,),
        in_specs=[
            pl.BlockSpec((1, 4, m4, k), lambda i: (i, 0, 0, 0)),
            pl.BlockSpec((k, c), lambda i: (0, 0)),
            pl.BlockSpec((1, c), lambda i: (0, 0)),
        ],
        out_specs=pl.BlockSpec((1, hp, wp, c), lambda i: (i, 0, 0, 0)),
        scratch_shapes=[pltpu.VMEM((4, hp + 1, wp + 1, c), jnp.float32)],
        compiler_params=pltpu.CompilerParams(dimension_semantics=("parallel",)),
        cost_estimate=pl.CostEstimate(flops=flops, transcendentals=0,
                                      bytes_accessed=bytes_accessed),
    )(patches, w, b)


def _bottleneck_call(x, bp, *, final_head):
    n, h, w, cin = x.shape
    cmid = bp["w1"].shape[1]
    cout = bp["w3"].shape[1]
    has_ds = "wd" in bp

    operands = [x, bp["w1"], bp["b1"], bp["w2"], bp["b2"], bp["w3"], bp["b3"]]
    in_specs = [
        pl.BlockSpec((1, h, w, cin), lambda i: (i, 0, 0, 0)),
        pl.BlockSpec(bp["w1"].shape, lambda i: (0, 0)),
        pl.BlockSpec(bp["b1"].shape, lambda i: (0, 0)),
        pl.BlockSpec(bp["w2"].shape, lambda i: (0, 0, 0)),
        pl.BlockSpec(bp["b2"].shape, lambda i: (0, 0)),
        pl.BlockSpec(bp["w3"].shape, lambda i: (0, 0)),
        pl.BlockSpec(bp["b3"].shape, lambda i: (0, 0)),
    ]
    flops = 2 * n * h * w * (cin * cmid + 9 * cmid * cmid + cmid * cout)
    if has_ds:
        operands += [bp["wd"], bp["bd"]]
        in_specs += [pl.BlockSpec(bp["wd"].shape, lambda i: (0, 0)),
                     pl.BlockSpec(bp["bd"].shape, lambda i: (0, 0))]
        flops += 2 * n * h * w * cin * cout
    if final_head:
        operands += [bp["wfc"], bp["bfc"]]
        in_specs += [pl.BlockSpec(bp["wfc"].shape, lambda i: (0, 0)),
                     pl.BlockSpec(bp["bfc"].shape, lambda i: (0, 0))]
        ncls_pad = bp["wfc"].shape[1]
        out_shape = jax.ShapeDtypeStruct((n, _HEAD_ROWS, ncls_pad), jnp.float32)
        out_spec = pl.BlockSpec((1, _HEAD_ROWS, ncls_pad), lambda i: (i, 0, 0))
        flops += 2 * n * cout * ncls_pad
        out_bytes = n * _HEAD_ROWS * ncls_pad * 4
    else:
        out_shape = jax.ShapeDtypeStruct((n, h, w, cout), jnp.bfloat16)
        out_spec = pl.BlockSpec((1, h, w, cout), lambda i: (i, 0, 0, 0))
        out_bytes = n * h * w * cout * 2

    weight_bytes = sum(int(o.size) * o.dtype.itemsize for o in operands[1:])
    bytes_accessed = int(x.size) * 2 + weight_bytes + out_bytes

    kernel = _make_bottleneck_kernel(has_ds, final_head, h, w, cmid)
    return pl.pallas_call(
        kernel,
        out_shape=out_shape,
        grid=(n,),
        in_specs=in_specs,
        out_specs=out_spec,
        scratch_shapes=[pltpu.VMEM((h + 2, w + 2, cmid), jnp.bfloat16)],
        compiler_params=pltpu.CompilerParams(dimension_semantics=("parallel",)),
        cost_estimate=pl.CostEstimate(flops=flops, transcendentals=0,
                                      bytes_accessed=bytes_accessed),
    )(*operands)


# ---------------------------------------------------------------------------
# JAX-side plumbing: stem im2col (parity-grouped) and parameter preparation
# ---------------------------------------------------------------------------

def _stem_patches(x, k_pad):
    """7x7/2 pad-3 im2col grouped by output-pixel parity.

    Returns (N, 4, (Ho//2)*(Wo//2), k_pad) with index 4 = row_parity*2 + col_parity,
    matching the stem kernel's de-interleaved maxpool layout.
    """
    n, hh, ww, c = x.shape
    kh = kw = 7
    s, p = 2, 3
    ho = (hh + 2 * p - kh) // s + 1
    wo = (ww + 2 * p - kw) // s + 1
    assert ho % 2 == 0 and wo % 2 == 0
    xp = jnp.pad(x, ((0, 0), (p, p), (p, p), (0, 0)))
    cols = []
    for i in range(kh):
        for j in range(kw):
            cols.append(xp[:, i:i + s * (ho - 1) + 1:s, j:j + s * (wo - 1) + 1:s, :])
    pat = jnp.concatenate(cols, axis=-1)                     # (N, Ho, Wo, kh*kw*C)
    k = kh * kw * c
    pat = jnp.pad(pat, ((0, 0), (0, 0), (0, 0), (0, k_pad - k)))
    pat = pat.reshape(n, ho // 2, 2, wo // 2, 2, k_pad)
    pat = pat.transpose(0, 2, 4, 1, 3, 5)                    # (N, py, px, Ho/2, Wo/2, K)
    return pat.reshape(n, 4, (ho // 2) * (wo // 2), k_pad), (ho, wo)


def _fold_bn(conv_bias, bn):
    scale = bn["gamma"] / jnp.sqrt(bn["var"] + _BN_EPS)
    shift = bn["beta"] + (conv_bias - bn["mean"]) * scale
    return scale, shift


def _pad2(a, rows, cols):
    return jnp.pad(a, ((0, rows - a.shape[0]), (0, cols - a.shape[1])))


def prepare_kernel_params(params):
    """Fold BN into bf16 weights and pad channel widths to lane-dense sizes."""
    kp = {"num_classes": int(params["fc"]["w"].shape[1])}

    # stem: 7x7 conv (bias=False) + BN
    w = params["conv1"]["w"]                                 # (7,7,Cin,64)
    scale, shift = _fold_bn(jnp.zeros((w.shape[-1],), jnp.float32), params["bn1"])
    k = w.shape[0] * w.shape[1] * w.shape[2]
    k_pad = _round_up(k, LANE)
    wmat = (w * scale).reshape(k, w.shape[-1])
    kp["stem_w"] = _pad2(wmat, k_pad, CPAD).astype(jnp.bfloat16)
    kp["stem_b"] = _pad2(shift.reshape(1, -1), 1, CPAD)      # f32

    # bottleneck blocks (all 64-wide tensors padded to CPAD lanes with exact zeros)
    blocks = []
    cin_pad = CPAD                                           # stem output width
    for p in params["layer1"]:
        planes = p["conv1"]["w"].shape[-1]
        cout = p["conv3"]["w"].shape[-1]
        b = {}
        s1, sh1 = _fold_bn(p["conv1"]["b"], p["bn1"])
        b["w1"] = _pad2(p["conv1"]["w"][0, 0] * s1, cin_pad, CPAD).astype(jnp.bfloat16)
        b["b1"] = _pad2(sh1.reshape(1, -1), 1, CPAD)
        s2, sh2 = _fold_bn(p["conv2"]["b"], p["bn2"])
        w2 = (p["conv2"]["w"] * s2).reshape(9, planes, planes)
        b["w2"] = jnp.pad(w2, ((0, 0), (0, CPAD - planes),
                               (0, CPAD - planes))).astype(jnp.bfloat16)
        b["b2"] = _pad2(sh2.reshape(1, -1), 1, CPAD)
        s3, sh3 = _fold_bn(p["conv3"]["b"], p["bn3"])
        b["w3"] = _pad2(p["conv3"]["w"][0, 0] * s3, CPAD, cout).astype(jnp.bfloat16)
        b["b3"] = sh3.reshape(1, -1)
        if p["downsample"] is not None:
            d = p["downsample"]
            sd, shd = _fold_bn(d["conv"]["b"], d["bn"])
            b["wd"] = _pad2(d["conv"]["w"][0, 0] * sd, cin_pad, cout).astype(jnp.bfloat16)
            b["bd"] = shd.reshape(1, -1)
        blocks.append(b)
        cin_pad = cout

    # fused avgpool+fc head attached to the last block (fc output padded to 128 lanes)
    ncls = params["fc"]["w"].shape[1]
    ncls_pad = _round_up(ncls, LANE)
    blocks[-1]["wfc"] = _pad2(params["fc"]["w"], params["fc"]["w"].shape[0],
                              ncls_pad).astype(jnp.bfloat16)
    blocks[-1]["bfc"] = _pad2(params["fc"]["b"].reshape(1, -1), 1, ncls_pad)
    kp["blocks"] = blocks
    return kp


# ---------------------------------------------------------------------------
# Forward pass (injection_site == 'V1')
# ---------------------------------------------------------------------------

def resnet_forward(x_nchw, kparams):
    x = jnp.transpose(x_nchw, (0, 2, 3, 1)).astype(jnp.float32)   # NCHW -> NHWC
    patches, (ho, wo) = _stem_patches(x, kparams["stem_w"].shape[0])
    hp, wp = ho // 2, wo // 2                                     # post-maxpool dims
    act = _stem_call(patches.astype(jnp.bfloat16),
                     kparams["stem_w"], kparams["stem_b"], hp, wp)
    blocks = kparams["blocks"]
    for bi, bp in enumerate(blocks):
        act = _bottleneck_call(act, bp, final_head=(bi == len(blocks) - 1))
    # last call returns (N, _HEAD_ROWS, ncls_pad) with the logits replicated per row
    return act[:, 0, :kparams["num_classes"]]


# ---------------------------------------------------------------------------
# Deterministic parameters
# ---------------------------------------------------------------------------

def _conv_params(key, kh, kw, cin, cout, bias):
    kw_, kb = jax.random.split(key)
    w = jax.random.normal(kw_, (kh, kw, cin, cout), jnp.float32) / math.sqrt(kh * kw * cin)
    b = (0.05 * jax.random.normal(kb, (cout,), jnp.float32)) if bias \
        else jnp.zeros((cout,), jnp.float32)
    return {"w": w, "b": b}


def _bn_params(key, c):
    k1, k2, k3, k4 = jax.random.split(key, 4)
    return {
        "gamma": 1.0 + 0.1 * jax.random.normal(k1, (c,), jnp.float32),
        "beta": 0.1 * jax.random.normal(k2, (c,), jnp.float32),
        "mean": 0.1 * jax.random.normal(k3, (c,), jnp.float32),
        "var": jax.random.uniform(k4, (c,), jnp.float32, minval=0.5, maxval=1.5),
    }


def _bottleneck_params(key, cin, planes, stride):
    ks = jax.random.split(key, 8)
    cout = planes * EXPANSION
    p = {
        "stride": stride,
        "conv1": _conv_params(ks[0], 1, 1, cin, planes, bias=True),
        "bn1": _bn_params(ks[1], planes),
        "conv2": _conv_params(ks[2], 3, 3, planes, planes, bias=True),
        "bn2": _bn_params(ks[3], planes),
        "conv3": _conv_params(ks[4], 1, 1, planes, cout, bias=True),
        "bn3": _bn_params(ks[5], cout),
        "downsample": None,
    }
    if stride != 1 or cin != cout:
        p["downsample"] = {
            "conv": _conv_params(ks[6], 1, 1, cin, cout, bias=True),
            "bn": _bn_params(ks[7], cout),
        }
    return p


def make_resnet_params(key, num_channels=3, blocks=2, planes=64, num_classes=32):
    ks = jax.random.split(key, 4 + blocks)
    params = {
        "conv1": _conv_params(ks[0], 7, 7, num_channels, 64, bias=False),
        "bn1": _bn_params(ks[1], 64),
    }
    layer1, cin = [], 64
    for i in range(blocks):
        layer1.append(_bottleneck_params(ks[4 + i], cin, planes, stride=1))
        cin = planes * EXPANSION
    params["layer1"] = layer1
    kfw, kfb = jax.random.split(ks[2])
    params["fc"] = {
        "w": jax.random.normal(kfw, (planes * EXPANSION, num_classes), jnp.float32)
        / math.sqrt(planes * EXPANSION),
        "b": 0.05 * jax.random.normal(kfb, (num_classes,), jnp.float32),
    }
    return params


# ---------------------------------------------------------------------------
# Pure-JAX references
#   compute_dtype=float32  -> faithful module semantics
#   compute_dtype=bfloat16 -> mirrors the kernel's bf16-input / f32-accumulate numerics
# ---------------------------------------------------------------------------

def _ref_forward(x_nchw, params, compute_dtype=jnp.float32):
    f32 = jnp.float32

    def cbn(x, conv, bn, stride, padding, relu):
        scale, shift = _fold_bn(conv["b"], bn)
        w = (conv["w"] * scale).astype(compute_dtype)
        y = lax.conv_general_dilated(
            x.astype(compute_dtype), w, (stride, stride),
            ((padding, padding), (padding, padding)),
            dimension_numbers=("NHWC", "HWIO", "NHWC"),
            preferred_element_type=f32, precision=lax.Precision.HIGHEST)
        y = y + shift
        return jnp.maximum(y, 0.0) if relu else y

    x = jnp.transpose(x_nchw, (0, 2, 3, 1)).astype(f32)
    x = cbn(x, params["conv1"], params["bn1"], 2, 3, True)
    x = lax.reduce_window(x, -jnp.inf, lax.max, (1, 3, 3, 1), (1, 2, 2, 1),
                          ((0, 0), (1, 1), (1, 1), (0, 0)))
    for p in params["layer1"]:
        xin = x.astype(compute_dtype)
        identity = xin.astype(f32)
        out = cbn(xin, p["conv1"], p["bn1"], 1, 0, True)
        out = cbn(out, p["conv2"], p["bn2"], 1, 1, True)
        if p["downsample"] is not None:
            identity = cbn(xin, p["downsample"]["conv"], p["downsample"]["bn"],
                           1, 0, False)
        x = jnp.maximum(cbn(out, p["conv3"], p["bn3"], 1, 0, False) + identity, 0.0)
    pooled = jnp.mean(x, axis=(1, 2))
    return jnp.dot(pooled.astype(compute_dtype),
                   params["fc"]["w"].astype(compute_dtype),
                   preferred_element_type=f32,
                   precision=lax.Precision.HIGHEST) + params["fc"]["b"]


# ---------------------------------------------------------------------------
# Demo
# ---------------------------------------------------------------------------

if __name__ == "__main__":
    key = jax.random.PRNGKey(0)
    kx, kp = jax.random.split(key)

    # batch=2, RGB, 32x32 input, injection_site='V1', expansion=4, 2 blocks, fc -> 32.
    x = jax.random.normal(kx, (2, 3, 32, 32), jnp.float32)
    params = make_resnet_params(kp)
    kparams = prepare_kernel_params(params)

    fwd = jax.jit(lambda xx: resnet_forward(xx, kparams))
    out = fwd(x)
    jax.block_until_ready(out)
    assert out.shape == (2, 32), out.shape

    # (a) tight check vs a reference mirroring the kernel's bf16-input / f32-accumulate
    #     numerics -> validates the kernel implementation itself.
    ref_bf16 = jax.jit(lambda xx: _ref_forward(xx, params, jnp.bfloat16))(x)
    err_impl = float(jnp.max(jnp.abs(out - ref_bf16)))
    assert err_impl < 5e-3, err_impl
    # (b) loose check vs faithful f32 module semantics -> bf16 rounding budget only.
    ref_f32 = jax.jit(lambda xx: _ref_forward(xx, params, jnp.float32))(x)
    err_sem = float(jnp.max(jnp.abs(out - ref_f32)))
    assert err_sem < 1e-1, err_sem

    print("KERNEL_OK")
</pallas_src>

<mosaic_0001>
module attributes {stable_mosaic.version = 11 : i64} {
  func.func @_stem_kernel(%arg0: i32, %arg1: memref<1x4x64x256xbf16, #tpu.memory_space<vmem>>, %arg2: memref<256x128xbf16, #tpu.memory_space<vmem>>, %arg3: memref<1x128xf32, #tpu.memory_space<vmem>>, %arg4: memref<1x8x8x128xbf16, #tpu.memory_space<vmem>>, %arg5: memref<4x9x9x128xf32, #tpu.memory_space<vmem>>) attributes {dimension_semantics = [#tpu.dimension_semantics<parallel>], iteration_bounds = array<i64: 2>, scalar_prefetch = 0 : i64, scratch_operands = 1 : i64, tpu.core_type = #tpu.core_type<tc>, window_params = [{transform_indices = @transform_0, window_bounds = array<i64: 1, 4, 64, 256>}, {pipeline_mode = #tpu.pipeline_mode<synchronous>, transform_indices = @transform_1, window_bounds = array<i64: 256, 128>}, {pipeline_mode = #tpu.pipeline_mode<synchronous>, transform_indices = @transform_2, window_bounds = array<i64: 1, 128>}, {transform_indices = @transform_3, window_bounds = array<i64: 1, 8, 8, 128>}]} {
    %cst = arith.constant 0.000000e+00 : f32
    %0 = vector.broadcast %cst : f32 to vector<4x9x9x128xf32>
    %c0 = arith.constant 0 : index
    %c0_0 = arith.constant 0 : index
    %c0_1 = arith.constant 0 : index
    %c0_2 = arith.constant 0 : index
    %1 = vector.load %arg5[%c0, %c0_0, %c0_1, %c0_2] : memref<4x9x9x128xf32, #tpu.memory_space<vmem>>, vector<4x9x9x128xf32>
    tpu.vector_store %arg5[%c0, %c0_0, %c0_1, %c0_2], %0 {strides = array<i32>} : memref<4x9x9x128xf32, #tpu.memory_space<vmem>>, vector<4x9x9x128xf32>,
    %c0_3 = arith.constant 0 : index
    %c0_4 = arith.constant 0 : index
    %c0_5 = arith.constant 0 : index
    %c0_6 = arith.constant 0 : index
    %2 = vector.load %arg1[%c0_3, %c0_4, %c0_5, %c0_6] : memref<1x4x64x256xbf16, #tpu.memory_space<vmem>>, vector<1x1x64x256xbf16>
    %3 = vector.shape_cast %2 : vector<1x1x64x256xbf16> to vector<64x256xbf16>
    %c0_7 = arith.constant 0 : index
    %c0_8 = arith.constant 0 : index
    %4 = vector.load %arg2[%c0_7, %c0_8] : memref<256x128xbf16, #tpu.memory_space<vmem>>, vector<256x128xbf16>
    %cst_9 = arith.constant dense<0.000000e+00> : vector<64x128xf32>
    %5 = tpu.matmul %3, %4, %cst_9 {dimension_numbers = #tpu.dot_dimension_numbers<[1], [0], [0], [1], [0, 0, 1, 1], [], []>} : vector<64x256xbf16>, vector<256x128xbf16>, vector<64x128xf32> -> vector<64x128xf32>
    %c0_10 = arith.constant 0 : index
    %c0_11 = arith.constant 0 : index
    %6 = vector.load %arg3[%c0_10, %c0_11] : memref<1x128xf32, #tpu.memory_space<vmem>>, vector<1x128xf32>
    %7 = vector.broadcast %6 : vector<1x128xf32> to vector<64x128xf32>
    %8 = arith.addf %5, %7 : vector<64x128xf32>
    %cst_12 = arith.constant 0.000000e+00 : f32
    %9 = vector.broadcast %cst_12 : f32 to vector<64x128xf32>
    %10 = arith.maximumf %8, %9 : vector<64x128xf32>
    %11 = vector.shape_cast %10 : vector<64x128xf32> to vector<8x8x128xf32>
    %c3 = arith.constant 3 : index
    %c0_13 = arith.constant 0 : index
    %c0_14 = arith.constant 0 : index
    %c0_15 = arith.constant 0 : index
    %12 = vector.load %arg5[%c3, %c0_13, %c0_14, %c0_15] : memref<4x9x9x128xf32, #tpu.memory_space<vmem>>, vector<1x8x8x128xf32>
    %13 = vector.shape_cast %12 : vector<1x8x8x128xf32> to vector<8x8x128xf32>
    %14 = vector.shape_cast %11 : vector<8x8x128xf32> to vector<1x8x8x128xf32>
    tpu.vector_store %arg5[%c3, %c0_13, %c0_14, %c0_15], %14 {strides = array<i32>} : memref<4x9x9x128xf32, #tpu.memory_space<vmem>>, vector<1x8x8x128xf32>,
    %c0_16 = arith.constant 0 : index
    %c1 = arith.constant 1 : index
    %c0_17 = arith.constant 0 : index
    %c0_18 = arith.constant 0 : index
    %15 = vector.load %arg1[%c0_16, %c1, %c0_17, %c0_18] : memref<1x4x64x256xbf16, #tpu.memory_space<vmem>>, vector<1x1x64x256xbf16>
    %16 = vector.shape_cast %15 : vector<1x1x64x256xbf16> to vector<64x256xbf16>
    %c0_19 = arith.constant 0 : index
    %c0_20 = arith.constant 0 : index
    %17 = vector.load %arg2[%c0_19, %c0_20] : memref<256x128xbf16, #tpu.memory_space<vmem>>, vector<256x128xbf16>
    %cst_21 = arith.constant dense<0.000000e+00> : vector<64x128xf32>
    %18 = tpu.matmul %16, %17, %cst_21 {dimension_numbers = #tpu.dot_dimension_numbers<[1], [0], [0], [1], [0, 0, 1, 1], [], []>} : vector<64x256xbf16>, vector<256x128xbf16>, vector<64x128xf32> -> vector<64x128xf32>
    %c0_22 = arith.constant 0 : index
    %c0_23 = arith.constant 0 : index
    %19 = vector.load %arg3[%c0_22, %c0_23] : memref<1x128xf32, #tpu.memory_space<vmem>>, vector<1x128xf32>
    %20 = vector.broadcast %19 : vector<1x128xf32> to vector<64x128xf32>
    %21 = arith.addf %18, %20 : vector<64x128xf32>
    %cst_24 = arith.constant 0.000000e+00 : f32
    %22 = vector.broadcast %cst_24 : f32 to vector<64x128xf32>
    %23 = arith.maximumf %21, %22 : vector<64x128xf32>
    %24 = vector.shape_cast %23 : vector<64x128xf32> to vector<8x8x128xf32>
    %c2 = arith.constant 2 : index
    %c0_25 = arith.constant 0 : index
    %c1_26 = arith.constant 1 : index
    %c0_27 = arith.constant 0 : index
    %25 = vector.load %arg5[%c2, %c0_25, %c1_26, %c0_27] : memref<4x9x9x128xf32, #tpu.memory_space<vmem>>, vector<1x8x8x128xf32>
    %26 = vector.shape_cast %25 : vector<1x8x8x128xf32> to vector<8x8x128xf32>
    %27 = vector.shape_cast %24 : vector<8x8x128xf32> to vector<1x8x8x128xf32>
    tpu.vector_store %arg5[%c2, %c0_25, %c1_26, %c0_27], %27 {strides = array<i32>} : memref<4x9x9x128xf32, #tpu.memory_space<vmem>>, vector<1x8x8x128xf32>,
    %c0_28 = arith.constant 0 : index
    %c2_29 = arith.constant 2 : index
    %c0_30 = arith.constant 0 : index
    %c0_31 = arith.constant 0 : index
    %28 = vector.load %arg1[%c0_28, %c2_29, %c0_30, %c0_31] : memref<1x4x64x256xbf16, #tpu.memory_space<vmem>>, vector<1x1x64x256xbf16>
    %29 = vector.shape_cast %28 : vector<1x1x64x256xbf16> to vector<64x256xbf16>
    %c0_32 = arith.constant 0 : index
    %c0_33 = arith.constant 0 : index
    %30 = vector.load %arg2[%c0_32, %c0_33] : memref<256x128xbf16, #tpu.memory_space<vmem>>, vector<256x128xbf16>
    %cst_34 = arith.constant dense<0.000000e+00> : vector<64x128xf32>
    %31 = tpu.matmul %29, %30, %cst_34 {dimension_numbers = #tpu.dot_dimension_numbers<[1], [0], [0], [1], [0, 0, 1, 1], [], []>} : vector<64x256xbf16>, vector<256x128xbf16>, vector<64x128xf32> -> vector<64x128xf32>
    %c0_35 = arith.constant 0 : index
    %c0_36 = arith.constant 0 : index
    %32 = vector.load %arg3[%c0_35, %c0_36] : memref<1x128xf32, #tpu.memory_space<vmem>>, vector<1x128xf32>
    %33 = vector.broadcast %32 : vector<1x128xf32> to vector<64x128xf32>
    %34 = arith.addf %31, %33 : vector<64x128xf32>
    %cst_37 = arith.constant 0.000000e+00 : f32
    %35 = vector.broadcast %cst_37 : f32 to vector<64x128xf32>
    %36 = arith.maximumf %34, %35 : vector<64x128xf32>
    %37 = vector.shape_cast %36 : vector<64x128xf32> to vector<8x8x128xf32>
    %c1_38 = arith.constant 1 : index
    %c1_39 = arith.constant 1 : index
    %c0_40 = arith.constant 0 : index
    %c0_41 = arith.constant 0 : index
    %38 = vector.load %arg5[%c1_38, %c1_39, %c0_40, %c0_41] : memref<4x9x9x128xf32, #tpu.memory_space<vmem>>, vector<1x8x8x128xf32>
    %39 = vector.shape_cast %38 : vector<1x8x8x128xf32> to vector<8x8x128xf32>
    %40 = vector.shape_cast %37 : vector<8x8x128xf32> to vector<1x8x8x128xf32>
    tpu.vector_store %arg5[%c1_38, %c1_39, %c0_40, %c0_41], %40 {strides = array<i32>} : memref<4x9x9x128xf32, #tpu.memory_space<vmem>>, vector<1x8x8x128xf32>,
    %c0_42 = arith.constant 0 : index
    %c3_43 = arith.constant 3 : index
    %c0_44 = arith.constant 0 : index
    %c0_45 = arith.constant 0 : index
    %41 = vector.load %arg1[%c0_42, %c3_43, %c0_44, %c0_45] : memref<1x4x64x256xbf16, #tpu.memory_space<vmem>>, vector<1x1x64x256xbf16>
    %42 = vector.shape_cast %41 : vector<1x1x64x256xbf16> to vector<64x256xbf16>
    %c0_46 = arith.constant 0 : index
    %c0_47 = arith.constant 0 : index
    %43 = vector.load %arg2[%c0_46, %c0_47] : memref<256x128xbf16, #tpu.memory_space<vmem>>, vector<256x128xbf16>
    %cst_48 = arith.constant dense<0.000000e+00> : vector<64x128xf32>
    %44 = tpu.matmul %42, %43, %cst_48 {dimension_numbers = #tpu.dot_dimension_numbers<[1], [0], [0], [1], [0, 0, 1, 1], [], []>} : vector<64x256xbf16>, vector<256x128xbf16>, vector<64x128xf32> -> vector<64x128xf32>
    %c0_49 = arith.constant 0 : index
    %c0_50 = arith.constant 0 : index
    %45 = vector.load %arg3[%c0_49, %c0_50] : memref<1x128xf32, #tpu.memory_space<vmem>>, vector<1x128xf32>
    %46 = vector.broadcast %45 : vector<1x128xf32> to vector<64x128xf32>
    %47 = arith.addf %44, %46 : vector<64x128xf32>
    %cst_51 = arith.constant 0.000000e+00 : f32
    %48 = vector.broadcast %cst_51 : f32 to vector<64x128xf32>
    %49 = arith.maximumf %47, %48 : vector<64x128xf32>
    %50 = vector.shape_cast %49 : vector<64x128xf32> to vector<8x8x128xf32>
    %c0_52 = arith.constant 0 : index
    %c1_53 = arith.constant 1 : index
    %c1_54 = arith.constant 1 : index
    %c0_55 = arith.constant 0 : index
    %51 = vector.load %arg5[%c0_52, %c1_53, %c1_54, %c0_55] : memref<4x9x9x128xf32, #tpu.memory_space<vmem>>, vector<1x8x8x128xf32>
    %52 = vector.shape_cast %51 : vector<1x8x8x128xf32> to vector<8x8x128xf32>
    %53 = vector.shape_cast %50 : vector<8x8x128xf32> to vector<1x8x8x128xf32>
    tpu.vector_store %arg5[%c0_52, %c1_53, %c1_54, %c0_55], %53 {strides = array<i32>} : memref<4x9x9x128xf32, #tpu.memory_space<vmem>>, vector<1x8x8x128xf32>,
    %c0_56 = arith.constant 0 : index
    %c0_57 = arith.constant 0 : index
    %c0_58 = arith.constant 0 : index
    %c0_59 = arith.constant 0 : index
    %54 = vector.load %arg5[%c0_56, %c0_57, %c0_58, %c0_59] : memref<4x9x9x128xf32, #tpu.memory_space<vmem>>, vector<1x8x8x128xf32>
    %55 = vector.shape_cast %54 : vector<1x8x8x128xf32> to vector<8x8x128xf32>
    %c1_60 = arith.constant 1 : index
    %c0_61 = arith.constant 0 : index
    %c0_62 = arith.constant 0 : index
    %c0_63 = arith.constant 0 : index
    %56 = vector.load %arg5[%c1_60, %c0_61, %c0_62, %c0_63] : memref<4x9x9x128xf32, #tpu.memory_space<vmem>>, vector<1x8x8x128xf32>
    %57 = vector.shape_cast %56 : vector<1x8x8x128xf32> to vector<8x8x128xf32>
    %58 = arith.maximumf %55, %57 : vector<8x8x128xf32>
    %c0_64 = arith.constant 0 : index
    %c0_65 = arith.constant 0 : index
    %c1_66 = arith.constant 1 : index
    %c0_67 = arith.constant 0 : index
    %59 = vector.load %arg5[%c0_64, %c0_65, %c1_66, %c0_67] : memref<4x9x9x128xf32, #tpu.memory_space<vmem>>, vector<1x8x8x128xf32>
    %60 = vector.shape_cast %59 : vector<1x8x8x128xf32> to vector<8x8x128xf32>
    %61 = arith.maximumf %58, %60 : vector<8x8x128xf32>
    %c2_68 = arith.constant 2 : index
    %c0_69 = arith.constant 0 : index
    %c0_70 = arith.constant 0 : index
    %c0_71 = arith.constant 0 : index
    %62 = vector.load %arg5[%c2_68, %c0_69, %c0_70, %c0_71] : memref<4x9x9x128xf32, #tpu.memory_space<vmem>>, vector<1x8x8x128xf32>
    %63 = vector.shape_cast %62 : vector<1x8x8x128xf32> to vector<8x8x128xf32>
    %64 = arith.maximumf %61, %63 : vector<8x8x128xf32>
    %c3_72 = arith.constant 3 : index
    %c0_73 = arith.constant 0 : index
    %c0_74 = arith.constant 0 : index
    %c0_75 = arith.constant 0 : index
    %65 = vector.load %arg5[%c3_72, %c0_73, %c0_74, %c0_75] : memref<4x9x9x128xf32, #tpu.memory_space<vmem>>, vector<1x8x8x128xf32>
    %66 = vector.shape_cast %65 : vector<1x8x8x128xf32> to vector<8x8x128xf32>
    %67 = arith.maximumf %64, %66 : vector<8x8x128xf32>
    %c2_76 = arith.constant 2 : index
    %c0_77 = arith.constant 0 : index
    %c1_78 = arith.constant 1 : index
    %c0_79 = arith.constant 0 : index
    %68 = vector.load %arg5[%c2_76, %c0_77, %c1_78, %c0_79] : memref<4x9x9x128xf32, #tpu.memory_space<vmem>>, vector<1x8x8x128xf32>
    %69 = vector.shape_cast %68 : vector<1x8x8x128xf32> to vector<8x8x128xf32>
    %70 = arith.maximumf %67, %69 : vector<8x8x128xf32>
    %c0_80 = arith.constant 0 : index
    %c1_81 = arith.constant 1 : index
    %c0_82 = arith.constant 0 : index
    %c0_83 = arith.constant 0 : index
    %71 = vector.load %arg5[%c0_80, %c1_81, %c0_82, %c0_83] : memref<4x9x9x128xf32, #tpu.memory_space<vmem>>, vector<1x8x8x128xf32>
    %72 = vector.shape_cast %71 : vector<1x8x8x128xf32> to vector<8x8x128xf32>
    %73 = arith.maximumf %70, %72 : vector<8x8x128xf32>
    %c1_84 = arith.constant 1 : index
    %c1_85 = arith.constant 1 : index
    %c0_86 = arith.constant 0 : index
    %c0_87 = arith.constant 0 : index
    %74 = vector.load %arg5[%c1_84, %c1_85, %c0_86, %c0_87] : memref<4x9x9x128xf32, #tpu.memory_space<vmem>>, vector<1x8x8x128xf32>
    %75 = vector.shape_cast %74 : vector<1x8x8x128xf32> to vector<8x8x128xf32>
    %76 = arith.maximumf %73, %75 : vector<8x8x128xf32>
    %c0_88 = arith.constant 0 : index
    %c1_89 = arith.constant 1 : index
    %c1_90 = arith.constant 1 : index
    %c0_91 = arith.constant 0 : index
    %77 = vector.load %arg5[%c0_88, %c1_89, %c1_90, %c0_91] : memref<4x9x9x128xf32, #tpu.memory_space<vmem>>, vector<1x8x8x128xf32>
    %78 = vector.shape_cast %77 : vector<1x8x8x128xf32> to vector<8x8x128xf32>
    %79 = arith.maximumf %76, %78 : vector<8x8x128xf32>
    %80 = arith.truncf %79 : vector<8x8x128xf32> to vector<8x8x128xbf16>
    %c0_92 = arith.constant 0 : index
    %c0_93 = arith.constant 0 : index
    %c0_94 = arith.constant 0 : index
    %c0_95 = arith.constant 0 : index
    %81 = vector.load %arg4[%c0_92, %c0_93, %c0_94, %c0_95] : memref<1x8x8x128xbf16, #tpu.memory_space<vmem>>, vector<1x8x8x128xbf16>
    %82 = vector.shape_cast %81 : vector<1x8x8x128xbf16> to vector<8x8x128xbf16>
    %83 = vector.shape_cast %80 : vector<8x8x128xbf16> to vector<1x8x8x128xbf16>
    tpu.vector_store %arg4[%c0_92, %c0_93, %c0_94, %c0_95], %83 {strides = array<i32>} : memref<1x8x8x128xbf16, #tpu.memory_space<vmem>>, vector<1x8x8x128xbf16>,
    return
  }
  func.func @transform_0(%arg0: i32) -> (i32, i32, i32, i32) {
    %c0_i32 = arith.constant 0 : i32
    %c0_i32_0 = arith.constant 0 : i32
    %c0_i32_1 = arith.constant 0 : i32
    %c0_i32_2 = arith.constant 0 : i32
    return %arg0, %c0_i32, %c0_i32_0, %c0_i32_1 : i32, i32, i32, i32
  }
  func.func @transform_1(%arg0: i32) -> (i32, i32) {
    %c0_i32 = arith.constant 0 : i32
    %c0_i32_0 = arith.constant 0 : i32
    %c0_i32_1 = arith.constant 0 : i32
    return %c0_i32, %c0_i32_0 : i32, i32
  }
  func.func @transform_2(%arg0: i32) -> (i32, i32) {
    %c0_i32 = arith.constant 0 : i32
    %c0_i32_0 = arith.constant 0 : i32
    %c0_i32_1 = arith.constant 0 : i32
    return %c0_i32, %c0_i32_0 : i32, i32
  }
  func.func @transform_3(%arg0: i32) -> (i32, i32, i32, i32) {
    %c0_i32 = arith.constant 0 : i32
    %c0_i32_0 = arith.constant 0 : i32
    %c0_i32_1 = arith.constant 0 : i32
    %c0_i32_2 = arith.constant 0 : i32
    return %arg0, %c0_i32, %c0_i32_0, %c0_i32_1 : i32, i32, i32, i32
  }
}

module attributes {stable_mosaic.version = 11 : i64} {
  func.func @kernel(%arg0: i32, %arg1: memref<1x8x8x128xbf16, #tpu.memory_space<vmem>>, %arg2: memref<128x128xbf16, #tpu.memory_space<vmem>>, %arg3: memref<1x128xf32, #tpu.memory_space<vmem>>, %arg4: memref<9x128x128xbf16, #tpu.memory_space<vmem>>, %arg5: memref<1x128xf32, #tpu.memory_space<vmem>>, %arg6: memref<128x256xbf16, #tpu.memory_space<vmem>>, %arg7: memref<1x256xf32, #tpu.memory_space<vmem>>, %arg8: memref<128x256xbf16, #tpu.memory_space<vmem>>, %arg9: memref<1x256xf32, #tpu.memory_space<vmem>>, %arg10: memref<1x8x8x256xbf16, #tpu.memory_space<vmem>>, %arg11: memref<10x10x128xbf16, #tpu.memory_space<vmem>>) attributes {dimension_semantics = [#tpu.dimension_semantics<parallel>], iteration_bounds = array<i64: 2>, scalar_prefetch = 0 : i64, scratch_operands = 1 : i64, tpu.core_type = #tpu.core_type<tc>, window_params = [{transform_indices = @transform_0, window_bounds = array<i64: 1, 8, 8, 128>}, {pipeline_mode = #tpu.pipeline_mode<synchronous>, transform_indices = @transform_1, window_bounds = array<i64: 128, 128>}, {pipeline_mode = #tpu.pipeline_mode<synchronous>, transform_indices = @transform_2, window_bounds = array<i64: 1, 128>}, {pipeline_mode = #tpu.pipeline_mode<synchronous>, transform_indices = @transform_3, window_bounds = array<i64: 9, 128, 128>}, {pipeline_mode = #tpu.pipeline_mode<synchronous>, transform_indices = @transform_4, window_bounds = array<i64: 1, 128>}, {pipeline_mode = #tpu.pipeline_mode<synchronous>, transform_indices = @transform_5, window_bounds = array<i64: 128, 256>}, {pipeline_mode = #tpu.pipeline_mode<synchronous>, transform_indices = @transform_6, window_bounds = array<i64: 1, 256>}, {pipeline_mode = #tpu.pipeline_mode<synchronous>, transform_indices = @transform_7, window_bounds = array<i64: 128, 256>}, {pipeline_mode = #tpu.pipeline_mode<synchronous>, transform_indices = @transform_8, window_bounds = array<i64: 1, 256>}, {transform_indices = @transform_9, window_bounds = array<i64: 1, 8, 8, 256>}]} {
    %c0 = arith.constant 0 : index
    %c0_0 = arith.constant 0 : index
    %c0_1 = arith.constant 0 : index
    %c0_2 = arith.constant 0 : index
    %0 = vector.load %arg1[%c0, %c0_0, %c0_1, %c0_2] : memref<1x8x8x128xbf16, #tpu.memory_space<vmem>>, vector<1x8x8x128xbf16>
    %1 = vector.shape_cast %0 : vector<1x8x8x128xbf16> to vector<8x8x128xbf16>
    %2 = vector.shape_cast %1 : vector<8x8x128xbf16> to vector<64x128xbf16>
    %c0_3 = arith.constant 0 : index
    %c0_4 = arith.constant 0 : index
    %3 = vector.load %arg2[%c0_3, %c0_4] : memref<128x128xbf16, #tpu.memory_space<vmem>>, vector<128x128xbf16>
    %cst = arith.constant dense<0.000000e+00> : vector<64x128xf32>
    %4 = tpu.matmul %2, %3, %cst {dimension_numbers = #tpu.dot_dimension_numbers<[1], [0], [0], [1], [0, 0, 1, 1], [], []>} : vector<64x128xbf16>, vector<128x128xbf16>, vector<64x128xf32> -> vector<64x128xf32>
    %c0_5 = arith.constant 0 : index
    %c0_6 = arith.constant 0 : index
    %5 = vector.load %arg3[%c0_5, %c0_6] : memref<1x128xf32, #tpu.memory_space<vmem>>, vector<1x128xf32>
    %6 = vector.broadcast %5 : vector<1x128xf32> to vector<64x128xf32>
    %7 = arith.addf %4, %6 : vector<64x128xf32>
    %cst_7 = arith.constant 0.000000e+00 : f32
    %8 = vector.broadcast %cst_7 : f32 to vector<64x128xf32>
    %9 = arith.maximumf %7, %8 : vector<64x128xf32>
    %cst_8 = arith.constant 0.000000e+00 : bf16
    %10 = vector.broadcast %cst_8 : bf16 to vector<10x10x128xbf16>
    %c0_9 = arith.constant 0 : index
    %c0_10 = arith.constant 0 : index
    %c0_11 = arith.constant 0 : index
    %11 = vector.load %arg11[%c0_9, %c0_10, %c0_11] : memref<10x10x128xbf16, #tpu.memory_space<vmem>>, vector<10x10x128xbf16>
    tpu.vector_store %arg11[%c0_9, %c0_10, %c0_11], %10 {strides = array<i32>} : memref<10x10x128xbf16, #tpu.memory_space<vmem>>, vector<10x10x128xbf16>,
    %12 = arith.truncf %9 : vector<64x128xf32> to vector<64x128xbf16>
    %13 = vector.shape_cast %12 : vector<64x128xbf16> to vector<8x8x128xbf16>
    %c1 = arith.constant 1 : index
    %c1_12 = arith.constant 1 : index
    %c0_13 = arith.constant 0 : index
    %14 = vector.load %arg11[%c1, %c1_12, %c0_13] : memref<10x10x128xbf16, #tpu.memory_space<vmem>>, vector<8x8x128xbf16>
    tpu.vector_store %arg11[%c1, %c1_12, %c0_13], %13 {strides = array<i32>} : memref<10x10x128xbf16, #tpu.memory_space<vmem>>, vector<8x8x128xbf16>,
    %cst_14 = arith.constant 0.000000e+00 : f32
    %15 = vector.broadcast %cst_14 : f32 to vector<64x128xf32>
    %c0_15 = arith.constant 0 : index
    %c0_16 = arith.constant 0 : index
    %c0_17 = arith.constant 0 : index
    %16 = vector.load %arg11[%c0_15, %c0_16, %c0_17] : memref<10x10x128xbf16, #tpu.memory_space<vmem>>, vector<8x8x128xbf16>
    %17 = vector.shape_cast %16 : vector<8x8x128xbf16> to vector<64x128xbf16>
    %c0_18 = arith.constant 0 : index
    %c0_19 = arith.constant 0 : index
    %c0_20 = arith.constant 0 : index
    %18 = vector.load %arg4[%c0_18, %c0_19, %c0_20] : memref<9x128x128xbf16, #tpu.memory_space<vmem>>, vector<1x128x128xbf16>
    %19 = vector.shape_cast %18 : vector<1x128x128xbf16> to vector<128x128xbf16>
    %cst_21 = arith.constant dense<0.000000e+00> : vector<64x128xf32>
    %20 = tpu.matmul %17, %19, %cst_21 {dimension_numbers = #tpu.dot_dimension_numbers<[1], [0], [0], [1], [0, 0, 1, 1], [], []>} : vector<64x128xbf16>, vector<128x128xbf16>, vector<64x128xf32> -> vector<64x128xf32>
    %21 = arith.addf %15, %20 : vector<64x128xf32>
    %c0_22 = arith.constant 0 : index
    %c1_23 = arith.constant 1 : index
    %c0_24 = arith.constant 0 : index
    %22 = vector.load %arg11[%c0_22, %c1_23, %c0_24] : memref<10x10x128xbf16, #tpu.memory_space<vmem>>, vector<8x8x128xbf16>
    %23 = vector.shape_cast %22 : vector<8x8x128xbf16> to vector<64x128xbf16>
    %c1_25 = arith.constant 1 : index
    %c0_26 = arith.constant 0 : index
    %c0_27 = arith.constant 0 : index
    %24 = vector.load %arg4[%c1_25, %c0_26, %c0_27] : memref<9x128x128xbf16, #tpu.memory_space<vmem>>, vector<1x128x128xbf16>
    %25 = vector.shape_cast %24 : vector<1x128x128xbf16> to vector<128x128xbf16>
    %cst_28 = arith.constant dense<0.000000e+00> : vector<64x128xf32>
    %26 = tpu.matmul %23, %25, %cst_28 {dimension_numbers = #tpu.dot_dimension_numbers<[1], [0], [0], [1], [0, 0, 1, 1], [], []>} : vector<64x128xbf16>, vector<128x128xbf16>, vector<64x128xf32> -> vector<64x128xf32>
    %27 = arith.addf %21, %26 : vector<64x128xf32>
    %c0_29 = arith.constant 0 : index
    %c2 = arith.constant 2 : index
    %c0_30 = arith.constant 0 : index
    %28 = vector.load %arg11[%c0_29, %c2, %c0_30] : memref<10x10x128xbf16, #tpu.memory_space<vmem>>, vector<8x8x128xbf16>
    %29 = vector.shape_cast %28 : vector<8x8x128xbf16> to vector<64x128xbf16>
    %c2_31 = arith.constant 2 : index
    %c0_32 = arith.constant 0 : index
    %c0_33 = arith.constant 0 : index
    %30 = vector.load %arg4[%c2_31, %c0_32, %c0_33] : memref<9x128x128xbf16, #tpu.memory_space<vmem>>, vector<1x128x128xbf16>
    %31 = vector.shape_cast %30 : vector<1x128x128xbf16> to vector<128x128xbf16>
    %cst_34 = arith.constant dense<0.000000e+00> : vector<64x128xf32>
    %32 = tpu.matmul %29, %31, %cst_34 {dimension_numbers = #tpu.dot_dimension_numbers<[1], [0], [0], [1], [0, 0, 1, 1], [], []>} : vector<64x128xbf16>, vector<128x128xbf16>, vector<64x128xf32> -> vector<64x128xf32>
    %33 = arith.addf %27, %32 : vector<64x128xf32>
    %c1_35 = arith.constant 1 : index
    %c0_36 = arith.constant 0 : index
    %c0_37 = arith.constant 0 : index
    %34 = vector.load %arg11[%c1_35, %c0_36, %c0_37] : memref<10x10x128xbf16, #tpu.memory_space<vmem>>, vector<8x8x128xbf16>
    %35 = vector.shape_cast %34 : vector<8x8x128xbf16> to vector<64x128xbf16>
    %c3 = arith.constant 3 : index
    %c0_38 = arith.constant 0 : index
    %c0_39 = arith.constant 0 : index
    %36 = vector.load %arg4[%c3, %c0_38, %c0_39] : memref<9x128x128xbf16, #tpu.memory_space<vmem>>, vector<1x128x128xbf16>
    %37 = vector.shape_cast %36 : vector<1x128x128xbf16> to vector<128x128xbf16>
    %cst_40 = arith.constant dense<0.000000e+00> : vector<64x128xf32>
    %38 = tpu.matmul %35, %37, %cst_40 {dimension_numbers = #tpu.dot_dimension_numbers<[1], [0], [0], [1], [0, 0, 1, 1], [], []>} : vector<64x128xbf16>, vector<128x128xbf16>, vector<64x128xf32> -> vector<64x128xf32>
    %39 = arith.addf %33, %38 : vector<64x128xf32>
    %c1_41 = arith.constant 1 : index
    %c1_42 = arith.constant 1 : index
    %c0_43 = arith.constant 0 : index
    %40 = vector.load %arg11[%c1_41, %c1_42, %c0_43] : memref<10x10x128xbf16, #tpu.memory_space<vmem>>, vector<8x8x128xbf16>
    %41 = vector.shape_cast %40 : vector<8x8x128xbf16> to vector<64x128xbf16>
    %c4 = arith.constant 4 : index
    %c0_44 = arith.constant 0 : index
    %c0_45 = arith.constant 0 : index
    %42 = vector.load %arg4[%c4, %c0_44, %c0_45] : memref<9x128x128xbf16, #tpu.memory_space<vmem>>, vector<1x128x128xbf16>
    %43 = vector.shape_cast %42 : vector<1x128x128xbf16> to vector<128x128xbf16>
    %cst_46 = arith.constant dense<0.000000e+00> : vector<64x128xf32>
    %44 = tpu.matmul %41, %43, %cst_46 {dimension_numbers = #tpu.dot_dimension_numbers<[1], [0], [0], [1], [0, 0, 1, 1], [], []>} : vector<64x128xbf16>, vector<128x128xbf16>, vector<64x128xf32> -> vector<64x128xf32>
    %45 = arith.addf %39, %44 : vector<64x128xf32>
    %c1_47 = arith.constant 1 : index
    %c2_48 = arith.constant 2 : index
    %c0_49 = arith.constant 0 : index
    %46 = vector.load %arg11[%c1_47, %c2_48, %c0_49] : memref<10x10x128xbf16, #tpu.memory_space<vmem>>, vector<8x8x128xbf16>
    %47 = vector.shape_cast %46 : vector<8x8x128xbf16> to vector<64x128xbf16>
    %c5 = arith.constant 5 : index
    %c0_50 = arith.constant 0 : index
    %c0_51 = arith.constant 0 : index
    %48 = vector.load %arg4[%c5, %c0_50, %c0_51] : memref<9x128x128xbf16, #tpu.memory_space<vmem>>, vector<1x128x128xbf16>
    %49 = vector.shape_cast %48 : vector<1x128x128xbf16> to vector<128x128xbf16>
    %cst_52 = arith.constant dense<0.000000e+00> : vector<64x128xf32>
    %50 = tpu.matmul %47, %49, %cst_52 {dimension_numbers = #tpu.dot_dimension_numbers<[1], [0], [0], [1], [0, 0, 1, 1], [], []>} : vector<64x128xbf16>, vector<128x128xbf16>, vector<64x128xf32> -> vector<64x128xf32>
    %51 = arith.addf %45, %50 : vector<64x128xf32>
    %c2_53 = arith.constant 2 : index
    %c0_54 = arith.constant 0 : index
    %c0_55 = arith.constant 0 : index
    %52 = vector.load %arg11[%c2_53, %c0_54, %c0_55] : memref<10x10x128xbf16, #tpu.memory_space<vmem>>, vector<8x8x128xbf16>
    %53 = vector.shape_cast %52 : vector<8x8x128xbf16> to vector<64x128xbf16>
    %c6 = arith.constant 6 : index
    %c0_56 = arith.constant 0 : index
    %c0_57 = arith.constant 0 : index
    %54 = vector.load %arg4[%c6, %c0_56, %c0_57] : memref<9x128x128xbf16, #tpu.memory_space<vmem>>, vector<1x128x128xbf16>
    %55 = vector.shape_cast %54 : vector<1x128x128xbf16> to vector<128x128xbf16>
    %cst_58 = arith.constant dense<0.000000e+00> : vector<64x128xf32>
    %56 = tpu.matmul %53, %55, %cst_58 {dimension_numbers = #tpu.dot_dimension_numbers<[1], [0], [0], [1], [0, 0, 1, 1], [], []>} : vector<64x128xbf16>, vector<128x128xbf16>, vector<64x128xf32> -> vector<64x128xf32>
    %57 = arith.addf %51, %56 : vector<64x128xf32>
    %c2_59 = arith.constant 2 : index
    %c1_60 = arith.constant 1 : index
    %c0_61 = arith.constant 0 : index
    %58 = vector.load %arg11[%c2_59, %c1_60, %c0_61] : memref<10x10x128xbf16, #tpu.memory_space<vmem>>, vector<8x8x128xbf16>
    %59 = vector.shape_cast %58 : vector<8x8x128xbf16> to vector<64x128xbf16>
    %c7 = arith.constant 7 : index
    %c0_62 = arith.constant 0 : index
    %c0_63 = arith.constant 0 : index
    %60 = vector.load %arg4[%c7, %c0_62, %c0_63] : memref<9x128x128xbf16, #tpu.memory_space<vmem>>, vector<1x128x128xbf16>
    %61 = vector.shape_cast %60 : vector<1x128x128xbf16> to vector<128x128xbf16>
    %cst_64 = arith.constant dense<0.000000e+00> : vector<64x128xf32>
    %62 = tpu.matmul %59, %61, %cst_64 {dimension_numbers = #tpu.dot_dimension_numbers<[1], [0], [0], [1], [0, 0, 1, 1], [], []>} : vector<64x128xbf16>, vector<128x128xbf16>, vector<64x128xf32> -> vector<64x128xf32>
    %63 = arith.addf %57, %62 : vector<64x128xf32>
    %c2_65 = arith.constant 2 : index
    %c2_66 = arith.constant 2 : index
    %c0_67 = arith.constant 0 : index
    %64 = vector.load %arg11[%c2_65, %c2_66, %c0_67] : memref<10x10x128xbf16, #tpu.memory_space<vmem>>, vector<8x8x128xbf16>
    %65 = vector.shape_cast %64 : vector<8x8x128xbf16> to vector<64x128xbf16>
    %c8 = arith.constant 8 : index
    %c0_68 = arith.constant 0 : index
    %c0_69 = arith.constant 0 : index
    %66 = vector.load %arg4[%c8, %c0_68, %c0_69] : memref<9x128x128xbf16, #tpu.memory_space<vmem>>, vector<1x128x128xbf16>
    %67 = vector.shape_cast %66 : vector<1x128x128xbf16> to vector<128x128xbf16>
    %cst_70 = arith.constant dense<0.000000e+00> : vector<64x128xf32>
    %68 = tpu.matmul %65, %67, %cst_70 {dimension_numbers = #tpu.dot_dimension_numbers<[1], [0], [0], [1], [0, 0, 1, 1], [], []>} : vector<64x128xbf16>, vector<128x128xbf16>, vector<64x128xf32> -> vector<64x128xf32>
    %69 = arith.addf %63, %68 : vector<64x128xf32>
    %c0_71 = arith.constant 0 : index
    %c0_72 = arith.constant 0 : index
    %70 = vector.load %arg5[%c0_71, %c0_72] : memref<1x128xf32, #tpu.memory_space<vmem>>, vector<1x128xf32>
    %71 = vector.broadcast %70 : vector<1x128xf32> to vector<64x128xf32>
    %72 = arith.addf %69, %71 : vector<64x128xf32>
    %cst_73 = arith.constant 0.000000e+00 : f32
    %73 = vector.broadcast %cst_73 : f32 to vector<64x128xf32>
    %74 = arith.maximumf %72, %73 : vector<64x128xf32>
    %75 = arith.truncf %74 : vector<64x128xf32> to vector<64x128xbf16>
    %c0_74 = arith.constant 0 : index
    %c0_75 = arith.constant 0 : index
    %76 = vector.load %arg6[%c0_74, %c0_75] : memref<128x256xbf16, #tpu.memory_space<vmem>>, vector<128x256xbf16>
    %cst_76 = arith.constant dense<0.000000e+00> : vector<64x256xf32>
    %77 = tpu.matmul %75, %76, %cst_76 {dimension_numbers = #tpu.dot_dimension_numbers<[1], [0], [0], [1], [0, 0, 1, 1], [], []>} : vector<64x128xbf16>, vector<128x256xbf16>, vector<64x256xf32> -> vector<64x256xf32>
    %c0_77 = arith.constant 0 : index
    %c0_78 = arith.constant 0 : index
    %78 = vector.load %arg7[%c0_77, %c0_78] : memref<1x256xf32, #tpu.memory_space<vmem>>, vector<1x256xf32>
    %79 = vector.broadcast %78 : vector<1x256xf32> to vector<64x256xf32>
    %80 = arith.addf %77, %79 : vector<64x256xf32>
    %c0_79 = arith.constant 0 : index
    %c0_80 = arith.constant 0 : index
    %81 = vector.load %arg8[%c0_79, %c0_80] : memref<128x256xbf16, #tpu.memory_space<vmem>>, vector<128x256xbf16>
    %cst_81 = arith.constant dense<0.000000e+00> : vector<64x256xf32>
    %82 = tpu.matmul %2, %81, %cst_81 {dimension_numbers = #tpu.dot_dimension_numbers<[1], [0], [0], [1], [0, 0, 1, 1], [], []>} : vector<64x128xbf16>, vector<128x256xbf16>, vector<64x256xf32> -> vector<64x256xf32>
    %c0_82 = arith.constant 0 : index
    %c0_83 = arith.constant 0 : index
    %83 = vector.load %arg9[%c0_82, %c0_83] : memref<1x256xf32, #tpu.memory_space<vmem>>, vector<1x256xf32>
    %84 = vector.broadcast %83 : vector<1x256xf32> to vector<64x256xf32>
    %85 = arith.addf %82, %84 : vector<64x256xf32>
    %86 = arith.addf %80, %85 : vector<64x256xf32>
    %cst_84 = arith.constant 0.000000e+00 : f32
    %87 = vector.broadcast %cst_84 : f32 to vector<64x256xf32>
    %88 = arith.maximumf %86, %87 : vector<64x256xf32>
    %89 = arith.truncf %88 : vector<64x256xf32> to vector<64x256xbf16>
    %90 = vector.shape_cast %89 : vector<64x256xbf16> to vector<8x8x256xbf16>
    %c0_85 = arith.constant 0 : index
    %c0_86 = arith.constant 0 : index
    %c0_87 = arith.constant 0 : index
    %c0_88 = arith.constant 0 : index
    %91 = vector.load %arg10[%c0_85, %c0_86, %c0_87, %c0_88] : memref<1x8x8x256xbf16, #tpu.memory_space<vmem>>, vector<1x8x8x256xbf16>
    %92 = vector.shape_cast %91 : vector<1x8x8x256xbf16> to vector<8x8x256xbf16>
    %93 = vector.shape_cast %90 : vector<8x8x256xbf16> to vector<1x8x8x256xbf16>
    tpu.vector_store %arg10[%c0_85, %c0_86, %c0_87, %c0_88], %93 {strides = array<i32>} : memref<1x8x8x256xbf16, #tpu.memory_space<vmem>>, vector<1x8x8x256xbf16>,
    return
  }
  func.func @transform_0(%arg0: i32) -> (i32, i32, i32, i32) {
    %c0_i32 = arith.constant 0 : i32
    %c0_i32_0 = arith.constant 0 : i32
    %c0_i32_1 = arith.constant 0 : i32
    %c0_i32_2 = arith.constant 0 : i32
    return %arg0, %c0_i32, %c0_i32_0, %c0_i32_1 : i32, i32, i32, i32
  }
  func.func @transform_1(%arg0: i32) -> (i32, i32) {
    %c0_i32 = arith.constant 0 : i32
    %c0_i32_0 = arith.constant 0 : i32
    %c0_i32_1 = arith.constant 0 : i32
    return %c0_i32, %c0_i32_0 : i32, i32
  }
  func.func @transform_2(%arg0: i32) -> (i32, i32) {
    %c0_i32 = arith.constant 0 : i32
    %c0_i32_0 = arith.constant 0 : i32
    %c0_i32_1 = arith.constant 0 : i32
    return %c0_i32, %c0_i32_0 : i32, i32
  }
  func.func @transform_3(%arg0: i32) -> (i32, i32, i32) {
    %c0_i32 = arith.constant 0 : i32
    %c0_i32_0 = arith.constant 0 : i32
    %c0_i32_1 = arith.constant 0 : i32
    %c0_i32_2 = arith.constant 0 : i32
    return %c0_i32, %c0_i32_0, %c0_i32_1 : i32, i32, i32
  }
  func.func @transform_4(%arg0: i32) -> (i32, i32) {
    %c0_i32 = arith.constant 0 : i32
    %c0_i32_0 = arith.constant 0 : i32
    %c0_i32_1 = arith.constant 0 : i32
    return %c0_i32, %c0_i32_0 : i32, i32
  }
  func.func @transform_5(%arg0: i32) -> (i32, i32) {
    %c0_i32 = arith.constant 0 : i32
    %c0_i32_0 = arith.constant 0 : i32
    %c0_i32_1 = arith.constant 0 : i32
    return %c0_i32, %c0_i32_0 : i32, i32
  }
  func.func @transform_6(%arg0: i32) -> (i32, i32) {
    %c0_i32 = arith.constant 0 : i32
    %c0_i32_0 = arith.constant 0 : i32
    %c0_i32_1 = arith.constant 0 : i32
    return %c0_i32, %c0_i32_0 : i32, i32
  }
  func.func @transform_7(%arg0: i32) -> (i32, i32) {
    %c0_i32 = arith.constant 0 : i32
    %c0_i32_0 = arith.constant 0 : i32
    %c0_i32_1 = arith.constant 0 : i32
    return %c0_i32, %c0_i32_0 : i32, i32
  }
  func.func @transform_8(%arg0: i32) -> (i32, i32) {
    %c0_i32 = arith.constant 0 : i32
    %c0_i32_0 = arith.constant 0 : i32
    %c0_i32_1 = arith.constant 0 : i32
    return %c0_i32, %c0_i32_0 : i32, i32
  }
  func.func @transform_9(%arg0: i32) -> (i32, i32, i32, i32) {
    %c0_i32 = arith.constant 0 : i32
    %c0_i32_0 = arith.constant 0 : i32
    %c0_i32_1 = arith.constant 0 : i32
    %c0_i32_2 = arith.constant 0 : i32
    return %arg0, %c0_i32, %c0_i32_0, %c0_i32_1 : i32, i32, i32, i32
  }
}

module attributes {stable_mosaic.version = 11 : i64} {
  func.func @kernel(%arg0: i32, %arg1: memref<1x8x8x256xbf16, #tpu.memory_space<vmem>>, %arg2: memref<256x128xbf16, #tpu.memory_space<vmem>>, %arg3: memref<1x128xf32, #tpu.memory_space<vmem>>, %arg4: memref<9x128x128xbf16, #tpu.memory_space<vmem>>, %arg5: memref<1x128xf32, #tpu.memory_space<vmem>>, %arg6: memref<128x256xbf16, #tpu.memory_space<vmem>>, %arg7: memref<1x256xf32, #tpu.memory_space<vmem>>, %arg8: memref<256x128xbf16, #tpu.memory_space<vmem>>, %arg9: memref<1x128xf32, #tpu.memory_space<vmem>>, %arg10: memref<1x8x128xf32, #tpu.memory_space<vmem>>, %arg11: memref<10x10x128xbf16, #tpu.memory_space<vmem>>) attributes {dimension_semantics = [#tpu.dimension_semantics<parallel>], iteration_bounds = array<i64: 2>, scalar_prefetch = 0 : i64, scratch_operands = 1 : i64, tpu.core_type = #tpu.core_type<tc>, window_params = [{transform_indices = @transform_0, window_bounds = array<i64: 1, 8, 8, 256>}, {pipeline_mode = #tpu.pipeline_mode<synchronous>, transform_indices = @transform_1, window_bounds = array<i64: 256, 128>}, {pipeline_mode = #tpu.pipeline_mode<synchronous>, transform_indices = @transform_2, window_bounds = array<i64: 1, 128>}, {pipeline_mode = #tpu.pipeline_mode<synchronous>, transform_indices = @transform_3, window_bounds = array<i64: 9, 128, 128>}, {pipeline_mode = #tpu.pipeline_mode<synchronous>, transform_indices = @transform_4, window_bounds = array<i64: 1, 128>}, {pipeline_mode = #tpu.pipeline_mode<synchronous>, transform_indices = @transform_5, window_bounds = array<i64: 128, 256>}, {pipeline_mode = #tpu.pipeline_mode<synchronous>, transform_indices = @transform_6, window_bounds = array<i64: 1, 256>}, {pipeline_mode = #tpu.pipeline_mode<synchronous>, transform_indices = @transform_7, window_bounds = array<i64: 256, 128>}, {pipeline_mode = #tpu.pipeline_mode<synchronous>, transform_indices = @transform_8, window_bounds = array<i64: 1, 128>}, {transform_indices = @transform_9, window_bounds = array<i64: 1, 8, 128>}]} {
    %c0 = arith.constant 0 : index
    %c0_0 = arith.constant 0 : index
    %c0_1 = arith.constant 0 : index
    %c0_2 = arith.constant 0 : index
    %0 = vector.load %arg1[%c0, %c0_0, %c0_1, %c0_2] : memref<1x8x8x256xbf16, #tpu.memory_space<vmem>>, vector<1x8x8x256xbf16>
    %1 = vector.shape_cast %0 : vector<1x8x8x256xbf16> to vector<8x8x256xbf16>
    %2 = vector.shape_cast %1 : vector<8x8x256xbf16> to vector<64x256xbf16>
    %c0_3 = arith.constant 0 : index
    %c0_4 = arith.constant 0 : index
    %3 = vector.load %arg2[%c0_3, %c0_4] : memref<256x128xbf16, #tpu.memory_space<vmem>>, vector<256x128xbf16>
    %cst = arith.constant dense<0.000000e+00> : vector<64x128xf32>
    %4 = tpu.matmul %2, %3, %cst {dimension_numbers = #tpu.dot_dimension_numbers<[1], [0], [0], [1], [0, 0, 1, 1], [], []>} : vector<64x256xbf16>, vector<256x128xbf16>, vector<64x128xf32> -> vector<64x128xf32>
    %c0_5 = arith.constant 0 : index
    %c0_6 = arith.constant 0 : index
    %5 = vector.load %arg3[%c0_5, %c0_6] : memref<1x128xf32, #tpu.memory_space<vmem>>, vector<1x128xf32>
    %6 = vector.broadcast %5 : vector<1x128xf32> to vector<64x128xf32>
    %7 = arith.addf %4, %6 : vector<64x128xf32>
    %cst_7 = arith.constant 0.000000e+00 : f32
    %8 = vector.broadcast %cst_7 : f32 to vector<64x128xf32>
    %9 = arith.maximumf %7, %8 : vector<64x128xf32>
    %cst_8 = arith.constant 0.000000e+00 : bf16
    %10 = vector.broadcast %cst_8 : bf16 to vector<10x10x128xbf16>
    %c0_9 = arith.constant 0 : index
    %c0_10 = arith.constant 0 : index
    %c0_11 = arith.constant 0 : index
    %11 = vector.load %arg11[%c0_9, %c0_10, %c0_11] : memref<10x10x128xbf16, #tpu.memory_space<vmem>>, vector<10x10x128xbf16>
    tpu.vector_store %arg11[%c0_9, %c0_10, %c0_11], %10 {strides = array<i32>} : memref<10x10x128xbf16, #tpu.memory_space<vmem>>, vector<10x10x128xbf16>,
    %12 = arith.truncf %9 : vector<64x128xf32> to vector<64x128xbf16>
    %13 = vector.shape_cast %12 : vector<64x128xbf16> to vector<8x8x128xbf16>
    %c1 = arith.constant 1 : index
    %c1_12 = arith.constant 1 : index
    %c0_13 = arith.constant 0 : index
    %14 = vector.load %arg11[%c1, %c1_12, %c0_13] : memref<10x10x128xbf16, #tpu.memory_space<vmem>>, vector<8x8x128xbf16>
    tpu.vector_store %arg11[%c1, %c1_12, %c0_13], %13 {strides = array<i32>} : memref<10x10x128xbf16, #tpu.memory_space<vmem>>, vector<8x8x128xbf16>,
    %cst_14 = arith.constant 0.000000e+00 : f32
    %15 = vector.broadcast %cst_14 : f32 to vector<64x128xf32>
    %c0_15 = arith.constant 0 : index
    %c0_16 = arith.constant 0 : index
    %c0_17 = arith.constant 0 : index
    %16 = vector.load %arg11[%c0_15, %c0_16, %c0_17] : memref<10x10x128xbf16, #tpu.memory_space<vmem>>, vector<8x8x128xbf16>
    %17 = vector.shape_cast %16 : vector<8x8x128xbf16> to vector<64x128xbf16>
    %c0_18 = arith.constant 0 : index
    %c0_19 = arith.constant 0 : index
    %c0_20 = arith.constant 0 : index
    %18 = vector.load %arg4[%c0_18, %c0_19, %c0_20] : memref<9x128x128xbf16, #tpu.memory_space<vmem>>, vector<1x128x128xbf16>
    %19 = vector.shape_cast %18 : vector<1x128x128xbf16> to vector<128x128xbf16>
    %cst_21 = arith.constant dense<0.000000e+00> : vector<64x128xf32>
    %20 = tpu.matmul %17, %19, %cst_21 {dimension_numbers = #tpu.dot_dimension_numbers<[1], [0], [0], [1], [0, 0, 1, 1], [], []>} : vector<64x128xbf16>, vector<128x128xbf16>, vector<64x128xf32> -> vector<64x128xf32>
    %21 = arith.addf %15, %20 : vector<64x128xf32>
    %c0_22 = arith.constant 0 : index
    %c1_23 = arith.constant 1 : index
    %c0_24 = arith.constant 0 : index
    %22 = vector.load %arg11[%c0_22, %c1_23, %c0_24] : memref<10x10x128xbf16, #tpu.memory_space<vmem>>, vector<8x8x128xbf16>
    %23 = vector.shape_cast %22 : vector<8x8x128xbf16> to vector<64x128xbf16>
    %c1_25 = arith.constant 1 : index
    %c0_26 = arith.constant 0 : index
    %c0_27 = arith.constant 0 : index
    %24 = vector.load %arg4[%c1_25, %c0_26, %c0_27] : memref<9x128x128xbf16, #tpu.memory_space<vmem>>, vector<1x128x128xbf16>
    %25 = vector.shape_cast %24 : vector<1x128x128xbf16> to vector<128x128xbf16>
    %cst_28 = arith.constant dense<0.000000e+00> : vector<64x128xf32>
    %26 = tpu.matmul %23, %25, %cst_28 {dimension_numbers = #tpu.dot_dimension_numbers<[1], [0], [0], [1], [0, 0, 1, 1], [], []>} : vector<64x128xbf16>, vector<128x128xbf16>, vector<64x128xf32> -> vector<64x128xf32>
    %27 = arith.addf %21, %26 : vector<64x128xf32>
    %c0_29 = arith.constant 0 : index
    %c2 = arith.constant 2 : index
    %c0_30 = arith.constant 0 : index
    %28 = vector.load %arg11[%c0_29, %c2, %c0_30] : memref<10x10x128xbf16, #tpu.memory_space<vmem>>, vector<8x8x128xbf16>
    %29 = vector.shape_cast %28 : vector<8x8x128xbf16> to vector<64x128xbf16>
    %c2_31 = arith.constant 2 : index
    %c0_32 = arith.constant 0 : index
    %c0_33 = arith.constant 0 : index
    %30 = vector.load %arg4[%c2_31, %c0_32, %c0_33] : memref<9x128x128xbf16, #tpu.memory_space<vmem>>, vector<1x128x128xbf16>
    %31 = vector.shape_cast %30 : vector<1x128x128xbf16> to vector<128x128xbf16>
    %cst_34 = arith.constant dense<0.000000e+00> : vector<64x128xf32>
    %32 = tpu.matmul %29, %31, %cst_34 {dimension_numbers = #tpu.dot_dimension_numbers<[1], [0], [0], [1], [0, 0, 1, 1], [], []>} : vector<64x128xbf16>, vector<128x128xbf16>, vector<64x128xf32> -> vector<64x128xf32>
    %33 = arith.addf %27, %32 : vector<64x128xf32>
    %c1_35 = arith.constant 1 : index
    %c0_36 = arith.constant 0 : index
    %c0_37 = arith.constant 0 : index
    %34 = vector.load %arg11[%c1_35, %c0_36, %c0_37] : memref<10x10x128xbf16, #tpu.memory_space<vmem>>, vector<8x8x128xbf16>
    %35 = vector.shape_cast %34 : vector<8x8x128xbf16> to vector<64x128xbf16>
    %c3 = arith.constant 3 : index
    %c0_38 = arith.constant 0 : index
    %c0_39 = arith.constant 0 : index
    %36 = vector.load %arg4[%c3, %c0_38, %c0_39] : memref<9x128x128xbf16, #tpu.memory_space<vmem>>, vector<1x128x128xbf16>
    %37 = vector.shape_cast %36 : vector<1x128x128xbf16> to vector<128x128xbf16>
    %cst_40 = arith.constant dense<0.000000e+00> : vector<64x128xf32>
    %38 = tpu.matmul %35, %37, %cst_40 {dimension_numbers = #tpu.dot_dimension_numbers<[1], [0], [0], [1], [0, 0, 1, 1], [], []>} : vector<64x128xbf16>, vector<128x128xbf16>, vector<64x128xf32> -> vector<64x128xf32>
    %39 = arith.addf %33, %38 : vector<64x128xf32>
    %c1_41 = arith.constant 1 : index
    %c1_42 = arith.constant 1 : index
    %c0_43 = arith.constant 0 : index
    %40 = vector.load %arg11[%c1_41, %c1_42, %c0_43] : memref<10x10x128xbf16, #tpu.memory_space<vmem>>, vector<8x8x128xbf16>
    %41 = vector.shape_cast %40 : vector<8x8x128xbf16> to vector<64x128xbf16>
    %c4 = arith.constant 4 : index
    %c0_44 = arith.constant 0 : index
    %c0_45 = arith.constant 0 : index
    %42 = vector.load %arg4[%c4, %c0_44, %c0_45] : memref<9x128x128xbf16, #tpu.memory_space<vmem>>, vector<1x128x128xbf16>
    %43 = vector.shape_cast %42 : vector<1x128x128xbf16> to vector<128x128xbf16>
    %cst_46 = arith.constant dense<0.000000e+00> : vector<64x128xf32>
    %44 = tpu.matmul %41, %43, %cst_46 {dimension_numbers = #tpu.dot_dimension_numbers<[1], [0], [0], [1], [0, 0, 1, 1], [], []>} : vector<64x128xbf16>, vector<128x128xbf16>, vector<64x128xf32> -> vector<64x128xf32>
    %45 = arith.addf %39, %44 : vector<64x128xf32>
    %c1_47 = arith.constant 1 : index
    %c2_48 = arith.constant 2 : index
    %c0_49 = arith.constant 0 : index
    %46 = vector.load %arg11[%c1_47, %c2_48, %c0_49] : memref<10x10x128xbf16, #tpu.memory_space<vmem>>, vector<8x8x128xbf16>
    %47 = vector.shape_cast %46 : vector<8x8x128xbf16> to vector<64x128xbf16>
    %c5 = arith.constant 5 : index
    %c0_50 = arith.constant 0 : index
    %c0_51 = arith.constant 0 : index
    %48 = vector.load %arg4[%c5, %c0_50, %c0_51] : memref<9x128x128xbf16, #tpu.memory_space<vmem>>, vector<1x128x128xbf16>
    %49 = vector.shape_cast %48 : vector<1x128x128xbf16> to vector<128x128xbf16>
    %cst_52 = arith.constant dense<0.000000e+00> : vector<64x128xf32>
    %50 = tpu.matmul %47, %49, %cst_52 {dimension_numbers = #tpu.dot_dimension_numbers<[1], [0], [0], [1], [0, 0, 1, 1], [], []>} : vector<64x128xbf16>, vector<128x128xbf16>, vector<64x128xf32> -> vector<64x128xf32>
    %51 = arith.addf %45, %50 : vector<64x128xf32>
    %c2_53 = arith.constant 2 : index
    %c0_54 = arith.constant 0 : index
    %c0_55 = arith.constant 0 : index
    %52 = vector.load %arg11[%c2_53, %c0_54, %c0_55] : memref<10x10x128xbf16, #tpu.memory_space<vmem>>, vector<8x8x128xbf16>
    %53 = vector.shape_cast %52 : vector<8x8x128xbf16> to vector<64x128xbf16>
    %c6 = arith.constant 6 : index
    %c0_56 = arith.constant 0 : index
    %c0_57 = arith.constant 0 : index
    %54 = vector.load %arg4[%c6, %c0_56, %c0_57] : memref<9x128x128xbf16, #tpu.memory_space<vmem>>, vector<1x128x128xbf16>
    %55 = vector.shape_cast %54 : vector<1x128x128xbf16> to vector<128x128xbf16>
    %cst_58 = arith.constant dense<0.000000e+00> : vector<64x128xf32>
    %56 = tpu.matmul %53, %55, %cst_58 {dimension_numbers = #tpu.dot_dimension_numbers<[1], [0], [0], [1], [0, 0, 1, 1], [], []>} : vector<64x128xbf16>, vector<128x128xbf16>, vector<64x128xf32> -> vector<64x128xf32>
    %57 = arith.addf %51, %56 : vector<64x128xf32>
    %c2_59 = arith.constant 2 : index
    %c1_60 = arith.constant 1 : index
    %c0_61 = arith.constant 0 : index
    %58 = vector.load %arg11[%c2_59, %c1_60, %c0_61] : memref<10x10x128xbf16, #tpu.memory_space<vmem>>, vector<8x8x128xbf16>
    %59 = vector.shape_cast %58 : vector<8x8x128xbf16> to vector<64x128xbf16>
    %c7 = arith.constant 7 : index
    %c0_62 = arith.constant 0 : index
    %c0_63 = arith.constant 0 : index
    %60 = vector.load %arg4[%c7, %c0_62, %c0_63] : memref<9x128x128xbf16, #tpu.memory_space<vmem>>, vector<1x128x128xbf16>
    %61 = vector.shape_cast %60 : vector<1x128x128xbf16> to vector<128x128xbf16>
    %cst_64 = arith.constant dense<0.000000e+00> : vector<64x128xf32>
    %62 = tpu.matmul %59, %61, %cst_64 {dimension_numbers = #tpu.dot_dimension_numbers<[1], [0], [0], [1], [0, 0, 1, 1], [], []>} : vector<64x128xbf16>, vector<128x128xbf16>, vector<64x128xf32> -> vector<64x128xf32>
    %63 = arith.addf %57, %62 : vector<64x128xf32>
    %c2_65 = arith.constant 2 : index
    %c2_66 = arith.constant 2 : index
    %c0_67 = arith.constant 0 : index
    %64 = vector.load %arg11[%c2_65, %c2_66, %c0_67] : memref<10x10x128xbf16, #tpu.memory_space<vmem>>, vector<8x8x128xbf16>
    %65 = vector.shape_cast %64 : vector<8x8x128xbf16> to vector<64x128xbf16>
    %c8 = arith.constant 8 : index
    %c0_68 = arith.constant 0 : index
    %c0_69 = arith.constant 0 : index
    %66 = vector.load %arg4[%c8, %c0_68, %c0_69] : memref<9x128x128xbf16, #tpu.memory_space<vmem>>, vector<1x128x128xbf16>
    %67 = vector.shape_cast %66 : vector<1x128x128xbf16> to vector<128x128xbf16>
    %cst_70 = arith.constant dense<0.000000e+00> : vector<64x128xf32>
    %68 = tpu.matmul %65, %67, %cst_70 {dimension_numbers = #tpu.dot_dimension_numbers<[1], [0], [0], [1], [0, 0, 1, 1], [], []>} : vector<64x128xbf16>, vector<128x128xbf16>, vector<64x128xf32> -> vector<64x128xf32>
    %69 = arith.addf %63, %68 : vector<64x128xf32>
    %c0_71 = arith.constant 0 : index
    %c0_72 = arith.constant 0 : index
    %70 = vector.load %arg5[%c0_71, %c0_72] : memref<1x128xf32, #tpu.memory_space<vmem>>, vector<1x128xf32>
    %71 = vector.broadcast %70 : vector<1x128xf32> to vector<64x128xf32>
    %72 = arith.addf %69, %71 : vector<64x128xf32>
    %cst_73 = arith.constant 0.000000e+00 : f32
    %73 = vector.broadcast %cst_73 : f32 to vector<64x128xf32>
    %74 = arith.maximumf %72, %73 : vector<64x128xf32>
    %75 = arith.truncf %74 : vector<64x128xf32> to vector<64x128xbf16>
    %c0_74 = arith.constant 0 : index
    %c0_75 = arith.constant 0 : index
    %76 = vector.load %arg6[%c0_74, %c0_75] : memref<128x256xbf16, #tpu.memory_space<vmem>>, vector<128x256xbf16>
    %cst_76 = arith.constant dense<0.000000e+00> : vector<64x256xf32>
    %77 = tpu.matmul %75, %76, %cst_76 {dimension_numbers = #tpu.dot_dimension_numbers<[1], [0], [0], [1], [0, 0, 1, 1], [], []>} : vector<64x128xbf16>, vector<128x256xbf16>, vector<64x256xf32> -> vector<64x256xf32>
    %c0_77 = arith.constant 0 : index
    %c0_78 = arith.constant 0 : index
    %78 = vector.load %arg7[%c0_77, %c0_78] : memref<1x256xf32, #tpu.memory_space<vmem>>, vector<1x256xf32>
    %79 = vector.broadcast %78 : vector<1x256xf32> to vector<64x256xf32>
    %80 = arith.addf %77, %79 : vector<64x256xf32>
    %81 = arith.extf %2 : vector<64x256xbf16> to vector<64x256xf32>
    %82 = arith.addf %80, %81 : vector<64x256xf32>
    %cst_79 = arith.constant 0.000000e+00 : f32
    %83 = vector.broadcast %cst_79 : f32 to vector<64x256xf32>
    %84 = arith.maximumf %82, %83 : vector<64x256xf32>
    %cst_80 = arith.constant dense<0.000000e+00> : vector<256xf32>
    %85 = vector.multi_reduction <add>, %84, %cst_80 [0] : vector<64x256xf32> to vector<256xf32>
    %86 = vector.shape_cast %85 : vector<256xf32> to vector<1x256xf32>
    %cst_81 = arith.constant 6.400000e+01 : f32
    %87 = vector.broadcast %cst_81 : f32 to vector<1x256xf32>
    %88 = arith.divf %86, %87 : vector<1x256xf32>
    %89 = arith.truncf %88 : vector<1x256xf32> to vector<1x256xbf16>
    %c0_82 = arith.constant 0 : index
    %c0_83 = arith.constant 0 : index
    %90 = vector.load %arg8[%c0_82, %c0_83] : memref<256x128xbf16, #tpu.memory_space<vmem>>, vector<256x128xbf16>
    %cst_84 = arith.constant dense<0.000000e+00> : vector<1x128xf32>
    %91 = tpu.matmul %89, %90, %cst_84 {dimension_numbers = #tpu.dot_dimension_numbers<[1], [0], [0], [1], [0, 0, 1, 1], [], []>} : vector<1x256xbf16>, vector<256x128xbf16>, vector<1x128xf32> -> vector<1x128xf32>
    %c0_85 = arith.constant 0 : index
    %c0_86 = arith.constant 0 : index
    %92 = vector.load %arg9[%c0_85, %c0_86] : memref<1x128xf32, #tpu.memory_space<vmem>>, vector<1x128xf32>
    %93 = arith.addf %91, %92 : vector<1x128xf32>
    %94 = vector.shape_cast %93 : vector<1x128xf32> to vector<1x1x128xf32>
    %95 = vector.shape_cast %94 : vector<1x1x128xf32> to vector<1x1x128xf32>
    %96 = vector.broadcast %95 : vector<1x1x128xf32> to vector<1x8x128xf32>
    %c0_87 = arith.constant 0 : index
    %c0_88 = arith.constant 0 : index
    %c0_89 = arith.constant 0 : index
    %97 = vector.load %arg10[%c0_87, %c0_88, %c0_89] : memref<1x8x128xf32, #tpu.memory_space<vmem>>, vector<1x8x128xf32>
    tpu.vector_store %arg10[%c0_87, %c0_88, %c0_89], %96 {strides = array<i32>} : memref<1x8x128xf32, #tpu.memory_space<vmem>>, vector<1x8x128xf32>,
    return
  }
  func.func @transform_0(%arg0: i32) -> (i32, i32, i32, i32) {
    %c0_i32 = arith.constant 0 : i32
    %c0_i32_0 = arith.constant 0 : i32
    %c0_i32_1 = arith.constant 0 : i32
    %c0_i32_2 = arith.constant 0 : i32
    return %arg0, %c0_i32, %c0_i32_0, %c0_i32_1 : i32, i32, i32, i32
  }
  func.func @transform_1(%arg0: i32) -> (i32, i32) {
    %c0_i32 = arith.constant 0 : i32
    %c0_i32_0 = arith.constant 0 : i32
    %c0_i32_1 = arith.constant 0 : i32
    return %c0_i32, %c0_i32_0 : i32, i32
  }
  func.func @transform_2(%arg0: i32) -> (i32, i32) {
    %c0_i32 = arith.constant 0 : i32
    %c0_i32_0 = arith.constant 0 : i32
    %c0_i32_1 = arith.constant 0 : i32
    return %c0_i32, %c0_i32_0 : i32, i32
  }
  func.func @transform_3(%arg0: i32) -> (i32, i32, i32) {
    %c0_i32 = arith.constant 0 : i32
    %c0_i32_0 = arith.constant 0 : i32
    %c0_i32_1 = arith.constant 0 : i32
    %c0_i32_2 = arith.constant 0 : i32
    return %c0_i32, %c0_i32_0, %c0_i32_1 : i32, i32, i32
  }
  func.func @transform_4(%arg0: i32) -> (i32, i32) {
    %c0_i32 = arith.constant 0 : i32
    %c0_i32_0 = arith.constant 0 : i32
    %c0_i32_1 = arith.constant 0 : i32
    return %c0_i32, %c0_i32_0 : i32, i32
  }
  func.func @transform_5(%arg0: i32) -> (i32, i32) {
    %c0_i32 = arith.constant 0 : i32
    %c0_i32_0 = arith.constant 0 : i32
    %c0_i32_1 = arith.constant 0 : i32
    return %c0_i32, %c0_i32_0 : i32, i32
  }
  func.func @transform_6(%arg0: i32) -> (i32, i32) {
    %c0_i32 = arith.constant 0 : i32
    %c0_i32_0 = arith.constant 0 : i32
    %c0_i32_1 = arith.constant 0 : i32
    return %c0_i32, %c0_i32_0 : i32, i32
  }
  func.func @transform_7(%arg0: i32) -> (i32, i32) {
    %c0_i32 = arith.constant 0 : i32
    %c0_i32_0 = arith.constant 0 : i32
    %c0_i32_1 = arith.constant 0 : i32
    return %c0_i32, %c0_i32_0 : i32, i32
  }
  func.func @transform_8(%arg0: i32) -> (i32, i32) {
    %c0_i32 = arith.constant 0 : i32
    %c0_i32_0 = arith.constant 0 : i32
    %c0_i32_1 = arith.constant 0 : i32
    return %c0_i32, %c0_i32_0 : i32, i32
  }
  func.func @transform_9(%arg0: i32) -> (i32, i32, i32) {
    %c0_i32 = arith.constant 0 : i32
    %c0_i32_0 = arith.constant 0 : i32
    %c0_i32_1 = arith.constant 0 : i32
    return %arg0, %c0_i32, %c0_i32_0 : i32, i32, i32
  }
}

</mosaic_0001>

<bundles_post_ra>
// kernel: _lambda_.3
= control target key start
LH: loop header
LB: loop body
LE: loop exit
PB: predicated region body
PF: predicated region fallthrough
CT: control target
= control target key end

     0   :  { %s1985_s12 = smov 0   ;;  %s2437_s0 = inlined_call_operand.vmem [shape: bf16[2,4,64,256], index: 0, kind: input, shape index: {}]   ;;  %s2438_s1 = inlined_call_operand.vmem [shape: bf16[256,128], index: 1, kind: input, shape index: {}]   ;;  %s2439_s2 = inlined_call_operand.vmem [shape: f32[1,128], index: 2, kind: input, shape index: {}]   ;;  %s2440_s3 = inlined_call_operand.vmem [shape: bf16[2,8,8,128], index: 3, kind: output, shape index: {}]  }
   0x1 LB: > { %s1515_s13 = sadd.s32 4294967295, %s1962_s12   ;;  %p1519_p0 = scmp.ge.s32.totalorder %s1962_s12, 1  ;;  %s1962_s12 = sphi %s1985_s12, %s13_s12  }
   0x2   : > { %p137_p1 = scmp.lt.s32.totalorder %s1962_s12, 3 }
   0x4   : > { %p138_p2 = pnand %p1519_p0, %p137_p1 }
   0x5   : > { %v1844_v0 = vld [vmem:[%s2438_s1 + $0x40] sm:$0xff] (!%p138_p2)   ;;  %v1848_v4 = vld [vmem:[%s2438_s1 + $0x48] sm:$0xff] (!%p138_p2)   ;;  %v1852_v8 = vld [vmem:[%s2438_s1 + $0x50] sm:$0xff] (!%p138_p2)   ;;  %p161_p3 = scmp.lt.s32.totalorder (!%p138_p2), %s1515_s13, 1 }
   0x6   : > { %141 = sbr.rel (%p138_p2) target bundleno = 343 (0x157), region = 32  ;;  %v1845_v1 = vld [vmem:[%s2438_s1 + $0x40] sm:$0xff] (!%p138_p2)   ;;  %1675 = vmatprep.subr.bf16.mxu0 (!%p138_p2), %v1844_v0  ;;  %v1849_v5 = vld [vmem:[%s2438_s1 + $0x48] sm:$0xff] (!%p138_p2)   ;;  %v1853_v9 = vld [vmem:[%s2438_s1 + $0x50] sm:$0xff] (!%p138_p2)  }
   0x7   : > { %v1846_v2 = vld [vmem:[%s2438_s1] sm:$0xff] (!%p138_p2)   ;;  %1715 = vmatprep.subr.bf16.mxu1 (!%p138_p2), %v1845_v1  ;;  %v1850_v6 = vld [vmem:[%s2438_s1 + $0x8] sm:$0xff] (!%p138_p2)   ;;  %v1854_v10 = vld [vmem:[%s2438_s1 + $0x10] sm:$0xff] (!%p138_p2)  }
   0x8   : > { %v1847_v3 = vld [vmem:[%s2438_s1] sm:$0xff] (!%p138_p2)   ;;  %1676 = vmatpush3.bf16.msra.mxu0 (!%p138_p2), %v1846_v2  ;;  %v1851_v7 = vld [vmem:[%s2438_s1 + $0x8] sm:$0xff] (!%p138_p2)   ;;  %v1855_v11 = vld [vmem:[%s2438_s1 + $0x10] sm:$0xff] (!%p138_p2)  }
   0x9   : > { %1716 = vmatpush3.bf16.msra.mxu1 (!%p138_p2), %v1847_v3  ;;  %1677 = vmatprep.subr.bf16.mxu0 (!%p138_p2), %v1848_v4  ;;  %v1856_v12 = vld [vmem:[%s2438_s1 + $0x58] sm:$0xff] (!%p138_p2)   ;;  %v1860_v16 = vld [vmem:[%s2438_s1 + $0x60] sm:$0xff] (!%p138_p2)   ;;  %v1864_v20 = vld [vmem:[%s2438_s1 + $0x68] sm:$0xff] (!%p138_p2)  }
   0xa   : > { %1717 = vmatprep.subr.bf16.mxu1 (!%p138_p2), %v1849_v5  ;;  %v1857_v13 = vld [vmem:[%s2438_s1 + $0x58] sm:$0xff] (!%p138_p2)   ;;  %v1861_v17 = vld [vmem:[%s2438_s1 + $0x60] sm:$0xff] (!%p138_p2)   ;;  %v1865_v21 = vld [vmem:[%s2438_s1 + $0x68] sm:$0xff] (!%p138_p2)  }
   0xb   : > { %v1858_v14 = vld [vmem:[%s2438_s1 + $0x18] sm:$0xff] (!%p138_p2)   ;;  %v1862_v18 = vld [vmem:[%s2438_s1 + $0x20] sm:$0xff] (!%p138_p2)   ;;  %v1866_v22 = vld [vmem:[%s2438_s1 + $0x28] sm:$0xff] (!%p138_p2)  }
   0xc   : > { %1678 = vmatpush3.bf16.msra.mxu0 (!%p138_p2), %v1850_v6  ;;  %v1859_v15 = vld [vmem:[%s2438_s1 + $0x18] sm:$0xff] (!%p138_p2)   ;;  %v1863_v19 = vld [vmem:[%s2438_s1 + $0x20] sm:$0xff] (!%p138_p2)   ;;  %v1867_v23 = vld [vmem:[%s2438_s1 + $0x28] sm:$0xff] (!%p138_p2)  }
   0xd   : > { %1718 = vmatpush3.bf16.msra.mxu1 %v1851_v7  ;;  %1679 = vmatprep.subr.bf16.mxu0 %v1852_v8  ;;  %v1868_v24 = vld [vmem:[%s2438_s1 + $0x70] sm:$0xff]   ;;  %s2442_s13 = smov (!%p161_p3, %s1515_s13), 1  ;;  %v1872_v28 = vld [vmem:[%s2438_s1 + $0x78] sm:$0xff]   ;;  %v1882_v36 = vld [vmem:[%s2438_s1 + $0x40] sm:$0xff]  }
   0xe   : > { %1719 = vmatprep.subr.bf16.mxu1 %v1853_v9  ;;  %v1869_v25 = vld [vmem:[%s2438_s1 + $0x70] sm:$0xff]   ;;  %s1650_s22 = sshll.u32 %s2442_s13, 8  ;;  %v1873_v29 = vld [vmem:[%s2438_s1 + $0x78] sm:$0xff]   ;;  %v1883_v37 = vld [vmem:[%s2438_s1 + $0x40] sm:$0xff]   ;;  %s1651_s24 = sshll.u32 %s2442_s13, 5 }
   0xf   : > { %v1870_v26 = vld [vmem:[%s2438_s1 + $0x30] sm:$0xff]   ;;  %v1874_v30 = vld [vmem:[%s2438_s1 + $0x38] sm:$0xff]   ;;  %s2099_s4 = scalar_lea.vmem %s2437_s0, %s1650_s22  ;;  %v1884_v38 = vld [vmem:[%s2438_s1] sm:$0xff]   ;;  %s2393_s26 = scalar_lea.vmem %s2440_s3, %s1651_s24 }
  0x10   : > { %1680 = vmatpush3.bf16.msra.mxu0 %v1854_v10  ;;  %v1871_v27 = vld [vmem:[%s2438_s1 + $0x30] sm:$0xff]   ;;  %v1875_v31 = vld [vmem:[%s2438_s1 + $0x38] sm:$0xff]   ;;  %v1876_v32 = vld [vmem:[%s2099_s4] ss:$8 sps:$4 sm:$0xff]  }
  0x11   : > { %1720 = vmatpush3.bf16.msra.mxu1 %v1855_v11  ;;  %1681 = vmatprep.subr.bf16.mxu0 %v1856_v12  ;;  %v1878_v33 = vld [vmem:[%s2099_s4 + $0x4] ss:$8 sps:$4 sm:$0xff]   ;;  %v1879_v34 = vld [vmem:[%s2099_s4 + $0x40] ss:$8 sps:$4 sm:$0xff]   ;;  %v1890_v44 = vld [vmem:[%s2099_s4 + $0x14] ss:$8 sps:$4 sm:$0xff]  }
  0x12   : > { %1721 = vmatprep.subr.bf16.mxu1 %v1857_v13  ;;  %v1881_v35 = vld [vmem:[%s2099_s4 + $0x44] ss:$8 sps:$4 sm:$0xff]   ;;  %459 = vmatprep.mubr.bf16.mxu0 %v1878_v33  ;;  %v1892_v45 = vld [vmem:[%s2099_s4 + $0x54] ss:$8 sps:$4 sm:$0xff]   ;;  %v1894_v46 = vld [vmem:[%s2099_s4 + $0x10] ss:$8 sps:$4 sm:$0xff]  }
  0x13   : > { %725 = vmatprep.mubr.bf16.mxu1 %v1881_v35  ;;  %v1885_v39 = vld [vmem:[%s2438_s1] sm:$0xff]   ;;  %v1886_v40 = vld [vmem:[%s2438_s1 + $0x48] sm:$0xff]   ;;  %v1895_v47 = vld [vmem:[%s2099_s4 + $0x50] ss:$8 sps:$4 sm:$0xff]  }
  0x14   : > { %1682 = vmatpush3.bf16.msra.mxu0 %v1858_v14  ;;  %v1887_v41 = vld [vmem:[%s2438_s1 + $0x48] sm:$0xff]   ;;  %v1896_v48 = vld [vmem:[%s2438_s1 + $0x50] sm:$0xff]   ;;  %v1900_v52 = vld [vmem:[%s2438_s1 + $0x58] sm:$0xff]  }
  0x15   : > { %1722 = vmatpush3.bf16.msra.mxu1 %v1859_v15  ;;  %1683 = vmatprep.subr.bf16.mxu0 %v1860_v16  ;;  %v1888_v42 = vld [vmem:[%s2438_s1 + $0x8] sm:$0xff]   ;;  %v1897_v49 = vld [vmem:[%s2438_s1 + $0x50] sm:$0xff]   ;;  %v1901_v53 = vld [vmem:[%s2438_s1 + $0x58] sm:$0xff]  }
  0x16   : > { %1723 = vmatprep.subr.bf16.mxu1 %v1861_v17  ;;  %v1889_v43 = vld [vmem:[%s2438_s1 + $0x8] sm:$0xff]   ;;  %v1898_v50 = vld [vmem:[%s2438_s1 + $0x10] sm:$0xff]   ;;  %v1902_v54 = vld [vmem:[%s2438_s1 + $0x18] sm:$0xff]  }
  0x17   : > { %v1899_v51 = vld [vmem:[%s2438_s1 + $0x10] sm:$0xff]   ;;  %v1903_v55 = vld [vmem:[%s2438_s1 + $0x18] sm:$0xff]   ;;  %v1904_v56 = vld [vmem:[%s2099_s4 + $0x24] ss:$8 sps:$4 sm:$0xff]  }
  0x18   : > { %1684 = vmatpush3.bf16.msra.mxu0 %v1862_v18  ;;  %v1906_v57 = vld [vmem:[%s2099_s4 + $0x64] ss:$8 sps:$4 sm:$0xff]   ;;  %v1908_v58 = vld [vmem:[%s2099_s4 + $0x20] ss:$8 sps:$4 sm:$0xff]   ;;  %v1918_v4 = vld [vmem:[%s2099_s4 + $0x34] ss:$8 sps:$4 sm:$0xff]  }
  0x19   : > { %1724 = vmatpush3.bf16.msra.mxu1 %v1863_v19  ;;  %1685 = vmatprep.subr.bf16.mxu0 %v1864_v20  ;;  %v1909_v59 = vld [vmem:[%s2099_s4 + $0x60] ss:$8 sps:$4 sm:$0xff]   ;;  %v1920_v5 = vld [vmem:[%s2099_s4 + $0x74] ss:$8 sps:$4 sm:$0xff]   ;;  %v1922_v6 = vld [vmem:[%s2099_s4 + $0x30] ss:$8 sps:$4 sm:$0xff]  }
  0x1a   : > { %1725 = vmatprep.subr.bf16.mxu1 %v1865_v21  ;;  %v1910_v60 = vld [vmem:[%s2438_s1 + $0x60] sm:$0xff]   ;;  %v1914_v0 = vld [vmem:[%s2438_s1 + $0x68] sm:$0xff]   ;;  %v1923_v7 = vld [vmem:[%s2099_s4 + $0x70] ss:$8 sps:$4 sm:$0xff]  }
  0x1b   : > { %v1911_v61 = vld [vmem:[%s2438_s1 + $0x60] sm:$0xff]   ;;  %v1915_v1 = vld [vmem:[%s2438_s1 + $0x68] sm:$0xff]   ;;  %v1924_v8 = vld [vmem:[%s2438_s1 + $0x70] sm:$0xff]  }
  0x1c   : > { %1686 = vmatpush3.bf16.msra.mxu0 %v1866_v22  ;;  %v1912_v62 = vld [vmem:[%s2438_s1 + $0x20] sm:$0xff]   ;;  %v1916_v2 = vld [vmem:[%s2438_s1 + $0x28] sm:$0xff]   ;;  %v1925_v9 = vld [vmem:[%s2438_s1 + $0x70] sm:$0xff]  }
  0x1d   : > { %1726 = vmatpush3.bf16.msra.mxu1 %v1867_v23  ;;  %1687 = vmatprep.subr.bf16.mxu0 %v1868_v24  ;;  %v1913_v63 = vld [vmem:[%s2438_s1 + $0x20] sm:$0xff]   ;;  %v1917_v3 = vld [vmem:[%s2438_s1 + $0x28] sm:$0xff]   ;;  %v1926_v10 = vld [vmem:[%s2438_s1 + $0x30] sm:$0xff]  }
  0x1e   : > { %1727 = vmatprep.subr.bf16.mxu1 %v1869_v25  ;;  %v1927_v11 = vld [vmem:[%s2438_s1 + $0x30] sm:$0xff]   ;;  %v1928_v12 = vld [vmem:[%s2438_s1 + $0x78] sm:$0xff]   ;;  %v1932_v16 = vld [vmem:[%s2099_s4 + $0x80] ss:$8 sps:$4 sm:$0xff]  }
  0x1f   : > { %v1929_v13 = vld [vmem:[%s2438_s1 + $0x78] sm:$0xff]   ;;  %v1934_v17 = vld [vmem:[%s2099_s4 + $0x84] ss:$8 sps:$4 sm:$0xff]   ;;  %v1935_v18 = vld [vmem:[%s2099_s4 + $0xc0] ss:$8 sps:$4 sm:$0xff]  }
  0x20   : > { %1688 = vmatpush3.bf16.msra.mxu0 %v1870_v26  ;;  %v1930_v14 = vld [vmem:[%s2438_s1 + $0x38] sm:$0xff]   ;;  %v1937_v19 = vld [vmem:[%s2099_s4 + $0xc4] ss:$8 sps:$4 sm:$0xff]   ;;  %v1948_v26 = vld [vmem:[%s2099_s4 + $0xa0] ss:$8 sps:$4 sm:$0xff]  }
  0x21   : > { %1728 = vmatpush3.bf16.msra.mxu1 %v1871_v27  ;;  %1689 = vmatprep.subr.bf16.mxu0 %v1872_v28  ;;  %v1931_v15 = vld [vmem:[%s2438_s1 + $0x38] sm:$0xff]   ;;  %v1944_v23 = vld [vmem:[%s2099_s4 + $0xa4] ss:$8 sps:$4 sm:$0xff]   ;;  %v1949_v28 = vld [vmem:[%s2099_s4 + $0xe0] ss:$8 sps:$4 sm:$0xff]  }
  0x22   : > { %1729 = vmatprep.subr.bf16.mxu1 %v1873_v29  ;;  %v1938_v20 = vld [vmem:[%s2099_s4 + $0x94] ss:$8 sps:$4 sm:$0xff]   ;;  %v1942_v22 = vld [vmem:[%s2099_s4 + $0x90] ss:$8 sps:$4 sm:$0xff]   ;;  %v1946_v25 = vld [vmem:[%s2099_s4 + $0xe4] ss:$8 sps:$4 sm:$0xff]  }
  0x23   : > { %v1940_v21 = vld [vmem:[%s2099_s4 + $0xd4] ss:$8 sps:$4 sm:$0xff]   ;;  %v1943_v24 = vld [vmem:[%s2099_s4 + $0xd0] ss:$8 sps:$4 sm:$0xff]  }
  0x24   : > { %1690 = vmatpush3.bf16.msra.mxu0 %v1874_v30  ;;  %v1950_v27 = vld [vmem:[%s2099_s4 + $0xb4] ss:$8 sps:$4 sm:$0xff]   ;;  %v1954_v30 = vld [vmem:[%s2099_s4 + $0xb0] ss:$8 sps:$4 sm:$0xff]  }
  0x25   : > { %1730 = vmatpush3.bf16.msra.mxu1 %v1875_v31  ;;  %1755 = vmatprep.subr.bf16.mxu0 %v1882_v36  ;;  %v1952_v29 = vld [vmem:[%s2099_s4 + $0xf4] ss:$8 sps:$4 sm:$0xff]   ;;  %v1955_v31 = vld [vmem:[%s2099_s4 + $0xf0] ss:$8 sps:$4 sm:$0xff]   ;;  %v2232_v36 = vld [vmem:[%s2439_s2] ss:$0 sm:$0xff] }
  0x26   : > { %1795 = vmatprep.subr.bf16.mxu1 %v1883_v37 }
  0x27   : > { %460 = vmatmul.mubr.bf16.vlgmr.msra.gmra.mrb[0].mxu0 %v1876_v32  ;;  %v1964_v32 = vmov 0.0  }
  0x28   : > { %726 = vmatmul.mubr.bf16.vlgmr.msra.gmra.mrb[0].mxu1 %v1879_v34  ;;  %1756 = vmatpush3.bf16.msra.mxu0 %v1884_v38  ;;  %172 = vst [vmem:[#allocation2] sm:$0xff] %v1964_v32  ;;  %173 = vst [vmem:[#allocation2 + $0x8] sm:$0x1] %v1964_v32 }
  0x29   : > { %1796 = vmatpush3.bf16.msra.mxu1 %v1885_v39  ;;  %1757 = vmatprep.subr.bf16.mxu0 %v1886_v40  ;;  %174 = vst [vmem:[#allocation2 + $0x10] sm:$0xff] %v1964_v32  ;;  %176 = vst [vmem:[#allocation2 + $0x20] sm:$0xff] %v1964_v32 }
  0x2a   : > { %1797 = vmatprep.subr.bf16.mxu1 %v1887_v41  ;;  %467 = vmatprep.mubr.bf16.mxu0 %v1890_v44  ;;  %178 = vst [vmem:[#allocation2 + $0x30] sm:$0xff] %v1964_v32  ;;  %180 = vst [vmem:[#allocation2 + $0x40] sm:$0xff] %v1964_v32 }
  0x2b   : > { %733 = vmatprep.mubr.bf16.mxu1 %v1892_v45  ;;  %182 = vst [vmem:[#allocation2 + $0x50] sm:$0xff] %v1964_v32  ;;  %184 = vst [vmem:[#allocation2 + $0x60] sm:$0xff] %v1964_v32 }
  0x2c   : > { %1758 = vmatpush3.bf16.msra.mxu0 %v1888_v42  ;;  %186 = vst [vmem:[#allocation2 + $0x70] sm:$0xff] %v1964_v32  ;;  %188 = vst [vmem:[#allocation2 + $0x80] sm:$0xff] %v1964_v32 }
  0x2d   : > { %1798 = vmatpush3.bf16.msra.mxu1 %v1889_v43  ;;  %1759 = vmatprep.subr.bf16.mxu0 %v1896_v48  ;;  %208 = vst [vmem:[#allocation2 + $0x120] sm:$0xff] %v1964_v32  ;;  %210 = vst [vmem:[#allocation2 + $0x130] sm:$0xff] %v1964_v32 }
  0x2e   : > { %1799 = vmatprep.subr.bf16.mxu1 %v1897_v49  ;;  %212 = vst [vmem:[#allocation2 + $0x140] sm:$0xff] %v1964_v32  ;;  %214 = vst [vmem:[#allocation2 + $0x150] sm:$0xff] %v1964_v32 }
  0x2f   : > { %468 = vmatmul.mubr.bf16.gmra.mrb[4].mxu0 %v1894_v46  ;;  %216 = vst [vmem:[#allocation2 + $0x160] sm:$0xff] %v1964_v32  ;;  %218 = vst [vmem:[#allocation2 + $0x170] sm:$0xff] %v1964_v32 }
  0x30   : > { %734 = vmatmul.mubr.bf16.gmra.mrb[4].mxu1 %v1895_v47  ;;  %1760 = vmatpush3.bf16.msra.mxu0 %v1898_v50  ;;  %220 = vst [vmem:[#allocation2 + $0x180] sm:$0xff] %v1964_v32  ;;  %222 = vst [vmem:[#allocation2 + $0x190] sm:$0xff] %v1964_v32 }
  0x31   : > { %1800 = vmatpush3.bf16.msra.mxu1 %v1899_v51  ;;  %1761 = vmatprep.subr.bf16.mxu0 %v1900_v52 }
  0x32   : > { %1801 = vmatprep.subr.bf16.mxu1 %v1901_v53  ;;  %475 = vmatprep.mubr.bf16.mxu0 %v1904_v56 }
  0x33   : > { %741 = vmatprep.mubr.bf16.mxu1 %v1906_v57 }
  0x34   : > { %1762 = vmatpush3.bf16.msra.mxu0 %v1902_v54  ;;  %v1332_v54 = vld [vmem:[#allocation2 + $0x1] sm:$0xff] }
  0x35   : > { %1802 = vmatpush3.bf16.msra.mxu1 %v1903_v55  ;;  %1763 = vmatprep.subr.bf16.mxu0 %v1910_v60 }
  0x36   : > { %1803 = vmatprep.subr.bf16.mxu1 %v1911_v61  ;;  %v1340_v61 = vmax.f32 %v1332_v54, 0.0 }
  0x37   : > { %476 = vmatmul.mubr.bf16.gmra.mrb[8].mxu0 %v1908_v58 }
  0x38   : > { %742 = vmatmul.mubr.bf16.gmra.mrb[8].mxu1 %v1909_v59  ;;  %1764 = vmatpush3.bf16.msra.mxu0 %v1912_v62 }
  0x39   : > { %1804 = vmatpush3.bf16.msra.mxu1 %v1913_v63  ;;  %1765 = vmatprep.subr.bf16.mxu0 %v1914_v0 }
  0x3a   : > { %1805 = vmatprep.subr.bf16.mxu1 %v1915_v1  ;;  %483 = vmatprep.mubr.bf16.mxu0 %v1918_v4 }
  0x3b   : > { %749 = vmatprep.mubr.bf16.mxu1 %v1920_v5 }
  0x3c   : > { %1766 = vmatpush3.bf16.msra.mxu0 %v1916_v2 }
  0x3d   : > { %1806 = vmatpush3.bf16.msra.mxu1 %v1917_v3  ;;  %1767 = vmatprep.subr.bf16.mxu0 %v1924_v8 }
  0x3e   : > { %1807 = vmatprep.subr.bf16.mxu1 %v1925_v9 }
  0x3f   : > { %484 = vmatmul.mubr.bf16.gmra.mrb[12].mxu0 %v1922_v6 }
  0x40   : > { %750 = vmatmul.mubr.bf16.gmra.mrb[12].mxu1 %v1923_v7  ;;  %1768 = vmatpush3.bf16.msra.mxu0 %v1926_v10 }
  0x41   : > { %1808 = vmatpush3.bf16.msra.mxu1 %v1927_v11  ;;  %1769 = vmatprep.subr.bf16.mxu0 %v1928_v12 }
  0x42   : > { %1809 = vmatprep.subr.bf16.mxu1 %v1929_v13  ;;  %991 = vmatprep.mubr.bf16.mxu0 %v1934_v17 }
  0x43   : > { %1257 = vmatprep.mubr.bf16.mxu1 %v1937_v19 }
  0x44   : > { %1770 = vmatpush3.bf16.msra.mxu0 %v1930_v14 }
  0x45   : > { %1810 = vmatpush3.bf16.msra.mxu1 %v1931_v15 }
  0x47   : > { %992 = vmatmul.mubr.bf16.vlgmr.msra.gmra.mrb[16].mxu0 %v1932_v16 }
  0x48   : > { %1258 = vmatmul.mubr.bf16.vlgmr.msra.gmra.mrb[16].mxu1 %v1935_v18  ;;  %999 = vmatprep.mubr.bf16.mxu0 %v1938_v20 }
  0x49   : > { %1265 = vmatprep.mubr.bf16.mxu1 %v1940_v21 }
  0x4f   : > { %1000 = vmatmul.mubr.bf16.gmra.mrb[20].mxu0 %v1942_v22 }
  0x50   : > { %1007 = vmatprep.mubr.bf16.mxu0 %v1944_v23  ;;  %1266 = vmatmul.mubr.bf16.gmra.mrb[20].mxu1 %v1943_v24 }
  0x51   : > { %1273 = vmatprep.mubr.bf16.mxu1 %v1946_v25 }
  0x57   : > { %1008 = vmatmul.mubr.bf16.gmra.mrb[24].mxu0 %v1948_v26 }
  0x58   : > { %1015 = vmatprep.mubr.bf16.mxu0 %v1950_v27  ;;  %1274 = vmatmul.mubr.bf16.gmra.mrb[24].mxu1 %v1949_v28 }
  0x59   : > { %1281 = vmatprep.mubr.bf16.mxu1 %v1952_v29 }
  0x5f   : > { %1016 = vmatmul.mubr.bf16.gmra.mrb[28].mxu0 %v1954_v30 }
  0x60   : > { %1282 = vmatmul.mubr.bf16.gmra.mrb[28].mxu1 %v1955_v31 }
  0xfa   : > { %v1691_v33 = vpop.f32.mrb[0].mxu0 }
  0xfb   : > { %v1731_v34 = vpop.f32.mrb[0].mxu1  ;;  %v1692_v35 = vpop.f32.mrb[1].mxu0 }
  0xfc   : > { %v1693_v37 = vadd.f32 %v1692_v35, %v1691_v33  ;;  %v1732_v38 = vpop.f32.mrb[1].mxu1  ;;  %v1694_v39 = vpop.f32.mrb[2].mxu0 }
  0xfd   : > { %v1733_v40 = vadd.f32 %v1732_v38, %v1731_v34  ;;  %v1734_v41 = vpop.f32.mrb[2].mxu1  ;;  %v1695_v42 = vpop.f32.mrb[3].mxu0 }
  0xfe   : > { %v462_v43 = vadd.f32 %v1693_v37, %v2232_v36  ;;  %v1696_v44 = vadd.f32 %v1695_v42, %v1694_v39  ;;  %v1735_v45 = vpop.f32.mrb[3].mxu1 }
  0xff   : > { %v728_v46 = vadd.f32 %v1733_v40, %v2232_v36  ;;  %v1736_v47 = vadd.f32 %v1735_v45, %v1734_v41 }
 0x100   : > { %v492_v48 = vmax.f32 %v462_v43, 0.0  ;;  %v2237_v49 = vadd.f32 %v1696_v44, %v2232_v36 }
 0x101   : > { %v758_v50 = vmax.f32 %v728_v46, 0.0  ;;  %v2240_v51 = vadd.f32 %v1736_v47, %v2232_v36 }
 0x102   : > { %v493_v52 = vmax.f32 %v2237_v49, 0.0  ;;  %v1697_v55 = vpop.f32.mrb[4].mxu0 }
 0x103   : > { %767 = vst [vmem:[#allocation2 + $0x121] sm:$0xff] %v758_v50  ;;  %v759_v53 = vmax.f32 %v2240_v51, 0.0  ;;  %v1737_v56 = vpop.f32.mrb[4].mxu1  ;;  %v1698_v57 = vpop.f32.mrb[5].mxu0 }
 0x104   : > { %v1699_v58 = vadd.f32 %v1698_v57, %v1697_v55  ;;  %v1738_v59 = vpop.f32.mrb[5].mxu1  ;;  %v1700_v60 = vpop.f32.mrb[6].mxu0 }
 0x105   : > { %768 = vst [vmem:[#allocation2 + $0x131] sm:$0xff] %v759_v53  ;;  %v1739_v62 = vadd.f32 %v1738_v59, %v1737_v56  ;;  %v1740_v63 = vpop.f32.mrb[6].mxu1  ;;  %v1701_v0 = vpop.f32.mrb[7].mxu0 }
 0x106   : > { %v2247_v1 = vadd.f32 %v1699_v58, %v2232_v36  ;;  %v1702_v2 = vadd.f32 %v1701_v0, %v1700_v60  ;;  %v1741_v3 = vpop.f32.mrb[7].mxu1 }
 0x107   : > { %v2250_v4 = vadd.f32 %v1739_v62, %v2232_v36  ;;  %v1742_v5 = vadd.f32 %v1741_v3, %v1740_v63 }
 0x108   : > { %v494_v7 = vmax.f32 %v2247_v1, 0.0  ;;  %v2254_v8 = vadd.f32 %v1702_v2, %v2232_v36 }
 0x109   : > { %v760_v10 = vmax.f32 %v2250_v4, 0.0  ;;  %v2258_v11 = vadd.f32 %v1742_v5, %v2232_v36 }
 0x10a   : > { %v1348_v6 = vld [vmem:[#allocation2 + $0x120] sm:$0xff]  ;;  %v495_v12 = vmax.f32 %v2254_v8, 0.0  ;;  %v1703_v16 = vpop.f32.mrb[8].mxu0 }
 0x10b   : > { %v1356_v9 = vmax.f32 %v1340_v61, %v1348_v6  ;;  %769 = vst [vmem:[#allocation2 + $0x141] sm:$0xff] %v760_v10  ;;  %v761_v14 = vmax.f32 %v2258_v11, 0.0  ;;  %v1743_v17 = vpop.f32.mrb[8].mxu1  ;;  %v1704_v18 = vpop.f32.mrb[9].mxu0 }
 0x10c   : > { %v1705_v19 = vadd.f32 %v1704_v18, %v1703_v16  ;;  %v1744_v20 = vpop.f32.mrb[9].mxu1  ;;  %v1706_v21 = vpop.f32.mrb[10].mxu0 }
 0x10d   : > { %v1372_v13 = vmax.f32 %v1356_v9, %v492_v48  ;;  %770 = vst [vmem:[#allocation2 + $0x151] sm:$0xff] %v761_v14  ;;  %v1745_v22 = vadd.f32 %v1744_v20, %v1743_v17  ;;  %v1746_v23 = vpop.f32.mrb[10].mxu1  ;;  %v1707_v24 = vpop.f32.mrb[11].mxu0 }
 0x10e   : > { %v2269_v25 = vadd.f32 %v1705_v19, %v2232_v36  ;;  %v1708_v26 = vadd.f32 %v1707_v24, %v1706_v21  ;;  %v1747_v27 = vpop.f32.mrb[11].mxu1 }
 0x10f   : > { %v2264_v15 = vmax.f32 %v1372_v13, %v758_v50  ;;  %v2272_v28 = vadd.f32 %v1745_v22, %v2232_v36  ;;  %v1748_v29 = vadd.f32 %v1747_v27, %v1746_v23 }
 0x110   : > { %v496_v30 = vmax.f32 %v2269_v25, 0.0  ;;  %v2276_v31 = vadd.f32 %v1708_v26, %v2232_v36 }
 0x111   : > { %v762_v32 = vmax.f32 %v2272_v28, 0.0  ;;  %v2280_v33 = vadd.f32 %v1748_v29, %v2232_v36 }
 0x112   : > { %v497_v34 = vmax.f32 %v2276_v31, 0.0  ;;  %v1709_v37 = vpop.f32.mrb[12].mxu0 }
 0x113   : > { %771 = vst [vmem:[#allocation2 + $0x161] sm:$0xff] %v762_v32  ;;  %v763_v35 = vmax.f32 %v2280_v33, 0.0  ;;  %v1749_v38 = vpop.f32.mrb[12].mxu1  ;;  %v1710_v39 = vpop.f32.mrb[13].mxu0 }
 0x114   : > { %v1750_v40 = vpop.f32.mrb[13].mxu1  ;;  %v1711_v41 = vadd.f32 %v1710_v39, %v1709_v37  ;;  %v1712_v43 = vpop.f32.mrb[14].mxu0 }
 0x115   : > { %772 = vst [vmem:[#allocation2 + $0x171] sm:$0xff] %v763_v35  ;;  %v1751_v42 = vadd.f32 %v1750_v40, %v1749_v38  ;;  %v1752_v44 = vpop.f32.mrb[14].mxu1  ;;  %v1713_v45 = vpop.f32.mrb[15].mxu0 }
 0x116   : > { %v1753_v46 = vpop.f32.mrb[15].mxu1  ;;  %v2289_v47 = vadd.f32 %v1711_v41, %v2232_v36  ;;  %v1714_v50 = vadd.f32 %v1713_v45, %v1712_v43 }
 0x117   : > { %v2292_v48 = vadd.f32 %v1751_v42, %v2232_v36  ;;  %v1754_v54 = vadd.f32 %v1753_v46, %v1752_v44 }
 0x118   : > { %v498_v55 = vmax.f32 %v2289_v47, 0.0  ;;  %v2297_v57 = vadd.f32 %v1714_v50, %v2232_v36 }
 0x119   : > { %v764_v56 = vmax.f32 %v2292_v48, 0.0  ;;  %v2300_v58 = vadd.f32 %v1754_v54, %v2232_v36 }
 0x11a   : > { %v499_v59 = vmax.f32 %v2297_v57, 0.0  ;;  %v1771_v61 = vpop.f32.mrb[16].mxu0 }
 0x11b   : > { %773 = vst [vmem:[#allocation2 + $0x181] sm:$0xff] %v764_v56  ;;  %v765_v60 = vmax.f32 %v2300_v58, 0.0  ;;  %v1772_v62 = vpop.f32.mrb[17].mxu0  ;;  %v1811_v63 = vpop.f32.mrb[16].mxu1 }
 0x11c   : > { %v1773_v0 = vadd.f32 %v1772_v62, %v1771_v61  ;;  %v1774_v2 = vpop.f32.mrb[18].mxu0  ;;  %v1812_v3 = vpop.f32.mrb[17].mxu1 }
 0x11d   : > { %774 = vst [vmem:[#allocation2 + $0x191] sm:$0xff] %v765_v60  ;;  %v1775_v5 = vpop.f32.mrb[19].mxu0  ;;  %v1813_v9 = vadd.f32 %v1812_v3, %v1811_v63  ;;  %v1814_v13 = vpop.f32.mrb[18].mxu1 }
 0x11e   : > { %v994_v6 = vadd.f32 %v1773_v0, %v2232_v36  ;;  %v1776_v16 = vadd.f32 %v1775_v5, %v1774_v2  ;;  %v1815_v17 = vpop.f32.mrb[19].mxu1 }
 0x11f   : > { %v1260_v19 = vadd.f32 %v1813_v9, %v2232_v36  ;;  %v1816_v21 = vadd.f32 %v1815_v17, %v1814_v13 }
 0x120   : > { %v1024_v18 = vmax.f32 %v994_v6, 0.0  ;;  %v2311_v20 = vadd.f32 %v1776_v16, %v2232_v36 }
 0x121   : > { %v2313_v22 = vmax.f32 %v1260_v19, 0.0  ;;  %v1263_v24 = vadd.f32 %v1816_v21, %v2232_v36 }
 0x122   : > { %v1025_v23 = vmax.f32 %v2311_v20, 0.0  ;;  %v1777_v26 = vpop.f32.mrb[20].mxu0 }
 0x123   : > { %v1778_v27 = vpop.f32.mrb[21].mxu0  ;;  %1299 = vst [vmem:[#allocation2 + $0x11] sm:$0xff] %v2313_v22  ;;  %v2318_v29 = vmax.f32 %v1263_v24, 0.0  ;;  %v1817_v37 = vpop.f32.mrb[20].mxu1 }
 0x124   : > { %v1779_v38 = vadd.f32 %v1778_v27, %v1777_v26  ;;  %v1780_v39 = vpop.f32.mrb[22].mxu0  ;;  %v1818_v40 = vpop.f32.mrb[21].mxu1  ;;  %v1355_v31 = vld [vmem:[#allocation2 + $0x190] sm:$0xff] }
 0x125   : > { %v1781_v41 = vpop.f32.mrb[23].mxu0  ;;  %1300 = vst [vmem:[#allocation2 + $0x21] sm:$0xff] %v2318_v29  ;;  %v1819_v43 = vadd.f32 %v1818_v40, %v1817_v37  ;;  %v1820_v44 = vpop.f32.mrb[22].mxu1 }
 0x126   : > { %v2322_v42 = vadd.f32 %v1779_v38, %v2232_v36  ;;  %v1782_v45 = vadd.f32 %v1781_v41, %v1780_v39  ;;  %v1821_v46 = vpop.f32.mrb[23].mxu1  ;;  %v1349_v41 = vld [vmem:[#allocation2 + $0x130] sm:$0xff] }
 0x127   : > { %v1268_v54 = vadd.f32 %v1819_v43, %v2232_v36  ;;  %v1822_v62 = vadd.f32 %v1821_v46, %v1820_v44 }
 0x128   : > { %v1026_v50 = vmax.f32 %v2322_v42, 0.0  ;;  %v2327_v61 = vadd.f32 %v1782_v45, %v2232_v36 }
 0x129   : > { %v2329_v63 = vmax.f32 %v1268_v54, 0.0  ;;  %v1271_v2 = vadd.f32 %v1822_v62, %v2232_v36 }
 0x12a   : > { %v1027_v0 = vmax.f32 %v2327_v61, 0.0  ;;  %v1783_v3 = vpop.f32.mrb[24].mxu0  ;;  %v1308_v5 = vld [vmem:[#allocation2 + $0x10] sm:$0xff] }
 0x12b   : > { %v1784_v6 = vpop.f32.mrb[25].mxu0  ;;  %v1325_v9 = vmax.f32 %v1308_v5, %v1024_v18  ;;  %v1404_v13 = vmax.f32 %v2264_v15, %v1308_v5  ;;  %1301 = vst [vmem:[#allocation2 + $0x31] sm:$0xff] %v2329_v63  ;;  %v2335_v16 = vmax.f32 %v1271_v2, 0.0  ;;  %v1823_v17 = vpop.f32.mrb[24].mxu1  ;;  %v1350_v2 = vld [vmem:[#allocation2 + $0x140] sm:$0xff] }
 0x12c   : > { %v1785_v19 = vadd.f32 %v1784_v6, %v1783_v3  ;;  %v1786_v21 = vpop.f32.mrb[26].mxu0  ;;  %v1309_v24 = vld [vmem:[#allocation2 + $0x20] sm:$0xff]  ;;  %v1824_v26 = vpop.f32.mrb[25].mxu1 }
 0x12d   : > { %v1787_v27 = vpop.f32.mrb[27].mxu0  ;;  %v1341_v37 = vmax.f32 %v1325_v9, %v2313_v22  ;;  %v2338_v38 = vmax.f32 %v1404_v13, %v1024_v18  ;;  %v1326_v39 = vmax.f32 %v1309_v24, %v1025_v23  ;;  %1302 = vst [vmem:[#allocation2 + $0x41] sm:$0xff] %v2335_v16  ;;  %v1826_v40 = vpop.f32.mrb[26].mxu1  ;;  %v1825_v43 = vadd.f32 %v1824_v26, %v1823_v17 }
 0x12e   : > { %v2344_v15 = vadd.f32 %v1785_v19, %v2232_v36  ;;  %v1788_v44 = vadd.f32 %v1787_v27, %v1786_v21  ;;  %v1827_v45 = vpop.f32.mrb[27].mxu1 }
 0x12f   : > { %v1357_v46 = vmax.f32 %v1341_v37, %v1349_v41  ;;  %v1436_v54 = vmax.f32 %v2338_v38, %v2313_v22  ;;  %v1342_v18 = vmax.f32 %v1326_v39, %v2318_v29  ;;  %v1276_v3 = vadd.f32 %v1825_v43, %v2232_v36 }
 0x130   : > { %v1028_v62 = vmax.f32 %v2344_v15, 0.0  ;;  %v2352_v5 = vadd.f32 %v1788_v44, %v2232_v36  ;;  %v1828_v6 = vadd.f32 %v1827_v45, %v1826_v40 }
 0x131   : > { %v1358_v9 = vmax.f32 %v1342_v18, %v1350_v2  ;;  %v1373_v13 = vmax.f32 %v1357_v46, %v493_v52  ;;  %v2356_v21 = vmax.f32 %v1276_v3, 0.0  ;;  %v1351_v18 = vld [vmem:[#allocation2 + $0x150] sm:$0xff] }
 0x132   : > { %v1789_v17 = vpop.f32.mrb[28].mxu0  ;;  %v1310_v19 = vld [vmem:[#allocation2 + $0x30] sm:$0xff]  ;;  %v1029_v22 = vmax.f32 %v2352_v5, 0.0  ;;  %v1279_v26 = vadd.f32 %v1828_v6, %v2232_v36 }
 0x133   : > { %v1790_v27 = vpop.f32.mrb[29].mxu0  ;;  %v1389_v37 = vmax.f32 %v1373_v13, %v759_v53  ;;  %v1327_v38 = vmax.f32 %v1310_v19, %v1026_v50  ;;  %v1374_v39 = vmax.f32 %v1358_v9, %v494_v7  ;;  %v1829_v49 = vpop.f32.mrb[28].mxu1  ;;  %1303 = vst [vmem:[#allocation2 + $0x51] sm:$0xff] %v2356_v21 }
 0x134   : > { %v1791_v52 = vadd.f32 %v1790_v27, %v1789_v17  ;;  %v1792_v40 = vpop.f32.mrb[30].mxu0  ;;  %v1311_v41 = vld [vmem:[#allocation2 + $0x40] sm:$0xff]  ;;  %v2367_v43 = vmax.f32 %v1279_v26, 0.0  ;;  %v1830_v44 = vpop.f32.mrb[29].mxu1 }
 0x135   : > { %v1793_v45 = vpop.f32.mrb[31].mxu0  ;;  %v1405_v46 = vmax.f32 %v1389_v37, %v1309_v24  ;;  %v1343_v51 = vmax.f32 %v1327_v38, %v2329_v63  ;;  %v1390_v53 = vmax.f32 %v1374_v39, %v760_v10  ;;  %v1328_v1 = vmax.f32 %v1311_v41, %v1027_v0  ;;  %v1832_v7 = vpop.f32.mrb[30].mxu1  ;;  %v1352_v17 = vld [vmem:[#allocation2 + $0x160] sm:$0xff] }
 0x136   : > { %1304 = vst [vmem:[#allocation2 + $0x61] sm:$0xff] %v2367_v43  ;;  %v2376_v2 = vadd.f32 %v1791_v52, %v2232_v36  ;;  %v1831_v3 = vadd.f32 %v1830_v44, %v1829_v49  ;;  %v1794_v6 = vadd.f32 %v1793_v45, %v1792_v40  ;;  %v1833_v9 = vpop.f32.mrb[31].mxu1 }
 0x137   : > { %v1421_v24 = vmax.f32 %v1405_v46, %v1025_v23  ;;  %v1359_v13 = vmax.f32 %v1343_v51, %v1351_v18  ;;  %v1406_v4 = vmax.f32 %v1390_v53, %v1310_v19  ;;  %v1344_v10 = vmax.f32 %v1328_v1, %v2335_v16 }
 0x138   : > { %v1030_v26 = vmax.f32 %v2376_v2, 0.0  ;;  %v1284_v27 = vadd.f32 %v1831_v3, %v2232_v36  ;;  %v1021_v37 = vadd.f32 %v1794_v6, %v2232_v36  ;;  %v1834_v38 = vadd.f32 %v1833_v9, %v1832_v7 }
 0x139   : > { %v1437_v39 = vmax.f32 %v1421_v24, %v2318_v29  ;;  %v1422_v49 = vmax.f32 %v1406_v4, %v1026_v50  ;;  %v1360_v52 = vmax.f32 %v1344_v10, %v1352_v17  ;;  %v1375_v20 = vmax.f32 %v1359_v13, %v495_v12 }
 0x13a   : > { %v1296_v23 = vmax.f32 %v1284_v27, 0.0  ;;  %v1031_v19 = vmax.f32 %v1021_v37, 0.0  ;;  %v1287_v40 = vadd.f32 %v1834_v38, %v2232_v36  ;;  %v1312_v50 = vld [vmem:[#allocation2 + $0x50] sm:$0xff] }
 0x13b   : > { %v1655_v44 = vpack.c.bf16 %v1437_v39, %v1436_v54  ;;  %v1438_v29 = vmax.f32 %v1422_v49, %v2329_v63  ;;  %v1391_v42 = vmax.f32 %v1375_v20, %v761_v14  ;;  %v1376_v8 = vmax.f32 %v1360_v52, %v496_v30  ;;  %v1353_v14 = vld [vmem:[#allocation2 + $0x170] sm:$0xff] }
 0x13c   : > { %v1329_v12 = vmax.f32 %v1312_v50, %v1028_v62  ;;  %1305 = vst [vmem:[#allocation2 + $0x71] sm:$0xff] %v1296_v23  ;;  %v1297_v45 = vmax.f32 %v1287_v40, 0.0 }
 0x13d   : > { %1656 = vst [vmem:[%s2393_s26] sm:$0xff] %v1655_v44   ;;  %v1407_v46 = vmax.f32 %v1391_v42, %v1311_v41  ;;  %v1392_v36 = vmax.f32 %v1376_v8, %v762_v32  ;;  %v1313_v54 = vld [vmem:[#allocation2 + $0x60] sm:$0xff] }
 0x13e   : > { %v1345_v63 = vmax.f32 %v1329_v12, %v2356_v21  ;;  %v1330_v11 = vmax.f32 %v1313_v54, %v1029_v22  ;;  %1306 = vst [vmem:[#allocation2 + $0x81] sm:$0xff] %v1297_v45  ;;  %v1354_v41 = vld [vmem:[#allocation2 + $0x180] sm:$0xff] }
 0x13f   : > { %v1423_v25 = vmax.f32 %v1407_v46, %v1027_v0  ;;  %v1408_v30 = vmax.f32 %v1392_v36, %v1312_v50 }
 0x140   : > { %v1361_v51 = vmax.f32 %v1345_v63, %v1353_v14  ;;  %v1346_v53 = vmax.f32 %v1330_v11, %v2367_v43 }
 0x141   : > { %v1439_v28 = vmax.f32 %v1423_v25, %v2335_v16  ;;  %v1424_v32 = vmax.f32 %v1408_v30, %v1028_v62 }
 0x142   : > { %v1362_v1 = vmax.f32 %v1346_v53, %v1354_v41  ;;  %v1377_v7 = vmax.f32 %v1361_v51, %v497_v34 }
 0x143   : > { %v1660_v18 = vpack.c.bf16 %v1439_v28, %v1438_v29  ;;  %v1440_v2 = vmax.f32 %v1424_v32, %v2356_v21  ;;  %v1314_v61 = vld [vmem:[#allocation2 + $0x70] sm:$0xff] }
 0x144   : > { %v1393_v0 = vmax.f32 %v1377_v7, %v763_v35  ;;  %v1331_v3 = vmax.f32 %v1314_v61, %v1030_v26  ;;  %v1378_v6 = vmax.f32 %v1362_v1, %v498_v55 }
 0x145   : > { %1672 = vst [vmem:[%s2393_s26 + $0x8] sm:$0xff] %v1660_v18   ;;  %v1403_v48 = vld [vmem:[#allocation2 + $0x80] sm:$0xff] }
 0x146   : > { %v1409_v16 = vmax.f32 %v1393_v0, %v1313_v54  ;;  %v1347_v15 = vmax.f32 %v1331_v3, %v1296_v23  ;;  %v1394_v62 = vmax.f32 %v1378_v6, %v764_v56 }
 0x148   : > { %v1425_v34 = vmax.f32 %v1409_v16, %v1029_v22  ;;  %v1363_v21 = vmax.f32 %v1347_v15, %v1355_v31  ;;  %v1410_v9 = vmax.f32 %v1394_v62, %v1314_v61 }
 0x14a   : > { %v1441_v33 = vmax.f32 %v1425_v34, %v2367_v43  ;;  %v1426_v35 = vmax.f32 %v1410_v9, %v1030_v26  ;;  %v1379_v47 = vmax.f32 %v1363_v21, %v499_v59 }
 0x14c   : > { %v1665_v55 = vpack.c.bf16 %v1441_v33, %v1440_v2  ;;  %v1442_v24 = vmax.f32 %v1426_v35, %v1296_v23  ;;  %v1395_v13 = vmax.f32 %v1379_v47, %v765_v60 }
 0x14e   : > { %1673 = vst [vmem:[%s2393_s26 + $0x10] sm:$0xff] %v1665_v55   ;;  %v1411_v56 = vmax.f32 %v1395_v13, %v1403_v48 }
 0x150   : > { %v1427_v4 = vmax.f32 %v1411_v56, %v1031_v19 }
 0x152   : > { %v1443_v5 = vmax.f32 %v1427_v4, %v1297_v45 }
 0x154   : > { %v1670_v10 = vpack.c.bf16 %v1443_v5, %v1442_v24 }
 0x156   : > { %1674 = vst [vmem:[%s2393_s26 + $0x18] sm:$0xff] %v1670_v10  }
 0x157 PF: > { %s13_s12 = sadd.s32 1, %s1962_s12  }
 0x158   : > { %p10_p4 = scmp.ge.s32.totalorder %s13_s12, 4  }
 0x15a   :  { %12 = sbr.rel (!%p10_p4) target bundleno = 1 (0x1), region = 70 }

// kernel: _lambda_.4
= control target key start
LH: loop header
LB: loop body
LE: loop exit
PB: predicated region body
PF: predicated region fallthrough
CT: control target
= control target key end

     0   :  { %s4228_s30 = smov 0   ;;  %s4980_s0 = inlined_call_operand.vmem [shape: bf16[2,8,8,128], index: 0, kind: input, shape index: {}]   ;;  %s4981_s1 = inlined_call_operand.vmem [shape: bf16[128,128], index: 1, kind: input, shape index: {}]   ;;  %s4982_s2 = inlined_call_operand.vmem [shape: f32[1,128], index: 2, kind: input, shape index: {}]   ;;  %s4983_s3 = inlined_call_operand.vmem [shape: bf16[9,128,128], index: 3, kind: input, shape index: {}]   ;;  %s4984_s4 = inlined_call_operand.vmem [shape: f32[1,128], index: 4, kind: input, shape index: {}]   ;;  %s4985_s5 = inlined_call_operand.vmem [shape: bf16[128,256], index: 5, kind: input, shape index: {}]   ;;  %s4986_s6 = inlined_call_operand.vmem [shape: f32[1,256], index: 6, kind: input, shape index: {}]   ;;  %s4987_s7 = inlined_call_operand.vmem [shape: bf16[128,256], index: 7, kind: input, shape index: {}]   ;;  %s4988_s8 = inlined_call_operand.vmem [shape: f32[1,256], index: 8, kind: input, shape index: {}]   ;;  %s4989_s9 = inlined_call_operand.vmem [shape: bf16[2,8,8,256], index: 9, kind: output, shape index: {}]  }
   0x1 LB: > { %s3189_s10 = sadd.s32 4294967295, %s4175_s30   ;;  %p3193_p0 = scmp.ge.s32.totalorder %s4175_s30, 1  ;;  %s4175_s30 = sphi %s4228_s30, %s19_s30  }
   0x2   : > { %p287_p1 = scmp.lt.s32.totalorder %s4175_s30, 3 }
   0x4   : > { %p288_p2 = pnand %p3193_p0, %p287_p1 }
   0x5   : > { %v4021_v0 = vld [vmem:[%s4981_s1] sm:$0xff] (!%p288_p2)   ;;  %p323_p3 = scmp.lt.s32.totalorder (!%p288_p2), %s3189_s10, 1  ;;  %v4022_v1 = vld [vmem:[%s4981_s1 + $0x8] sm:$0xff] (!%p288_p2)   ;;  %v4023_v2 = vld [vmem:[%s4981_s1 + $0x10] sm:$0xff] (!%p288_p2)   ;;  %v4177_v16 = vmov (!%p288_p2), 0   ;;  %vm635_vm0 = vcmask (!%p288_p2), 1043456  }
   0x6   : > { %291 = sbr.rel (%p288_p2) target bundleno = 940 (0x3ac), region = 56  ;;  %3660 = vmatprep.subr.bf16.mxu0 (!%p288_p2), %v4021_v0  ;;  %v4024_v3 = vld [vmem:[%s4981_s1 + $0x18] sm:$0xff] (!%p288_p2)   ;;  %v4025_v5 = vld [vmem:[%s4981_s1 + $0x20] sm:$0xff] (!%p288_p2)   ;;  %v4034_v7 = vld [vmem:[%s4983_s3 + $0xc8] sm:$0xff] (!%p288_p2)   ;;  %516 = vst [vmem:[#allocation2 + $0x18] sm:$0xf] (!%p288_p2), %v4177_v16 }
   0x7   : > { %3661 = vmatpush3.bf16.msra.mxu0 (!%p288_p2), %v4021_v0  ;;  %v4033_v6 = vld [vmem:[%s4983_s3 + $0xc0] sm:$0xff] (!%p288_p2)   ;;  %v4026_v8 = vld [vmem:[%s4981_s1 + $0x28] sm:$0xff] (!%p288_p2)   ;;  %v4027_v9 = vld [vmem:[%s4981_s1 + $0x30] sm:$0xff] (!%p288_p2)   ;;  %517 = vst [vmem:[#allocation2 + $0x1c] sm:$0x1] (!%p288_p2), %v4177_v16  ;;  %vm641_vm2 = vcmask (!%p288_p2), 1040384  }
   0x8   : > { %3662 = vmatprep.subr.bf16.mxu0 (!%p288_p2), %v4022_v1  ;;  %3756 = vmatprep.subr.bf16.mxu1 (!%p288_p2), %v4033_v6  ;;  %v4028_v10 = vld [vmem:[%s4981_s1 + $0x38] sm:$0xff] (!%p288_p2)   ;;  %v4036_v14 = vld [vmem:[%s4983_s3 + $0xd0] sm:$0xff] (!%p288_p2)   ;;  %v4035_v15 = vld [vmem:[%s4983_s3 + $0x40] sm:$0xff] (!%p288_p2)   ;;  %510 = vst [vmem:[#allocation2] sm:$0xf] (!%p288_p2), %v4177_v16  ;;  %vm1143_vm9 = vcmask (!%p288_p2), 1042432  }
   0x9   : > { %3757 = vmatpush3.bf16.msra.mxu1 (!%p288_p2), %v4033_v6  ;;  %511 = vst [vmem:[#allocation2 + $0x4] sm:$0x1] (!%p288_p2), %v4177_v16  ;;  %512 = vst [vmem:[#allocation2 + $0x8] sm:$0xf] (!%p288_p2), %v4177_v16  ;;  %v4038_v17 = vld [vmem:[%s4983_s3 + $0xd8] sm:$0xff] (!%p288_p2)   ;;  %v4037_v18 = vld [vmem:[%s4983_s3 + $0x48] sm:$0xff] (!%p288_p2)  }
   0xa   : > { %3758 = vmatprep.subr.bf16.mxu1 (!%p288_p2), %v4034_v7  ;;  %513 = vst [vmem:[#allocation2 + $0xc] sm:$0x1] (!%p288_p2), %v4177_v16  ;;  %514 = vst [vmem:[#allocation2 + $0x10] sm:$0xf] (!%p288_p2), %v4177_v16  ;;  %v4039_v19 = vld [vmem:[%s4983_s3 + $0x50] sm:$0xff] (!%p288_p2)   ;;  %v4040_v20 = vld [vmem:[%s4983_s3 + $0xe0] sm:$0xff] (!%p288_p2)  }
   0xb   : > { %3663 = vmatpush3.bf16.msra.mxu0 (!%p288_p2), %v4022_v1  ;;  %515 = vst [vmem:[#allocation2 + $0x14] sm:$0x1] (!%p288_p2), %v4177_v16  ;;  %518 = vst [vmem:[#allocation2 + $0x20] sm:$0xf] (!%p288_p2), %v4177_v16  ;;  %v4042_v21 = vld [vmem:[%s4983_s3 + $0xe8] sm:$0xff] (!%p288_p2)   ;;  %v4041_v22 = vld [vmem:[%s4983_s3 + $0x58] sm:$0xff] (!%p288_p2)  }
   0xc   : > { %3664 = vmatprep.subr.bf16.mxu0 (!%p288_p2), %v4023_v2  ;;  %519 = vst [vmem:[#allocation2 + $0x24] sm:$0x1] (!%p288_p2), %v4177_v16  ;;  %520 = vst [vmem:[#allocation2 + $0x28] sm:$0xf] (!%p288_p2), %v4177_v16  ;;  %v4044_v23 = vld [vmem:[%s4983_s3 + $0xf0] sm:$0xff] (!%p288_p2)   ;;  %v4043_v24 = vld [vmem:[%s4983_s3 + $0x60] sm:$0xff] (!%p288_p2)  }
   0xd   : > { %s4999_s10 = smov (!%p323_p3, %s3189_s10), 1  ;;  %3759 = vmatpush3.bf16.msra.mxu1 %v4034_v7  ;;  %521 = vst [vmem:[#allocation2 + $0x2c] sm:$0x1] %v4177_v16  ;;  %522 = vst [vmem:[#allocation2 + $0x30] sm:$0xf] %v4177_v16  ;;  %v4046_v25 = vld [vmem:[%s4983_s3 + $0xf8] sm:$0xff]  }
   0xe   : > { %s3522_s17 = sshll.u32 %s4999_s10, 5  ;;  %3760 = vmatprep.subr.bf16.mxu1 %v4036_v14  ;;  %523 = vst [vmem:[#allocation2 + $0x34] sm:$0x1] %v4177_v16  ;;  %524 = vst [vmem:[#allocation2 + $0x38] sm:$0xf] %v4177_v16  ;;  %v4045_v26 = vld [vmem:[%s4983_s3 + $0x68] sm:$0xff]  }
   0xf   : > { %s4251_s20 = scalar_lea.vmem %s4980_s0, %s3522_s17  ;;  %3665 = vmatpush3.bf16.msra.mxu0 %v4023_v2  ;;  %525 = vst [vmem:[#allocation2 + $0x3c] sm:$0x1] %v4177_v16  ;;  %526 = vst [vmem:[#allocation2 + $0x40] sm:$0xf] %v4177_v16  ;;  %v4337_v27 = vld [vmem:[%s4983_s3 + $0x100] sm:$0xff]   ;;  %v4047_v28 = vld [vmem:[%s4983_s3 + $0x70] sm:$0xff]  }
  0x10   : > { %v4029_v4 = vld [vmem:[%s4251_s20] sm:$0xff]   ;;  %3666 = vmatprep.subr.bf16.mxu0 %v4024_v3  ;;  %v4030_v11 = vld [vmem:[%s4251_s20 + $0x8] sm:$0xff]   ;;  %v4031_v12 = vld [vmem:[%s4251_s20 + $0x10] sm:$0xff]   ;;  %527 = vst [vmem:[#allocation2 + $0x44] sm:$0x1] %v4177_v16  ;;  %vm1144_vm10 = vcmask 1046532  }
  0x11   : > { %3676 = vmatprep.mubr.bf16.mxu0 %v4029_v4  ;;  %v4032_v13 = vld [vmem:[%s4251_s20 + $0x18] sm:$0xff]   ;;  %3761 = vmatpush3.bf16.msra.mxu1 %v4036_v14  ;;  %528 = vst [vmem:[#allocation2 + $0x48] sm:$0xf] %v4177_v16  ;;  %529 = vst [vmem:[#allocation2 + $0x4c] sm:$0x1] %v4177_v16  ;;  %v4349_v30 = vld [vmem:[%s4983_s3] sm:$0xff]  }
  0x12   : > { %3762 = vmatprep.subr.bf16.mxu1 %v4038_v17  ;;  %v4051_v29 = vld [vmem:[%s4983_s3 + $0x78] sm:$0xff]   ;;  %v4352_v31 = vld [vmem:[#allocation2] sm:$0xf]  ;;  %v4357_v32 = vld [vmem:[%s4982_s2] ss:$0 sm:$0xff] }
  0x13   : > { %3667 = vmatpush3.bf16.msra.mxu0 %v4024_v3  ;;  %v725_v33 = vshrl.u32 %v4352_v31, 16  ;;  %v728_v34 = vshll.u32 %v4352_v31, 16  ;;  %vm636_vm1 = vsmask.f32 7938  ;;  %vm642_vm3 = vsmask.f32 256  ;;  %vm4604_vm11 = vmor %vm1143_vm9, %vm1144_vm10 }
  0x14   : > { %3668 = vmatprep.subr.bf16.mxu0 %v4025_v5  ;;  %v4369_v51 = vld [vmem:[#allocation2 + $0x4] sm:$0x1]  ;;  %v653_v57 = vld [vmem:[#allocation2 + $0x18] sm:$0xf]  ;;  %v656_v58 = vld [vmem:[#allocation2 + $0x1c] sm:$0x1] }
  0x15   : > { %3763 = vmatpush3.bf16.msra.mxu1 %v4038_v17  ;;  %v4364_v43 = vrot.slane %v725_v33, 4  ;;  %v4366_v44 = vrot.slane %v728_v34, 5  ;;  %v734_v55 = vshll.u32 %v4369_v51, 16  ;;  %vm4376_vm4 = vmand %vm635_vm0, %vm636_vm1  ;;  %v638_v1 = vld [vmem:[#allocation2 + $0x8] sm:$0xf] }
  0x16   : > { %3764 = vmatprep.subr.bf16.mxu1 %v4040_v20  ;;  %vm4383_vm5 = vmand %vm641_vm2, %vm642_vm3  ;;  %v659_v17 = vld [vmem:[#allocation2 + $0x20] sm:$0xf]  ;;  %v647_v33 = vld [vmem:[#allocation2 + $0x10] sm:$0xf]  ;;  %vm721_vm6 = vsmask.f32 3328 }
  0x17   : > { %3669 = vmatpush3.bf16.msra.mxu0 %v4025_v5  ;;  %v731_v54 = vor.u32 %v4366_v44, %v4364_v43  ;;  %v650_v34 = vld [vmem:[#allocation2 + $0x14] sm:$0x1]  ;;  %vm722_vm7 = vsmask.f32 7440 }
  0x18   : > { %3670 = vmatprep.subr.bf16.mxu0 %v4026_v8  ;;  %vm4451_vm8 = vmor %vm721_vm6, %vm722_vm7 }
  0x19   : > { %3765 = vmatpush3.bf16.msra.mxu1 %v4040_v20 }
  0x1a   : > { %3766 = vmatprep.subr.bf16.mxu1 %v4042_v21 }
  0x1b   : > { %3671 = vmatpush3.bf16.msra.mxu0 %v4026_v8  ;;  %v644_v8 = vld [vmem:[#allocation2 + $0xc] sm:$0x1] }
  0x1c   : > { %3672 = vmatprep.subr.bf16.mxu0 %v4027_v9 }
  0x1d   : > { %3767 = vmatpush3.bf16.msra.mxu1 %v4042_v21 }
  0x1e   : > { %3768 = vmatprep.subr.bf16.mxu1 %v4044_v23 }
  0x1f   : > { %3673 = vmatpush3.bf16.msra.mxu0 %v4027_v9 }
  0x20   : > { %3674 = vmatprep.subr.bf16.mxu0 %v4028_v10 }
  0x21   : > { %3769 = vmatpush3.bf16.msra.mxu1 %v4044_v23 }
  0x22   : > { %3770 = vmatprep.subr.bf16.mxu1 %v4046_v25 }
  0x23   : > { %3675 = vmatpush3.bf16.msra.mxu0 %v4028_v10 }
  0x24   : > { %3684 = vmatprep.subr.bf16.mxu0 %v4035_v15 }
  0x25   : > { %3771 = vmatpush3.bf16.msra.mxu1 %v4046_v25 }
  0x26   : > { %3677 = vmatmul.mubr.bf16.vlgmr.msra.gmra.mrb[0].mxu0 %v4030_v11  ;;  %3780 = vmatprep.subr.bf16.mxu1 %v4337_v27 }
  0x27   : > { %3680 = vmatprep.mubr.bf16.mxu0 %v4031_v12  ;;  %3685 = vmatpush3.bf16.msra.mxu0 %v4035_v15 }
  0x28   : > { %3686 = vmatprep.subr.bf16.mxu0 %v4037_v18 }
  0x2b   : > { %3687 = vmatpush3.bf16.msra.mxu0 %v4037_v18 }
  0x2c   : > { %3688 = vmatprep.subr.bf16.mxu0 %v4039_v19 }
  0x2e   : > { %3681 = vmatmul.mubr.bf16.gmra.mrb[4].mxu0 %v4032_v13 }
  0x2f   : > { %3689 = vmatpush3.bf16.msra.mxu0 %v4039_v19 }
  0x30   : > { %3690 = vmatprep.subr.bf16.mxu0 %v4041_v22 }
  0x33   : > { %3691 = vmatpush3.bf16.msra.mxu0 %v4041_v22  ;;  %v662_v22 = vld [vmem:[#allocation2 + $0x24] sm:$0x1] }
  0x34   : > { %3692 = vmatprep.subr.bf16.mxu0 %v4043_v24 }
  0x37   : > { %3693 = vmatpush3.bf16.msra.mxu0 %v4043_v24 }
  0x38   : > { %3694 = vmatprep.subr.bf16.mxu0 %v4045_v26 }
  0x3b   : > { %3695 = vmatpush3.bf16.msra.mxu0 %v4045_v26 }
  0x3c   : > { %3696 = vmatprep.subr.bf16.mxu0 %v4047_v28 }
  0x3f   : > { %3697 = vmatpush3.bf16.msra.mxu0 %v4047_v28 }
  0x40   : > { %3698 = vmatprep.subr.bf16.mxu0 %v4051_v29 }
  0x43   : > { %3699 = vmatpush3.bf16.msra.mxu0 %v4051_v29 }
  0x44   : > { %3708 = vmatprep.subr.bf16.mxu0 %v4349_v30 }
  0xf9   : > { %v3678_v35 = vpop.f32.mrb[0].mxu0 }
  0xfa   : > { %v480_v36 = vadd.f32 %v3678_v35, %v4357_v32  ;;  %v471_v37 = vpop.f32.mrb[1].mxu0 }
  0xfb   : > { %v472_v38 = vadd.f32 %v4357_v32, %v471_v37  ;;  %v3679_v39 = vpop.f32.mrb[2].mxu0 }
  0xfc   : > { %v504_v40 = vmax.f32 %v480_v36, 0.0  ;;  %v483_v41 = vadd.f32 %v3679_v39, %v4357_v32  ;;  %v474_v42 = vpop.f32.mrb[3].mxu0 }
  0xfd   : > { %v502_v45 = vmax.f32 %v472_v38, 0.0  ;;  %v475_v46 = vadd.f32 %v4357_v32, %v474_v42 }
  0xfe   : > { %v3526_v47 = vpack.c.bf16 %v504_v40, %v504_v40  ;;  %v505_v48 = vmax.f32 %v483_v41, 0.0 }
  0xff   : > { %v3524_v49 = vpack.c.bf16 %v502_v45, %v502_v45  ;;  %v503_v50 = vmax.f32 %v475_v46, 0.0 }
 0x100   : > { %v571_v52 = vshrl.u32 %v3526_v47, 16  ;;  %v3527_v53 = vpack.c.bf16 %v505_v48, %v505_v48  ;;  %v574_v56 = vshll.u32 %v3526_v47, 16 }
 0x101   : > { %v555_v59 = vshrl.u32 %v3524_v49, 16  ;;  %v558_v60 = vshll.u32 %v3524_v49, 16  ;;  %v3525_v61 = vpack.c.bf16 %v503_v50, %v503_v50  ;;  %v3682_v62 = vpop.f32.mrb[4].mxu0 }
 0x102   : > { %v573_v63 = vrot.slane %v571_v52, 7  ;;  %v579_v2 = vshrl.u32 %v3527_v53, 16  ;;  %v582_v3 = vshll.u32 %v3527_v53, 16  ;;  %v496_v4 = vadd.f32 %v3682_v62, %v4357_v32  ;;  %v487_v5 = vpop.f32.mrb[5].mxu0  ;;  %v680_v62 = vld [vmem:[#allocation2 + $0x3c] sm:$0x1] }
 0x103   : > { %v557_v7 = vrot.slane %v555_v59, 7  ;;  %v563_v9 = vshrl.u32 %v3525_v61, 16  ;;  %v566_v10 = vshll.u32 %v3525_v61, 16  ;;  %v488_v11 = vadd.f32 %v4357_v32, %v487_v5  ;;  %v3683_v12 = vpop.f32.mrb[6].mxu0 }
 0x104   : > { %v576_v13 = vor.u32 %v574_v56, %v573_v63  ;;  %v577_v14 = vrot.slane %v573_v63, 4  ;;  %v581_v15 = vrot.slane %v579_v2, 7  ;;  %v508_v18 = vmax.f32 %v496_v4, 0.0  ;;  %v490_v19 = vpop.f32.mrb[7].mxu0  ;;  %v677_v56 = vld [vmem:[#allocation2 + $0x38] sm:$0xf] }
 0x105   : > { %v560_v20 = vor.u32 %v558_v60, %v557_v7  ;;  %v561_v21 = vrot.slane %v557_v7, 4  ;;  %v565_v23 = vrot.slane %v563_v9, 7  ;;  %v506_v24 = vmax.f32 %v488_v11, 0.0  ;;  %v668_v63 = vld [vmem:[#allocation2 + $0x2c] sm:$0x1] }
 0x106   : > { %v654_v25 = vsel %vm4376_vm4, %v576_v13, %v653_v57  ;;  %v657_v26 = vsel %vm4383_vm5, %v577_v14, %v656_v58  ;;  %v584_v28 = vor.u32 %v582_v3, %v581_v15  ;;  %v585_v29 = vrot.slane %v581_v15, 4  ;;  %v665_v57 = vld [vmem:[#allocation2 + $0x28] sm:$0xf]  ;;  %v686_v14 = vld [vmem:[#allocation2 + $0x44] sm:$0x1] }
 0x107   : > { %655 = vst [vmem:[#allocation2 + $0x18] sm:$0xf] %v654_v25  ;;  %658 = vst [vmem:[#allocation2 + $0x1c] sm:$0x1] %v657_v26  ;;  %v639_v35 = vsel %vm4376_vm4, %v560_v20, %v638_v1  ;;  %v645_v36 = vsel %vm4383_vm5, %v561_v21, %v644_v8  ;;  %v568_v37 = vor.u32 %v566_v10, %v565_v23  ;;  %v569_v38 = vrot.slane %v565_v23, 4 }
 0x108   : > { %640 = vst [vmem:[#allocation2 + $0x8] sm:$0xf] %v639_v35  ;;  %646 = vst [vmem:[#allocation2 + $0xc] sm:$0x1] %v645_v36  ;;  %v660_v39 = vsel %vm4376_vm4, %v584_v28, %v659_v17  ;;  %v663_v40 = vsel %vm4383_vm5, %v585_v29, %v662_v22  ;;  %v3530_v41 = vpack.c.bf16 %v508_v18, %v508_v18  ;;  %v4413_v3 = vrot.slane %v734_v55, 5 }
 0x109   : > { %v3528_v42 = vpack.c.bf16 %v506_v24, %v506_v24  ;;  %661 = vst [vmem:[#allocation2 + $0x20] sm:$0xf] %v660_v39  ;;  %664 = vst [vmem:[#allocation2 + $0x24] sm:$0x1] %v663_v40  ;;  %v648_v45 = vsel %vm4376_vm4, %v568_v37, %v647_v33  ;;  %v651_v46 = vsel %vm4383_vm5, %v569_v38, %v650_v34  ;;  %v683_v55 = vld [vmem:[#allocation2 + $0x40] sm:$0xf] }
 0x10a   : > { %v499_v47 = vadd.f32 %v3683_v12, %v4357_v32  ;;  %v491_v48 = vadd.f32 %v4357_v32, %v490_v19  ;;  %649 = vst [vmem:[#allocation2 + $0x10] sm:$0xf] %v648_v45  ;;  %652 = vst [vmem:[#allocation2 + $0x14] sm:$0x1] %v651_v46  ;;  %v603_v49 = vshrl.u32 %v3530_v41, 16  ;;  %v606_v50 = vshll.u32 %v3530_v41, 16 }
 0x10b   : > { %v587_v52 = vshrl.u32 %v3528_v42, 16  ;;  %v590_v53 = vshll.u32 %v3528_v42, 16  ;;  %v4409_v32 = vrot.slane %v731_v54, 4  ;;  %v671_v15 = vld [vmem:[#allocation2 + $0x30] sm:$0xf]  ;;  %v4052_v19 = vld [vmem:[%s4983_s3 + $0x108] sm:$0xff]  }
 0x10c   : > { %v509_v58 = vmax.f32 %v499_v47, 0.0  ;;  %v507_v59 = vmax.f32 %v491_v48, 0.0  ;;  %v605_v60 = vrot.slane %v603_v49, 7  ;;  %v674_v17 = vld [vmem:[#allocation2 + $0x34] sm:$0x1]  ;;  %v4055_v49 = vld [vmem:[%s4983_s3 + $0x110] sm:$0xff]  }
 0x10d   : > { %v589_v61 = vrot.slane %v587_v52, 7  ;;  %v4113_v48 = vld [vmem:[%s4983_s3 + $0x220] sm:$0xff]  }
 0x10e   : > { %v3531_v1 = vpack.c.bf16 %v509_v58, %v509_v58  ;;  %v3529_v2 = vpack.c.bf16 %v507_v59, %v507_v59  ;;  %v608_v4 = vor.u32 %v606_v50, %v605_v60  ;;  %v609_v5 = vrot.slane %v605_v60, 4  ;;  %v4434_v36 = vld [vmem:[#allocation2 + $0x18] sm:$0xf]  ;;  %v4458_v50 = vld [vmem:[#allocation2 + $0x1c] sm:$0x1] }
 0x10f   : > { %v592_v7 = vor.u32 %v590_v53, %v589_v61  ;;  %v593_v8 = vrot.slane %v589_v61, 4  ;;  %v4426_v20 = vld [vmem:[#allocation2 + $0x8] sm:$0xf]  ;;  %v4428_v24 = vld [vmem:[#allocation2 + $0xc] sm:$0x1]  ;;  %v767_v58 = vshrl.u32 %v4434_v36, 16  ;;  %v737_v61 = vsel %vm4451_vm8, %v4409_v32, %v4413_v3 }
 0x110   : > { %v611_v9 = vshrl.u32 %v3531_v1, 16  ;;  %v614_v10 = vshll.u32 %v3531_v1, 16  ;;  %v595_v11 = vshrl.u32 %v3529_v2, 16  ;;  %v598_v12 = vshll.u32 %v3529_v2, 16  ;;  %v4050_v18 = vld [vmem:[#allocation2 + $0x18] ss:$8 sps:$4 sm:$0xff]  }
 0x111   : > { %v678_v13 = vsel %vm4376_vm4, %v608_v4, %v677_v56  ;;  %v681_v43 = vsel %vm4383_vm5, %v609_v5, %v680_v62  ;;  %v666_v44 = vsel %vm4376_vm4, %v592_v7, %v665_v57  ;;  %v669_v54 = vsel %vm4383_vm5, %v593_v8, %v668_v63  ;;  %v4048_v23 = vld [vmem:[#allocation2 + $0x8] ss:$8 sps:$4 sm:$0xff]   ;;  %v4437_v40 = vld [vmem:[#allocation2 + $0x14] sm:$0x1]  ;;  %v4461_v53 = vld [vmem:[#allocation2 + $0xc] sm:$0x1] }
 0x112   : > { %679 = vst [vmem:[#allocation2 + $0x38] sm:$0xf] %v678_v13  ;;  %682 = vst [vmem:[#allocation2 + $0x3c] sm:$0x1] %v681_v43  ;;  %v613_v21 = vrot.slane %v611_v9, 7  ;;  %v597_v22 = vrot.slane %v595_v11, 7  ;;  %3772 = vmatprep.mubr.bf16.mxu1 %v4048_v23 }
 0x113   : > { %667 = vst [vmem:[#allocation2 + $0x28] sm:$0xf] %v666_v44  ;;  %670 = vst [vmem:[#allocation2 + $0x2c] sm:$0x1] %v669_v54  ;;  %v739_v25 = vshrl.u32 %v4426_v20, 16  ;;  %v742_v26 = vshll.u32 %v4426_v20, 16  ;;  %3773 = vmatmul.mubr.bf16.vlgmr.msra.gmra.mrb[0].mxu1 %v4050_v18 }
 0x114   : > { %v4432_v28 = vld [vmem:[#allocation2 + $0x10] sm:$0xf]  ;;  %v616_v29 = vor.u32 %v614_v10, %v613_v21  ;;  %v617_v33 = vrot.slane %v613_v21, 4  ;;  %v600_v34 = vor.u32 %v598_v12, %v597_v22  ;;  %v601_v35 = vrot.slane %v597_v22, 4  ;;  %3781 = vmatpush3.bf16.msra.mxu1 %v4337_v27  ;;  %v1502_v52 = vld [vmem:[#allocation2 + $0x8] sm:$0xf] }
 0x115   : > { %v741_v37 = vrot.slane %v739_v25, 4  ;;  %v744_v38 = vrot.slane %v742_v26, 5  ;;  %v748_v39 = vshll.u32 %v4428_v24, 16  ;;  %v753_v41 = vshrl.u32 %v4432_v28, 16  ;;  %3782 = vmatprep.subr.bf16.mxu1 %v4052_v19  ;;  %v1504_v60 = vld [vmem:[#allocation2 + $0x10] sm:$0xf] }
 0x116   : > { %v684_v42 = vsel %vm4376_vm4, %v616_v29, %v683_v55  ;;  %v687_v45 = vsel %vm4383_vm5, %v617_v33, %v686_v14  ;;  %v672_v46 = vsel %vm4376_vm4, %v600_v34, %v671_v15  ;;  %v675_v47 = vsel %vm4383_vm5, %v601_v35, %v674_v17  ;;  %v4058_v11 = vld [vmem:[%s4983_s3 + $0x118] sm:$0xff]   ;;  %v4476_v12 = vld [vmem:[#allocation2 + $0x14] sm:$0x1]  ;;  %v4479_v44 = vld [vmem:[#allocation2 + $0x20] sm:$0xf] }
 0x117   : > { %685 = vst [vmem:[#allocation2 + $0x40] sm:$0xf] %v684_v42  ;;  %688 = vst [vmem:[#allocation2 + $0x44] sm:$0x1] %v687_v45  ;;  %v745_v0 = vor.u32 %v744_v38, %v741_v37  ;;  %v755_v6 = vrot.slane %v753_v41, 4  ;;  %v756_v27 = vshll.u32 %v4432_v28, 16  ;;  %v3247_v25 = vcombine.low %v4352_v31, %v4426_v20 }
 0x118   : > { %673 = vst [vmem:[#allocation2 + $0x30] sm:$0xf] %v672_v46  ;;  %676 = vst [vmem:[#allocation2 + $0x34] sm:$0x1] %v675_v47  ;;  %v750_v56 = vrot.slane %v748_v39, 5  ;;  %v762_v57 = vshll.u32 %v4437_v40, 16  ;;  %3783 = vmatpush3.bf16.msra.mxu1 %v4052_v19 }
 0x119   : > { %v770_v59 = vshll.u32 %v4434_v36, 16  ;;  %v746_v62 = vrot.slane %v745_v0, 4  ;;  %v758_v63 = vrot.slane %v756_v27, 5  ;;  %v769_v2 = vrot.slane %v767_v58, 4  ;;  %3784 = vmatprep.subr.bf16.mxu1 %v4055_v49  ;;  %v4483_v18 = vld [vmem:[#allocation2 + $0x24] sm:$0x1] }
 0x11a   : > { %v764_v1 = vrot.slane %v762_v57, 5  ;;  %v776_v5 = vshll.u32 %v4458_v50, 16  ;;  %v1519_v9 = vshrl.u32 %v1502_v52, 16  ;;  %v1522_v10 = vshll.u32 %v1502_v52, 16  ;;  %v4481_v17 = vld [vmem:[#allocation2 + $0x28] sm:$0xf] }
 0x11b   : > { %v772_v4 = vrot.slane %v770_v59, 5  ;;  %v751_v7 = vsel %vm4451_vm8, %v746_v62, %v750_v56  ;;  %v759_v8 = vor.u32 %v758_v63, %v755_v6  ;;  %v1528_v13 = vshll.u32 %v4461_v53, 16  ;;  %v4060_v19 = vld [vmem:[%s4983_s3 + $0x120] sm:$0xff]   ;;  %v4057_v39 = vld [vmem:[%s4983_s3 + $0x8] sm:$0xff]   ;;  %v4500_v0 = vld [vmem:[#allocation2 + $0x2c] sm:$0x1] }
 0x11c   : > { %v3235_v32 = vcombine.low %v737_v61, %v751_v7  ;;  %v1533_v43 = vshrl.u32 %v1504_v60, 16  ;;  %v1521_v55 = vrot.slane %v1519_v9, 4  ;;  %v1524_v14 = vrot.slane %v1522_v10, 5  ;;  %3785 = vmatpush3.bf16.msra.mxu1 %v4055_v49  ;;  %v4511_v63 = vld [vmem:[#allocation2 + $0x38] sm:$0xf] }
 0x11d   : > { %v773_v3 = vor.u32 %v772_v4, %v769_v2  ;;  %v760_v54 = vrot.slane %v759_v8, 4  ;;  %v1536_v15 = vshll.u32 %v1504_v60, 16  ;;  %v778_v23 = vrot.slane %v776_v5, 5  ;;  %3786 = vmatprep.subr.bf16.mxu1 %v4058_v11  ;;  %v4518_v7 = vld [vmem:[#allocation2 + $0x3c] sm:$0x1] }
 0x11e   : > { %3700 = vmatprep.mubr.bf16.mxu0 %v3235_v32  ;;  %v4056_v29 = vld [vmem:[#allocation2 + $0x38] ss:$8 sps:$4 sm:$0xff]   ;;  %v1525_v33 = vor.u32 %v1524_v14, %v1521_v55  ;;  %v1535_v34 = vrot.slane %v1533_v43, 4  ;;  %v1542_v38 = vshll.u32 %v4476_v12, 16  ;;  %v781_v41 = vshrl.u32 %v4479_v44, 16 }
 0x11f   : > { %v4054_v21 = vld [vmem:[#allocation2 + $0x28] ss:$8 sps:$4 sm:$0xff]   ;;  %v774_v22 = vrot.slane %v773_v3, 4  ;;  %v765_v26 = vsel %vm4451_vm8, %v760_v54, %v764_v1  ;;  %v1538_v35 = vrot.slane %v1536_v15, 5  ;;  %v784_v42 = vshll.u32 %v4479_v44, 16  ;;  %v4063_v1 = vld [vmem:[%s4983_s3 + $0x128] sm:$0xff]  }
 0x120   : > { %3776 = vmatprep.mubr.bf16.mxu1 %v4054_v21  ;;  %v1526_v46 = vrot.slane %v1525_v33, 4  ;;  %v1530_v47 = vrot.slane %v1528_v13, 5  ;;  %v4502_v6 = vld [vmem:[#allocation2 + $0x30] sm:$0xf]  ;;  %3787 = vmatpush3.bf16.msra.mxu1 %v4058_v11  ;;  %v783_v27 = vrot.slane %v781_v41, 4  ;;  %v790_v56 = vshll.u32 %v4483_v18, 16 }
 0x121   : > { %v779_v37 = vsel %vm4451_vm8, %v774_v22, %v778_v23  ;;  %3777 = vmatmul.mubr.bf16.gmra.mrb[4].mxu1 %v4056_v29  ;;  %v1539_v49 = vor.u32 %v1538_v35, %v1535_v34  ;;  %v786_v52 = vrot.slane %v784_v42, 5  ;;  %v795_v57 = vshrl.u32 %v4481_v17, 16  ;;  %v4506_v58 = vld [vmem:[#allocation2 + $0x34] sm:$0x1]  ;;  %3788 = vmatprep.subr.bf16.mxu1 %v4060_v19  ;;  %v4059_v11 = vld [vmem:[%s4983_s3 + $0x10] sm:$0xff]   ;;  %v4062_v42 = vld [vmem:[%s4983_s3 + $0x18] sm:$0xff]  }
 0x122   : > { %v3236_v45 = vcombine.low %v765_v26, %v779_v37  ;;  %v1531_v59 = vsel %vm4451_vm8, %v1526_v46, %v1530_v47  ;;  %v1544_v61 = vrot.slane %v1542_v38, 5  ;;  %v798_v62 = vshll.u32 %v4481_v17, 16  ;;  %v1506_v3 = vld [vmem:[#allocation2 + $0x18] sm:$0xf]  ;;  %v4065_v23 = vld [vmem:[%s4983_s3 + $0x130] sm:$0xff]  }
 0x123   : > { %v1540_v60 = vrot.slane %v1539_v49, 4  ;;  %v787_v2 = vor.u32 %v786_v52, %v783_v27  ;;  %v797_v4 = vrot.slane %v795_v57, 4  ;;  %v804_v5 = vshll.u32 %v4500_v0, 16  ;;  %v4532_v26 = vld [vmem:[#allocation2 + $0x1c] sm:$0x1]  ;;  %v4067_v57 = vld [vmem:[%s4983_s3 + $0x138] sm:$0xff]  }
 0x124   : > { %3701 = vmatmul.mubr.bf16.vlgmr.msra.gmra.mrb[8].mxu0 %v3236_v45  ;;  %v809_v8 = vshrl.u32 %v4502_v6, 16  ;;  %v800_v10 = vrot.slane %v798_v62, 5  ;;  %v812_v32 = vshll.u32 %v4502_v6, 16  ;;  %v792_v54 = vrot.slane %v790_v56, 5  ;;  %3789 = vmatpush3.bf16.msra.mxu1 %v4060_v19  ;;  %v1508_v19 = vld [vmem:[#allocation2 + $0x20] sm:$0xf] }
 0x125   : > { %3709 = vmatpush3.bf16.msra.mxu0 %v4349_v30  ;;  %v1545_v9 = vsel %vm4451_vm8, %v1540_v60, %v1544_v61  ;;  %v818_v30 = vshll.u32 %v4506_v58, 16  ;;  %v788_v43 = vrot.slane %v787_v2, 4  ;;  %v806_v15 = vrot.slane %v804_v5, 5  ;;  %3790 = vmatprep.subr.bf16.mxu1 %v4063_v1  ;;  %v4541_v47 = vld [vmem:[#allocation2 + $0x24] sm:$0x1] }
 0x126   : > { %3710 = vmatprep.subr.bf16.mxu0 %v4057_v39  ;;  %v3339_v13 = vcombine.low %v1531_v59, %v1545_v9  ;;  %v811_v55 = vrot.slane %v809_v8, 4  ;;  %v801_v14 = vor.u32 %v800_v10, %v797_v4  ;;  %v814_v21 = vrot.slane %v812_v32, 5  ;;  %v1510_v61 = vld [vmem:[#allocation2 + $0x28] sm:$0xf]  ;;  %v1512_v5 = vld [vmem:[#allocation2 + $0x30] sm:$0xf] }
 0x127   : > { %v823_v22 = vshrl.u32 %v4511_v63, 16  ;;  %v820_v29 = vrot.slane %v818_v30, 5  ;;  %v826_v33 = vshll.u32 %v4511_v63, 16  ;;  %v832_v34 = vshll.u32 %v4518_v7, 16  ;;  %v4064_v9 = vld [vmem:[%s4983_s3 + $0x20] sm:$0xff]  }
 0x128   : > { %3796 = vmatprep.mubr.bf16.mxu1 %v3339_v13  ;;  %v1547_v35 = vshrl.u32 %v1506_v3, 16  ;;  %v802_v37 = vrot.slane %v801_v14, 4  ;;  %v815_v38 = vor.u32 %v814_v21, %v811_v55  ;;  %v1550_v45 = vshll.u32 %v1506_v3, 16  ;;  %3791 = vmatpush3.bf16.msra.mxu1 %v4063_v1 }
 0x129   : > { %3711 = vmatpush3.bf16.msra.mxu0 %v4057_v39  ;;  %v825_v41 = vrot.slane %v823_v22, 4  ;;  %v793_v46 = vsel %vm4451_vm8, %v788_v43, %v792_v54  ;;  %v828_v39 = vrot.slane %v826_v33, 5  ;;  %v1556_v27 = vshll.u32 %v4532_v26, 16  ;;  %3792 = vmatprep.subr.bf16.mxu1 %v4065_v23  ;;  %v4555_v43 = vld [vmem:[#allocation2 + $0x2c] sm:$0x1] }
 0x12a   : > { %3712 = vmatprep.subr.bf16.mxu0 %v4059_v11  ;;  %v1549_v49 = vrot.slane %v1547_v35, 4  ;;  %v807_v52 = vsel %vm4451_vm8, %v802_v37, %v806_v15  ;;  %v816_v56 = vrot.slane %v815_v38, 4  ;;  %v1552_v59 = vrot.slane %v1550_v45, 5  ;;  %v4069_v15 = vld [vmem:[%s4983_s3 + $0x140] sm:$0xff]   ;;  %v1516_v35 = vld [vmem:[#allocation2 + $0x40] sm:$0xf] }
 0x12b   : > { %v1561_v60 = vshrl.u32 %v1508_v19, 16  ;;  %v3237_v62 = vcombine.low %v793_v46, %v807_v52  ;;  %v829_v2 = vor.u32 %v828_v39, %v825_v41  ;;  %v834_v1 = vrot.slane %v832_v34, 5  ;;  %v4066_v38 = vld [vmem:[%s4983_s3 + $0x28] sm:$0xff]   ;;  %v4568_v46 = vld [vmem:[#allocation2 + $0x34] sm:$0x1] }
 0x12c   : > { %v1564_v4 = vshll.u32 %v1508_v19, 16  ;;  %v821_v8 = vsel %vm4451_vm8, %v816_v56, %v820_v29  ;;  %v1553_v10 = vor.u32 %v1552_v59, %v1549_v49  ;;  %v1570_v30 = vshll.u32 %v4541_v47, 16  ;;  %3793 = vmatpush3.bf16.msra.mxu1 %v4065_v23  ;;  %v1514_v19 = vld [vmem:[#allocation2 + $0x38] sm:$0xf]  ;;  %v4068_v56 = vld [vmem:[%s4983_s3 + $0x30] sm:$0xff]  }
 0x12d   : > { %3713 = vmatpush3.bf16.msra.mxu0 %v4059_v11  ;;  %v1563_v32 = vrot.slane %v1561_v60, 4  ;;  %3704 = vmatprep.mubr.bf16.mxu0 %v3237_v62  ;;  %v830_v3 = vrot.slane %v829_v2, 4  ;;  %v1575_v11 = vshrl.u32 %v1510_v61, 16  ;;  %v1578_v54 = vshll.u32 %v1510_v61, 16  ;;  %v4574_v60 = vld [vmem:[#allocation2 + $0x3c] sm:$0x1] }
 0x12e   : > { %3714 = vmatprep.subr.bf16.mxu0 %v4062_v42  ;;  %v1566_v13 = vrot.slane %v1564_v4, 5  ;;  %3794 = vmatprep.subr.bf16.mxu1 %v4067_v57  ;;  %v1554_v55 = vrot.slane %v1553_v10, 4  ;;  %v1558_v14 = vrot.slane %v1556_v27, 5  ;;  %v1584_v21 = vshll.u32 %v4555_v43, 16 }
 0x12f   : > { %v1589_v22 = vshrl.u32 %v1512_v5, 16  ;;  %v835_v29 = vsel %vm4451_vm8, %v830_v3, %v834_v1  ;;  %v1577_v33 = vrot.slane %v1575_v11, 4  ;;  %v1580_v34 = vrot.slane %v1578_v54, 5 }
 0x130   : > { %v1567_v23 = vor.u32 %v1566_v13, %v1563_v32  ;;  %v3238_v37 = vcombine.low %v821_v8, %v835_v29  ;;  %v1559_v41 = vsel %vm4451_vm8, %v1554_v55, %v1558_v14  ;;  %v1572_v45 = vrot.slane %v1570_v30, 5  ;;  %3795 = vmatpush3.bf16.msra.mxu1 %v4067_v57  ;;  %v4585_v32 = vld [vmem:[#allocation2 + $0x44] sm:$0x1]  ;;  %v1785_v13 = vld [vmem:[#allocation2 + $0x10] sm:$0xe] }
 0x131   : > { %3715 = vmatpush3.bf16.msra.mxu0 %v4062_v42  ;;  %v1591_v39 = vrot.slane %v1589_v22, 4  ;;  %v1581_v49 = vor.u32 %v1580_v34, %v1577_v33  ;;  %v1592_v27 = vshll.u32 %v1512_v5, 16  ;;  %v1598_v52 = vshll.u32 %v4568_v46, 16  ;;  %3804 = vmatprep.subr.bf16.mxu1 %v4069_v15  ;;  %v4071_v5 = vld [vmem:[%s4983_s3 + $0x148] sm:$0xff]   ;;  %v1784_v55 = vld [vmem:[#allocation2 + $0x8] sm:$0xe] }
 0x132   : > { %3716 = vmatprep.subr.bf16.mxu0 %v4064_v9  ;;  %v1568_v42 = vrot.slane %v1567_v23, 4  ;;  %3705 = vmatmul.mubr.bf16.gmra.mrb[12].mxu0 %v3238_v37  ;;  %v1586_v59 = vrot.slane %v1584_v21, 5  ;;  %v1603_v61 = vshrl.u32 %v1514_v19, 16  ;;  %v1606_v62 = vshll.u32 %v1514_v19, 16  ;;  %v4070_v23 = vld [vmem:[%s4983_s3 + $0x38] sm:$0xff]  }
 0x133   : > { %v1617_v2 = vshrl.u32 %v1516_v35, 16  ;;  %3724 = vmatprep.mubr.bf16.mxu0 %v3247_v25  ;;  %v1582_v1 = vrot.slane %v1581_v49, 4  ;;  %v1594_v4 = vrot.slane %v1592_v27, 5  ;;  %v1612_v8 = vshll.u32 %v4574_v60, 16  ;;  %v4073_v27 = vld [vmem:[%s4983_s3 + $0x80] sm:$0xff]  }
 0x134   : > { %v1573_v57 = vsel %vm4451_vm8, %v1568_v42, %v1572_v45  ;;  %v1605_v30 = vrot.slane %v1603_v61, 4  ;;  %v1608_v3 = vrot.slane %v1606_v62, 5  ;;  %v1600_v20 = vrot.slane %v1598_v52, 5  ;;  %v1121_v52 = vld [vmem:[#allocation2 + $0x10] sm:$0xe]  ;;  %v4077_v61 = vld [vmem:[%s4983_s3 + $0x158] sm:$0xff]  }
 0x135   : > { %3717 = vmatpush3.bf16.msra.mxu0 %v4064_v9  ;;  %v3340_v10 = vcombine.low %v1559_v41, %v1573_v57  ;;  %v1595_v31 = vor.u32 %v1594_v4, %v1591_v39  ;;  %v1619_v25 = vrot.slane %v1617_v2, 4  ;;  %v1620_v9 = vshll.u32 %v1516_v35, 16  ;;  %v1119_v57 = vld [vmem:[#allocation2] sm:$0xe]  ;;  %v1120_v4 = vld [vmem:[#allocation2 + $0x8] sm:$0xe] }
 0x136   : > { %3718 = vmatprep.subr.bf16.mxu0 %v4066_v38  ;;  %v1609_v11 = vor.u32 %v1608_v3, %v1605_v30  ;;  %v1626_v54 = vshll.u32 %v4585_v32, 16  ;;  %v1587_v14 = vsel %vm4451_vm8, %v1582_v1, %v1586_v59  ;;  %v1614_v22 = vrot.slane %v1612_v8, 5  ;;  %v4076_v3 = vld [vmem:[%s4983_s3 + $0x88] sm:$0xff]  }
 0x137   : > { %3797 = vmatmul.mubr.bf16.vlgmr.msra.gmra.mrb[0].mxu1 %v3340_v10  ;;  %v1596_v21 = vrot.slane %v1595_v31, 4  ;;  %v1622_v29 = vrot.slane %v1620_v9, 5  ;;  %v3352_v34 = vrot.slane %v1785_v13, 9  ;;  %v1814_v19 = vrot.slane %v4476_v12, 5  ;;  %v4079_v13 = vld [vmem:[%s4983_s3 + $0x90] sm:$0xff]  }
 0x138   : > { %3805 = vmatpush3.bf16.msra.mxu1 %v4069_v15  ;;  %v1610_v33 = vrot.slane %v1609_v11, 4  ;;  %v4074_v15 = vld [vmem:[%s4983_s3 + $0x150] sm:$0xff]   ;;  %v3351_v45 = vrot.slane %v1784_v55, 9  ;;  %v1810_v39 = vrot.slane %v4461_v53, 5  ;;  %v1156_v8 = vrot.slane %v4437_v40, 5  ;;  %v4080_v40 = vld [vmem:[%s4983_s3 + $0x160] sm:$0xff]  }
 0x139   : > { %3719 = vmatpush3.bf16.msra.mxu0 %v4066_v38  ;;  %3806 = vmatprep.subr.bf16.mxu1 %v4071_v5  ;;  %v1601_v35 = vsel %vm4451_vm8, %v1596_v21, %v1600_v20  ;;  %v1623_v37 = vor.u32 %v1622_v29, %v1619_v25  ;;  %v1628_v38 = vrot.slane %v1626_v54, 5  ;;  %v1815_v53 = vsel %vm4604_vm11, %v3352_v34, %v1814_v19  ;;  %v4081_v55 = vld [vmem:[%s4983_s3 + $0x98] sm:$0xff]   ;;  %v4084_v21 = vld [vmem:[%s4983_s3 + $0x170] sm:$0xff]   ;;  %v1789_v29 = vld [vmem:[#allocation2 + $0x30] sm:$0xe] }
 0x13a   : > { %3720 = vmatprep.subr.bf16.mxu0 %v4068_v56  ;;  %v3341_v41 = vcombine.low %v1587_v14, %v1601_v35  ;;  %v1615_v42 = vsel %vm4451_vm8, %v1610_v33, %v1614_v22  ;;  %v1811_v2 = vsel %vm4604_vm11, %v3351_v45, %v1810_v39  ;;  %v3248_v30 = vcombine.low %v4432_v28, %v4434_v36  ;;  %v1787_v22 = vld [vmem:[#allocation2 + $0x20] sm:$0xe]  ;;  %v1786_v33 = vld [vmem:[#allocation2 + $0x18] sm:$0xe] }
 0x13b   : > { %v1624_v49 = vrot.slane %v1623_v37, 4  ;;  %v3375_v1 = vcombine.low %v1811_v2, %v1815_v53  ;;  %v1160_v31 = vrot.slane %v4458_v50, 5  ;;  %v3249_v20 = vcombine.low %v4479_v44, %v4481_v17  ;;  %v4120_v12 = vld [vmem:[%s4985_s5 + $0x10] ss:$8 sps:$4 sm:$0xff]  }
 0x13c   : > { %3807 = vmatpush3.bf16.msra.mxu1 %v4071_v5  ;;  %3800 = vmatprep.mubr.bf16.mxu1 %v3341_v41  ;;  %v3261_v5 = vrot.slane %v1121_v52, 9  ;;  %v3259_v25 = vrot.slane %v1119_v57, 9  ;;  %v1148_v36 = vrot.slane %v4369_v51, 5  ;;  %v3260_v9 = vrot.slane %v1120_v4, 9  ;;  %v4082_v51 = vld [vmem:[%s4983_s3 + $0x168] sm:$0xff]   ;;  %v4089_v4 = vld [vmem:[%s4983_s3 + $0xb8] sm:$0xff]  }
 0x13d   : > { %3721 = vmatpush3.bf16.msra.mxu0 %v4068_v56  ;;  %v1122_v56 = vld [vmem:[#allocation2 + $0x18] sm:$0xe]  ;;  %v1629_v59 = vsel %vm4451_vm8, %v1624_v49, %v1628_v38  ;;  %3808 = vmatprep.subr.bf16.mxu1 %v4074_v15  ;;  %v1152_v50 = vrot.slane %v4428_v24, 5  ;;  %v3250_v54 = vcombine.low %v4502_v6, %v4511_v63  ;;  %v4083_v6 = vld [vmem:[%s4983_s3 + $0xa0] sm:$0xff]   ;;  %v1788_v63 = vld [vmem:[#allocation2 + $0x28] sm:$0xe] }
 0x13e   : > { %3722 = vmatprep.subr.bf16.mxu0 %v4070_v23  ;;  %v3342_v62 = vcombine.low %v1615_v42, %v1629_v59  ;;  %v3262_v10 = vrot.slane %v1122_v56, 9  ;;  %v4634_v28 = vsel %vm4604_vm11, %v3261_v5, %v1156_v8  ;;  %v1149_v24 = vsel %vm4604_vm11, %v3259_v25, %v1148_v36  ;;  %v4085_v41 = vld [vmem:[%s4983_s3 + $0xa8] sm:$0xff]   ;;  %v1123_v5 = vld [vmem:[#allocation2 + $0x20] sm:$0xe] }
 0x13f   : > { %v1153_v11 = vsel %vm4604_vm11, %v3260_v9, %v1152_v50  ;;  %v3354_v34 = vrot.slane %v1787_v22, 9  ;;  %v1822_v19 = vrot.slane %v4541_v47, 5  ;;  %v3355_v35 = vrot.slane %v1788_v63, 9  ;;  %v4088_v47 = vld [vmem:[%s4983_s3 + $0x180] sm:$0xff]   ;;  %v1790_v42 = vld [vmem:[#allocation2 + $0x38] sm:$0xe] }
 0x140   : > { %3809 = vmatpush3.bf16.msra.mxu1 %v4074_v15  ;;  %v4640_v44 = vsel %vm4604_vm11, %v3262_v10, %v1160_v31  ;;  %v3283_v14 = vcombine.low %v1149_v24, %v1153_v11  ;;  %v1826_v37 = vrot.slane %v4555_v43, 5  ;;  %v3356_v38 = vrot.slane %v1789_v29, 9  ;;  %v4092_v36 = vld [vmem:[#allocation2 + $0x10] ss:$8 sps:$4 sm:$0xff]   ;;  %v4093_v9 = vld [vmem:[%s4983_s3 + $0x198] sm:$0xff]  }
 0x141   : > { %3723 = vmatpush3.bf16.msra.mxu0 %v4070_v23  ;;  %3801 = vmatmul.mubr.bf16.gmra.mrb[4].mxu1 %v3342_v62  ;;  %v3284_v17 = vcombine.low %v4634_v28, %v4640_v44  ;;  %v4086_v23 = vld [vmem:[%s4983_s3 + $0x178] sm:$0xff]   ;;  %v1830_v15 = vrot.slane %v4568_v46, 5  ;;  %v3353_v45 = vrot.slane %v1786_v33, 9  ;;  %v1818_v39 = vrot.slane %v4532_v26, 5  ;;  %v4087_v26 = vld [vmem:[%s4983_s3 + $0xb0] sm:$0xff]  }
 0x142   : > { %3732 = vmatprep.subr.bf16.mxu0 %v4073_v27  ;;  %3820 = vmatprep.mubr.bf16.mxu1 %v3375_v1  ;;  %v1823_v43 = vsel %vm4604_vm11, %v3354_v34, %v1822_v19  ;;  %v1827_v46 = vsel %vm4604_vm11, %v3355_v35, %v1826_v37  ;;  %v3357_v56 = vrot.slane %v1790_v42, 9  ;;  %v1834_v62 = vrot.slane %v4574_v60, 5  ;;  %v1124_v1 = vld [vmem:[#allocation2 + $0x28] sm:$0xe]  ;;  %v1126_v50 = vld [vmem:[#allocation2 + $0x38] sm:$0xe] }
 0x143   : > { %3810 = vmatprep.subr.bf16.mxu1 %v4077_v61  ;;  %v1831_v49 = vsel %vm4604_vm11, %v3356_v38, %v1830_v15  ;;  %v1819_v53 = vsel %vm4604_vm11, %v3353_v45, %v1818_v39  ;;  %v1838_v57 = vrot.slane %v4585_v32, 5  ;;  %v4091_v32 = vld [vmem:[%s4983_s3 + $0x190] sm:$0xff]   ;;  %v3264_v10 = vrot.slane %v1124_v1, 9  ;;  %v2165_v44 = vld [vmem:[#allocation2 + $0x10] sm:$0xf]  ;;  %v4101_v45 = vld [vmem:[%s4983_s3 + $0x1c8] sm:$0xff]  }
 0x144   : > { %3725 = vmatmul.mubr.bf16.vlgmr.msra.gmra.mrb[8].mxu0 %v3248_v30  ;;  %3811 = vmatpush3.bf16.msra.mxu1 %v4077_v61  ;;  %v3376_v52 = vcombine.low %v1819_v53, %v1823_v43  ;;  %v3377_v59 = vcombine.low %v1827_v46, %v1831_v49  ;;  %v4090_v61 = vld [vmem:[%s4983_s3 + $0x188] sm:$0xff]   ;;  %v1835_v8 = vsel %vm4604_vm11, %v3357_v56, %v1834_v62  ;;  %v1168_v30 = vrot.slane %v4500_v0, 5  ;;  %v4099_v34 = vld [vmem:[%s4983_s3 + $0x1c0] sm:$0xff]   ;;  %v4103_v49 = vld [vmem:[%s4983_s3 + $0x1d0] sm:$0xff]  }
 0x145   : > { %3728 = vmatprep.mubr.bf16.mxu0 %v3249_v20  ;;  %3733 = vmatpush3.bf16.msra.mxu0 %v4073_v27  ;;  %v1791_v27 = vld [vmem:[#allocation2 + $0x40] sm:$0xe]  ;;  %v1164_v31 = vrot.slane %v4483_v18, 5  ;;  %v3266_v24 = vrot.slane %v1126_v50, 9  ;;  %v1176_v11 = vrot.slane %v4518_v7, 5  ;;  %v4095_v7 = vld [vmem:[%s4983_s3 + $0x1a8] sm:$0xff]  }
 0x146   : > { %3734 = vmatprep.subr.bf16.mxu0 %v4076_v3  ;;  %3812 = vmatprep.subr.bf16.mxu1 %v4080_v40  ;;  %v3358_v2 = vrot.slane %v1791_v27, 9  ;;  %v1169_v25 = vsel %vm4604_vm11, %v3264_v10, %v1168_v30  ;;  %v2185_v22 = vshll.u32 %v2165_v44, 16  ;;  %v4738_v37 = vld [vmem:[#allocation2 + $0x14] sm:$0x1]  ;;  %v4740_v15 = vld [vmem:[#allocation2 + $0x1c] sm:$0x1] }
 0x147   : > { %v2191_v39 = vshll.u32 %v4738_v37, 16  ;;  %v4100_v43 = vld [vmem:[#allocation2 + $0x30] ss:$8 sps:$4 sm:$0xff]   ;;  %v2205_v46 = vshll.u32 %v4740_v15, 16  ;;  %v4102_v56 = vld [vmem:[#allocation2 + $0x40] ss:$8 sps:$4 sm:$0xff]  }
 0x148   : > { %3813 = vmatpush3.bf16.msra.mxu1 %v4080_v40  ;;  %v1839_v60 = vsel %vm4604_vm11, %v3358_v2, %v1838_v57  ;;  %v1125_v40 = vld [vmem:[#allocation2 + $0x30] sm:$0xe]  ;;  %v2187_v33 = vrot.slane %v2185_v22, 5  ;;  %v2171_v2 = vld [vmem:[#allocation2 + $0x28] sm:$0xf] }
 0x149   : > { %3735 = vmatpush3.bf16.msra.mxu0 %v4076_v3  ;;  %3814 = vmatprep.subr.bf16.mxu1 %v4082_v51  ;;  %v3263_v3 = vrot.slane %v1123_v5, 9  ;;  %v3378_v20 = vcombine.low %v1835_v8, %v1839_v60  ;;  %v3265_v18 = vrot.slane %v1125_v40, 9  ;;  %v2193_v27 = vrot.slane %v2191_v39, 5  ;;  %v2173_v57 = vld [vmem:[#allocation2 + $0x30] sm:$0xf]  ;;  %v4106_v40 = vld [vmem:[%s4983_s3 + $0x1e8] sm:$0xff]  }
 0x14a   : > { %3736 = vmatprep.subr.bf16.mxu0 %v4079_v13  ;;  %v2175_v1 = vld [vmem:[#allocation2 + $0x38] sm:$0xf]  ;;  %v2169_v5 = vld [vmem:[#allocation2 + $0x20] sm:$0xf]  ;;  %v2224_v8 = vshrl.u32 %v2171_v2, 16  ;;  %v2227_v60 = vshll.u32 %v2171_v2, 16 }
 0x14b   : > { %v1165_v0 = vsel %vm4604_vm11, %v3263_v3, %v1164_v31  ;;  %v2241_v10 = vshll.u32 %v2173_v57, 16  ;;  %v2252_v30 = vshrl.u32 %v2175_v1, 16  ;;  %v2255_v3 = vshll.u32 %v2175_v1, 16 }
 0x14c   : > { %3729 = vmatmul.mubr.bf16.gmra.mrb[12].mxu0 %v3250_v54  ;;  %3815 = vmatpush3.bf16.msra.mxu1 %v4082_v51  ;;  %v1172_v51 = vrot.slane %v4506_v58, 5  ;;  %v4094_v54 = vld [vmem:[%s4983_s3 + $0x1a0] sm:$0xff]   ;;  %v1177_v58 = vsel %vm4604_vm11, %v3266_v24, %v1176_v11  ;;  %v2210_v31 = vshrl.u32 %v2169_v5, 16  ;;  %v4107_v24 = vld [vmem:[%s4983_s3 + $0x1f0] sm:$0xff]  }
 0x14d   : > { %3737 = vmatpush3.bf16.msra.mxu0 %v4079_v13  ;;  %3748 = vmatprep.mubr.bf16.mxu0 %v3283_v14  ;;  %v3285_v13 = vcombine.low %v1165_v0, %v1169_v25  ;;  %v2167_v14 = vld [vmem:[#allocation2 + $0x18] sm:$0xf]  ;;  %v2179_v25 = vld [vmem:[#allocation2 + $0x48] sm:$0xf]  ;;  %v2243_v0 = vrot.slane %v2241_v10, 5 }
 0x14e   : > { %3738 = vmatprep.subr.bf16.mxu0 %v4081_v55  ;;  %3816 = vmatprep.subr.bf16.mxu1 %v4084_v21  ;;  %v2196_v63 = vshrl.u32 %v2167_v14, 16  ;;  %v2199_v29 = vshll.u32 %v2167_v14, 16  ;;  %v2212_v11 = vrot.slane %v2210_v31, 4  ;;  %v4110_v10 = vld [vmem:[%s4983_s3 + $0x208] sm:$0xff]  }
 0x150   : > { %3817 = vmatpush3.bf16.msra.mxu1 %v4084_v21  ;;  %v2182_v21 = vshrl.u32 %v2165_v44, 16  ;;  %v2198_v19 = vrot.slane %v2196_v63, 4  ;;  %v2201_v35 = vrot.slane %v2199_v29, 5  ;;  %v4770_v44 = vld [vmem:[#allocation2 + $0x34] sm:$0x1] }
 0x151   : > { %3739 = vmatpush3.bf16.msra.mxu0 %v4081_v55  ;;  %3818 = vmatprep.subr.bf16.mxu1 %v4086_v23  ;;  %v1173_v55 = vsel %vm4604_vm11, %v3265_v18, %v1172_v51  ;;  %v2254_v18 = vrot.slane %v2252_v30, 4  ;;  %v2177_v51 = vld [vmem:[#allocation2 + $0x40] sm:$0xf]  ;;  %v2247_v29 = vshll.u32 %v4770_v44, 16 }
 0x152   : > { %3740 = vmatprep.subr.bf16.mxu0 %v4083_v6  ;;  %v3286_v28 = vcombine.low %v1173_v55, %v1177_v58  ;;  %v2280_v55 = vshrl.u32 %v2179_v25, 16  ;;  %v2283_v58 = vshll.u32 %v2179_v25, 16  ;;  %v2266_v22 = vshrl.u32 %v2177_v51, 16  ;;  %v2448_v25 = vld [vmem:[#allocation2 + $0x18] sm:$0xe] }
 0x154   : > { %3819 = vmatpush3.bf16.msra.mxu1 %v4086_v23  ;;  %v2184_v23 = vrot.slane %v2182_v21, 4  ;;  %v4773_v21 = vld [vmem:[#allocation2 + $0x3c] sm:$0x1] }
 0x155   : > { %3741 = vmatpush3.bf16.msra.mxu0 %v4083_v6  ;;  %3828 = vmatprep.subr.bf16.mxu1 %v4088_v47  ;;  %v4097_v6 = vld [vmem:[%s4983_s3 + $0x1b8] sm:$0xff]  }
 0x156   : > { %3742 = vmatprep.subr.bf16.mxu0 %v4085_v41  ;;  %v2188_v38 = vor.u32 %v2187_v33, %v2184_v23  ;;  %v2261_v33 = vshll.u32 %v4773_v21, 16 }
 0x157   : > { %3821 = vmatmul.mubr.bf16.vlgmr.msra.gmra.mrb[0].mxu1 %v3376_v52  ;;  %v2207_v52 = vrot.slane %v2205_v46, 5  ;;  %v2249_v46 = vrot.slane %v2247_v29, 5 }
 0x158   : > { %3824 = vmatprep.mubr.bf16.mxu1 %v3377_v59  ;;  %3829 = vmatpush3.bf16.msra.mxu1 %v4088_v47  ;;  %v2202_v47 = vor.u32 %v2201_v35, %v2198_v19  ;;  %v2189_v42 = vrot.slane %v2188_v38, 4  ;;  %v4108_v19 = vld [vmem:[%s4983_s3 + $0x1f8] sm:$0xff]   ;;  %v2282_v38 = vrot.slane %v2280_v55, 4  ;;  %v4114_v55 = vld [vmem:[%s4983_s3 + $0x228] sm:$0xff]  }
 0x159   : > { %3743 = vmatpush3.bf16.msra.mxu0 %v4085_v41  ;;  %3830 = vmatprep.subr.bf16.mxu1 %v4090_v61  ;;  %v4098_v41 = vld [vmem:[#allocation2 + $0x20] ss:$8 sps:$4 sm:$0xff]  }
 0x15a   : > { %3744 = vmatprep.subr.bf16.mxu0 %v4087_v26  ;;  %v2194_v53 = vsel %vm4451_vm8, %v2189_v42, %v2193_v27  ;;  %v2263_v27 = vrot.slane %v2261_v33, 5 }
 0x15c   : > { %3831 = vmatpush3.bf16.msra.mxu1 %v4090_v61  ;;  %v4104_v61 = vld [vmem:[%s4983_s3 + $0x1d8] sm:$0xff]  }
 0x15d   : > { %3745 = vmatpush3.bf16.msra.mxu0 %v4087_v26  ;;  %3832 = vmatprep.subr.bf16.mxu1 %v4091_v32  ;;  %v2203_v26 = vrot.slane %v2202_v47, 4  ;;  %v2268_v47 = vrot.slane %v2266_v22, 4  ;;  %v2452_v22 = vld [vmem:[#allocation2 + $0x38] sm:$0xe] }
 0x15e   : > { %3746 = vmatprep.subr.bf16.mxu0 %v4089_v4 }
 0x15f   : > { %3825 = vmatmul.mubr.bf16.gmra.mrb[4].mxu1 %v3378_v20  ;;  %v2208_v59 = vsel %vm4451_vm8, %v2203_v26, %v2207_v52  ;;  %v2213_v20 = vshll.u32 %v2169_v5, 16  ;;  %v4109_v52 = vld [vmem:[%s4983_s3 + $0x200] sm:$0xff]  }
 0x160   : > { %3844 = vmatprep.mubr.bf16.mxu1 %v4092_v36  ;;  %3833 = vmatpush3.bf16.msra.mxu1 %v4091_v32  ;;  %v3431_v62 = vcombine.low %v2194_v53, %v2208_v59  ;;  %v2238_v32 = vshrl.u32 %v2173_v57, 16  ;;  %v2226_v36 = vrot.slane %v2224_v8, 4  ;;  %v4781_v53 = vld [vmem:[#allocation2 + $0x4c] sm:$0x1] }
 0x161   : > { %3747 = vmatpush3.bf16.msra.mxu0 %v4089_v4  ;;  %3834 = vmatprep.subr.bf16.mxu1 %v4093_v9  ;;  %v4105_v4 = vld [vmem:[%s4983_s3 + $0x1e0] sm:$0xff]  }
 0x162   : > { %v2240_v50 = vrot.slane %v2238_v32, 4 }
 0x164   : > { %3749 = vmatmul.mubr.bf16.vlgmr.msra.gmra.mrb[8].mxu0 %v3284_v17  ;;  %3835 = vmatpush3.bf16.msra.mxu1 %v4093_v9  ;;  %v4096_v17 = vld [vmem:[%s4983_s3 + $0x1b0] sm:$0xff]   ;;  %v2229_v9 = vrot.slane %v2227_v60, 5  ;;  %v2244_v63 = vor.u32 %v2243_v0, %v2240_v50  ;;  %v2447_v60 = vld [vmem:[#allocation2 + $0x10] sm:$0xe]  ;;  %v3444_v0 = vrot.slane %v2448_v25, 9 }
 0x165   : > { %3752 = vmatprep.mubr.bf16.mxu0 %v3285_v13  ;;  %3836 = vmatprep.subr.bf16.mxu1 %v4094_v54  ;;  %v2257_v13 = vrot.slane %v2255_v3, 5  ;;  %v4111_v50 = vld [vmem:[%s4983_s3 + $0x210] sm:$0xff]  }
 0x166   : > { %v2245_v42 = vrot.slane %v2244_v63, 4  ;;  %v2449_v63 = vld [vmem:[#allocation2 + $0x20] sm:$0xe] }
 0x167   : > { %v2258_v23 = vor.u32 %v2257_v13, %v2254_v18  ;;  %v2477_v18 = vrot.slane %v4740_v15, 5 }
 0x168   : > { %3837 = vmatpush3.bf16.msra.mxu1 %v4094_v54  ;;  %v2215_v54 = vrot.slane %v2213_v20, 5 }
 0x169   : > { %3838 = vmatprep.subr.bf16.mxu1 %v4095_v7 }
 0x16c   : > { %3753 = vmatmul.mubr.bf16.gmra.mrb[12].mxu0 %v3286_v28  ;;  %3839 = vmatpush3.bf16.msra.mxu1 %v4095_v7  ;;  %v4766_v7 = vld [vmem:[#allocation2 + $0x24] sm:$0x1]  ;;  %v4768_v28 = vld [vmem:[#allocation2 + $0x2c] sm:$0x1] }
 0x16d   : > { %2824 = vmatprep.mubr.bf16.mxu0 %v4177_v16  ;;  %3840 = vmatprep.subr.bf16.mxu1 %v4096_v17  ;;  %v2233_v14 = vshll.u32 %v4768_v28, 16  ;;  %v2219_v35 = vshll.u32 %v4766_v7, 16 }
 0x16f   : > { %v2235_v39 = vrot.slane %v2233_v14, 5  ;;  %v2451_v14 = vld [vmem:[#allocation2 + $0x30] sm:$0xe] }
 0x170   : > { %3841 = vmatpush3.bf16.msra.mxu1 %v4096_v17  ;;  %v2230_v17 = vor.u32 %v2229_v9, %v2226_v36  ;;  %v3443_v36 = vrot.slane %v2447_v60, 9  ;;  %v2473_v9 = vrot.slane %v4738_v37, 5  ;;  %v3447_v33 = vrot.slane %v2451_v14, 9  ;;  %v4132_v60 = vld [vmem:[%s4985_s5 + $0x50] ss:$8 sps:$4 sm:$0xff]  }
 0x171   : > { %3842 = vmatprep.subr.bf16.mxu1 %v4097_v6 }
 0x174   : > { %3843 = vmatpush3.bf16.msra.mxu1 %v4097_v6  ;;  %v2269_v6 = vshll.u32 %v2177_v51, 16 }
 0x175   : > { %3852 = vmatprep.subr.bf16.mxu1 %v4099_v34 }
 0x177   : > { %3845 = vmatmul.mubr.bf16.vlgmr.msra.gmra.mrb[0].mxu1 %v4098_v41  ;;  %v2285_v41 = vrot.slane %v2283_v58, 5  ;;  %v4115_v58 = vld [vmem:[%s4983_s3 + $0x230] sm:$0xff]  }
 0x178   : > { %3848 = vmatprep.mubr.bf16.mxu1 %v4100_v43  ;;  %3853 = vmatpush3.bf16.msra.mxu1 %v4099_v34  ;;  %v2216_v34 = vor.u32 %v2215_v54, %v2212_v11  ;;  %v2271_v43 = vrot.slane %v2269_v6, 5  ;;  %v2478_v11 = vsel %vm4604_vm11, %v3444_v0, %v2477_v18  ;;  %v4112_v54 = vld [vmem:[%s4983_s3 + $0x218] sm:$0xff]  }
 0x179   : > { %3854 = vmatprep.subr.bf16.mxu1 %v4101_v45  ;;  %v2286_v59 = vor.u32 %v2285_v41, %v2282_v38  ;;  %v4116_v6 = vld [vmem:[%s4983_s3 + $0x238] sm:$0xff]   ;;  %v3445_v38 = vrot.slane %v2449_v63, 9  ;;  %v2481_v41 = vrot.slane %v4766_v7, 5 }
 0x17a   : > { %v2217_v26 = vrot.slane %v2216_v34, 4  ;;  %v2272_v57 = vor.u32 %v2271_v43, %v2268_v47  ;;  %v2489_v34 = vrot.slane %v4770_v44, 5  ;;  %v2453_v43 = vld [vmem:[#allocation2 + $0x40] sm:$0xe] }
 0x17b   : > { %v2287_v30 = vrot.slane %v2286_v59, 4  ;;  %v2482_v44 = vsel %vm4604_vm11, %v3445_v38, %v2481_v41  ;;  %v3449_v7 = vrot.slane %v2453_v43, 9 }
 0x17c   : > { %3855 = vmatpush3.bf16.msra.mxu1 %v4101_v45  ;;  %v2231_v45 = vrot.slane %v2230_v17, 4  ;;  %v2273_v31 = vrot.slane %v2272_v57, 4  ;;  %v2450_v17 = vld [vmem:[#allocation2 + $0x28] sm:$0xe]  ;;  %v2490_v47 = vsel %vm4604_vm11, %v3447_v33, %v2489_v34  ;;  %v4128_v57 = vld [vmem:[%s4985_s5 + $0x34] ss:$8 sps:$4 sm:$0xff]  }
 0x17d   : > { %3856 = vmatprep.subr.bf16.mxu1 %v4103_v49  ;;  %v3446_v29 = vrot.slane %v2450_v17, 9 }
 0x17e   : > { %v2236_v2 = vsel %vm4451_vm8, %v2231_v45, %v2235_v39  ;;  %v2454_v39 = vld [vmem:[#allocation2 + $0x48] sm:$0xe] }
 0x17f   : > { %3849 = vmatmul.mubr.bf16.gmra.mrb[4].mxu1 %v4102_v56  ;;  %v4786_v56 = vld [vmem:[#allocation2 + $0x44] sm:$0x1] }
 0x180   : > { %3857 = vmatpush3.bf16.msra.mxu1 %v4103_v49  ;;  %3868 = vmatprep.mubr.bf16.mxu1 %v3431_v62  ;;  %v2259_v49 = vrot.slane %v2258_v23, 4  ;;  %v2221_v62 = vrot.slane %v2219_v35, 5  ;;  %v2275_v1 = vshll.u32 %v4786_v56, 16  ;;  %v2485_v23 = vrot.slane %v4768_v28, 5 }
 0x181   : > { %3858 = vmatprep.subr.bf16.mxu1 %v4104_v61  ;;  %v2493_v35 = vrot.slane %v4773_v21, 5 }
 0x182   : > { %v2264_v5 = vsel %vm4451_vm8, %v2259_v49, %v2263_v27  ;;  %v2222_v8 = vsel %vm4451_vm8, %v2217_v26, %v2221_v62  ;;  %v2277_v20 = vrot.slane %v2275_v1, 5  ;;  %v2486_v45 = vsel %vm4604_vm11, %v3446_v29, %v2485_v23  ;;  %v4125_v62 = vld [vmem:[%s4985_s5 + $0x24] ss:$8 sps:$4 sm:$0xff]   ;;  %v4126_v1 = vld [vmem:[%s4985_s5 + $0x30] ss:$8 sps:$4 sm:$0xff]  }
 0x183   : > { %v3432_v32 = vcombine.low %v2222_v8, %v2236_v2  ;;  %v3468_v21 = vcombine.low %v2482_v44, %v2486_v45  ;;  %v2497_v49 = vrot.slane %v4786_v56, 5  ;;  %v2501_v27 = vrot.slane %v4781_v53, 5  ;;  %v4119_v56 = vld [vmem:[%s4985_s5 + $0x4] ss:$8 sps:$4 sm:$0xff]   ;;  %v4123_v2 = vld [vmem:[%s4985_s5 + $0x20] ss:$8 sps:$4 sm:$0xff]  }
 0x184   : > { %3859 = vmatpush3.bf16.msra.mxu1 %v4104_v61  ;;  %v2289_v61 = vshll.u32 %v4781_v53, 16  ;;  %v2278_v13 = vsel %vm4451_vm8, %v2273_v31, %v2277_v20  ;;  %v4122_v53 = vld [vmem:[%s4985_s5 + $0x14] ss:$8 sps:$4 sm:$0xff]   ;;  %2792 = vmatprep.subr.bf16.mxu0 %v4119_v56  ;;  %v4143_v31 = vld [vmem:[%s4987_s7 + $0x4] ss:$8 sps:$4 sm:$0xff]  }
 0x185   : > { %3860 = vmatprep.subr.bf16.mxu1 %v4105_v4  ;;  %v2498_v26 = vsel %vm4604_vm11, %v3449_v7, %v2497_v49  ;;  %v4134_v8 = vld [vmem:[%s4985_s5 + $0x54] ss:$8 sps:$4 sm:$0xff]   ;;  %v4144_v7 = vld [vmem:[%s4987_s7 + $0x10] ss:$8 sps:$4 sm:$0xff]   ;;  %v4147_v56 = vld [vmem:[%s4987_s7 + $0x20] ss:$8 sps:$4 sm:$0xff]  }
 0x188   : > { %3861 = vmatpush3.bf16.msra.mxu1 %v4105_v4  ;;  %v2250_v4 = vsel %vm4451_vm8, %v2245_v42, %v2249_v46  ;;  %v3450_v42 = vrot.slane %v2454_v39, 9 }
 0x189   : > { %3862 = vmatprep.subr.bf16.mxu1 %v4106_v40  ;;  %v3433_v3 = vcombine.low %v2250_v4, %v2264_v5  ;;  %v4131_v4 = vld [vmem:[%s4985_s5 + $0x44] ss:$8 sps:$4 sm:$0xff]   ;;  %v4129_v5 = vld [vmem:[%s4985_s5 + $0x40] ss:$8 sps:$4 sm:$0xff]  }
 0x18c   : > { %3863 = vmatpush3.bf16.msra.mxu1 %v4106_v40  ;;  %v2291_v40 = vrot.slane %v2289_v61, 5  ;;  %v4117_v61 = vld [vmem:[%s4985_s5] ss:$8 sps:$4 sm:$0xff]  }
 0x18d   : > { %3864 = vmatprep.subr.bf16.mxu1 %v4107_v24  ;;  %2793 = vmatpush1.bf16.msra.mxu0 %v4117_v61 }
 0x18e   : > { %v2292_v51 = vsel %vm4451_vm8, %v2287_v30, %v2291_v40  ;;  %2794 = vmatprep.subr.bf16.mxu0 %v4122_v53  ;;  %v4140_v30 = vld [vmem:[%s4985_s5 + $0x74] ss:$8 sps:$4 sm:$0xff]  }
 0x18f   : > { %v3434_v37 = vcombine.low %v2278_v13, %v2292_v51  ;;  %v3479_v51 = vld [vmem:[%s4984_s4] ss:$0 sm:$0xff] }
 0x190   : > { %3865 = vmatpush3.bf16.msra.mxu1 %v4107_v24  ;;  %v2474_v24 = vsel %vm4604_vm11, %v3443_v36, %v2473_v9 }
 0x191   : > { %3866 = vmatprep.subr.bf16.mxu1 %v4108_v19  ;;  %v3467_v15 = vcombine.low %v2474_v24, %v2478_v11  ;;  %2795 = vmatpush1.bf16.msra.mxu0 %v4120_v12  ;;  %v4152_v12 = vld [vmem:[%s4987_s7 + $0x34] ss:$8 sps:$4 sm:$0xff]  }
 0x192   : > { %2796 = vmatprep.subr.bf16.mxu0 %v4125_v62 }
 0x194   : > { %3867 = vmatpush3.bf16.msra.mxu1 %v4108_v19  ;;  %v3448_v19 = vrot.slane %v2452_v22, 9 }
 0x195   : > { %3876 = vmatprep.subr.bf16.mxu1 %v4109_v52  ;;  %2797 = vmatpush1.bf16.msra.mxu0 %v4123_v2  ;;  %v4150_v2 = vld [vmem:[%s4987_s7 + $0x30] ss:$8 sps:$4 sm:$0xff]  }
 0x196   : > { %v2494_v28 = vsel %vm4604_vm11, %v3448_v19, %v2493_v35  ;;  %2798 = vmatprep.subr.bf16.mxu0 %v4128_v57  ;;  %v4141_v35 = vld [vmem:[%s4987_s7] ss:$8 sps:$4 sm:$0xff]   ;;  %v4155_v57 = vld [vmem:[%s4987_s7 + $0x44] ss:$8 sps:$4 sm:$0xff]  }
 0x197   : > { %3869 = vmatmul.mubr.bf16.vlgmr.msra.gmra.mrb[0].mxu1 %v3432_v32  ;;  %v3469_v46 = vcombine.low %v2490_v47, %v2494_v28  ;;  %v4135_v32 = vld [vmem:[%s4985_s5 + $0x60] ss:$8 sps:$4 sm:$0xff]   ;;  %v4146_v47 = vld [vmem:[%s4987_s7 + $0x14] ss:$8 sps:$4 sm:$0xff]  }
 0x198   : > { %3872 = vmatprep.mubr.bf16.mxu1 %v3433_v3  ;;  %3877 = vmatpush3.bf16.msra.mxu1 %v4109_v52  ;;  %v2502_v52 = vsel %vm4604_vm11, %v3450_v42, %v2501_v27  ;;  %v4138_v3 = vld [vmem:[%s4985_s5 + $0x70] ss:$8 sps:$4 sm:$0xff]   ;;  %v4149_v27 = vld [vmem:[%s4987_s7 + $0x24] ss:$8 sps:$4 sm:$0xff]  }
 0x199   : > { %3878 = vmatprep.subr.bf16.mxu1 %v4110_v10  ;;  %v3470_v59 = vcombine.low %v2498_v26, %v2502_v52  ;;  %2799 = vmatpush1.bf16.msra.mxu0 %v4126_v1  ;;  %v4153_v1 = vld [vmem:[%s4987_s7 + $0x40] ss:$8 sps:$4 sm:$0xff]  }
 0x19a   : > { %2800 = vmatprep.subr.bf16.mxu0 %v4131_v4  ;;  %v4158_v4 = vld [vmem:[%s4987_s7 + $0x54] ss:$8 sps:$4 sm:$0xff]  }
 0x19c   : > { %3879 = vmatpush3.bf16.msra.mxu1 %v4110_v10  ;;  %v4137_v10 = vld [vmem:[%s4985_s5 + $0x64] ss:$8 sps:$4 sm:$0xff]  }
 0x19d   : > { %3880 = vmatprep.subr.bf16.mxu1 %v4111_v50  ;;  %2801 = vmatpush1.bf16.msra.mxu0 %v4129_v5  ;;  %v4156_v5 = vld [vmem:[%s4987_s7 + $0x50] ss:$8 sps:$4 sm:$0xff]  }
 0x19e   : > { %2802 = vmatprep.subr.bf16.mxu0 %v4134_v8  ;;  %v4161_v8 = vld [vmem:[%s4987_s7 + $0x64] ss:$8 sps:$4 sm:$0xff]  }
 0x19f   : > { %3873 = vmatmul.mubr.bf16.gmra.mrb[4].mxu1 %v3434_v37 }
 0x1a0   : > { %3881 = vmatpush3.bf16.msra.mxu1 %v4111_v50  ;;  %3892 = vmatprep.mubr.bf16.mxu1 %v3467_v15 }
 0x1a1   : > { %3882 = vmatprep.subr.bf16.mxu1 %v4112_v54  ;;  %2803 = vmatpush1.bf16.msra.mxu0 %v4132_v60  ;;  %v4159_v60 = vld [vmem:[%s4987_s7 + $0x60] ss:$8 sps:$4 sm:$0xff]  }
 0x1a2   : > { %2804 = vmatprep.subr.bf16.mxu0 %v4137_v10  ;;  %v4162_v10 = vld [vmem:[%s4987_s7 + $0x70] ss:$8 sps:$4 sm:$0xff]  }
 0x1a4   : > { %3883 = vmatpush3.bf16.msra.mxu1 %v4112_v54 }
 0x1a5   : > { %3884 = vmatprep.subr.bf16.mxu1 %v4113_v48  ;;  %2805 = vmatpush1.bf16.msra.mxu0 %v4135_v32  ;;  %v4164_v32 = vld [vmem:[%s4987_s7 + $0x74] ss:$8 sps:$4 sm:$0xff]  }
 0x1a6   : > { %2806 = vmatprep.subr.bf16.mxu0 %v4140_v30  ;;  %v4165_v30 = vld [vmem:[%s4251_s20] sm:$0xff]  }
 0x1a8   : > { %3885 = vmatpush3.bf16.msra.mxu1 %v4113_v48 }
 0x1a9   : > { %3886 = vmatprep.subr.bf16.mxu1 %v4114_v55  ;;  %2807 = vmatpush1.bf16.msra.mxu0 %v4138_v3  ;;  %v4166_v3 = vld [vmem:[%s4251_s20 + $0x8] sm:$0xff]  }
 0x1aa   : > { %2973 = vmatprep.subr.bf16.mxu0 %v4143_v31  ;;  %v4167_v31 = vld [vmem:[%s4251_s20 + $0x10] sm:$0xff]  }
 0x1ac   : > { %3887 = vmatpush3.bf16.msra.mxu1 %v4114_v55 }
 0x1ad   : > { %3888 = vmatprep.subr.bf16.mxu1 %v4115_v58 }
 0x1b0   : > { %3889 = vmatpush3.bf16.msra.mxu1 %v4115_v58 }
 0x1b1   : > { %3890 = vmatprep.subr.bf16.mxu1 %v4116_v6 }
 0x1b4   : > { %3891 = vmatpush3.bf16.msra.mxu1 %v4116_v6 }
 0x1b7   : > { %3893 = vmatmul.mubr.bf16.vlgmr.msra.gmra.mrb[0].mxu1 %v3468_v21 }
 0x1b8   : > { %3896 = vmatprep.mubr.bf16.mxu1 %v3469_v46 }
 0x1bf   : > { %3897 = vmatmul.mubr.bf16.gmra.mrb[4].mxu1 %v3470_v59 }
 0x237   : > { %v3750_v20 = vpop.f32.mrb[8].mxu0 }
 0x238   : > { %v1293_v40 = vpop.f32.mrb[9].mxu0 }
 0x239   : > { %v3751_v25 = vpop.f32.mrb[10].mxu0 }
 0x23a   : > { %v1296_v36 = vpop.f32.mrb[11].mxu0 }
 0x23f   : > { %v3754_v9 = vpop.f32.mrb[12].mxu0 }
 0x240   : > { %v1309_v50 = vpop.f32.mrb[13].mxu0 }
 0x241   : > { %v3755_v0 = vpop.f32.mrb[14].mxu0 }
 0x242   : > { %v1312_v18 = vpop.f32.mrb[15].mxu0 }
 0x28a   : > { %v3894_v13 = vpop.f32.mrb[0].mxu1 }
 0x28b   : > { %v3900_v24 = vadd.f32 %v3894_v13, %v3750_v20  ;;  %v2618_v37 = vpop.f32.mrb[1].mxu1  ;;  %v4168_v20 = vld [vmem:[%s4251_s20 + $0x18] sm:$0xff]   ;;  %s3523_s20 = sshll.u32 %s4999_s10, 6 }
 0x28c   : > { %v3901_v11 = vadd.f32 %v2618_v37, %v1293_v40  ;;  %v3895_v54 = vpop.f32.mrb[2].mxu1  ;;  %v2702_v40 = vlaneseq  ;;  %s4967_s14 = scalar_lea.vmem %s4989_s9, %s3523_s20 }
 0x28d   : > { %v2666_v15 = vadd.f32 %v3900_v24, %v3479_v51  ;;  %v3902_v48 = vadd.f32 %v3895_v54, %v3751_v25  ;;  %v2621_v55 = vpop.f32.mrb[3].mxu1 }
 0x28e   : > { %v2664_v58 = vadd.f32 %v3901_v11, %v3479_v51  ;;  %v3903_v17 = vadd.f32 %v2621_v55, %v1296_v36  ;;  %v2703_v25 = vshrl.u32 %v2702_v40, 7 }
 0x28f   : > { %v2667_v14 = vadd.f32 %v3902_v48, %v3479_v51  ;;  %v2674_v6 = vmax.f32 %v2666_v15, 0.0 }
 0x290   : > { %v2665_v22 = vadd.f32 %v3903_v17, %v3479_v51  ;;  %v2672_v29 = vmax.f32 %v2664_v58, 0.0  ;;  %v2704_v36 = vsub.s32 0, %v2703_v25 }
 0x291   : > { %v2675_v63 = vmax.f32 %v2667_v14, 0.0 }
 0x292   : > { %v2673_v23 = vmax.f32 %v2665_v22, 0.0  ;;  %v3898_v33 = vpop.f32.mrb[4].mxu1 }
 0x293   : > { %v3904_v34 = vadd.f32 %v3898_v33, %v3754_v9  ;;  %v2634_v19 = vpop.f32.mrb[5].mxu1  ;;  %v2681_v38 = vpack.c.bf16 %v2675_v63, %v2674_v6  ;;  %v2700_v9 = vld [vmem:[%s4986_s6] sm:$0x3] }
 0x294   : > { %v2680_v41 = vpack.c.bf16 %v2673_v23, %v2672_v29  ;;  %v3905_v45 = vadd.f32 %v2634_v19, %v1309_v50  ;;  %v3899_v39 = vpop.f32.mrb[6].mxu1  ;;  %v2881_v50 = vld [vmem:[%s4988_s8] sm:$0x3] }
 0x295   : > { %v2670_v28 = vadd.f32 %v3904_v34, %v3479_v51  ;;  %v3906_v43 = vadd.f32 %v3899_v39, %v3755_v0  ;;  %v2637_v44 = vpop.f32.mrb[7].mxu1  ;;  %v2708_v0 = vsub.s32 1, %v2703_v25  ;;  %v2886_v13 = vrot.slane %v2881_v50, %v2704_v36 }
 0x296   : > { %v2668_v21 = vadd.f32 %v3905_v45, %v3479_v51  ;;  %v3907_v42 = vadd.f32 %v2637_v44, %v1312_v18  ;;  %2825 = vmatmul.mubr.bf16.vlgmr.msra.gmra.mrb[16].mxu0 %v2680_v41  ;;  %v2705_v18 = vrot.slane %v2700_v9, %v2704_v36 }
 0x297   : > { %v2671_v46 = vadd.f32 %v3906_v43, %v3479_v51  ;;  %2974 = vmatpush1.bf16.msra.mxu0 %v4141_v35  ;;  %2834 = vmatprep.mubr.bf16.mxu0 %v4177_v16  ;;  %v2678_v26 = vmax.f32 %v2670_v28, 0.0  ;;  %v2890_v24 = vrot.slane %v2881_v50, %v2708_v0 }
 0x298   : > { %v2669_v49 = vadd.f32 %v3907_v42, %v3479_v51  ;;  %2975 = vmatprep.subr.bf16.mxu0 %v4146_v47  ;;  %v2676_v59 = vmax.f32 %v2668_v21, 0.0  ;;  %v2709_v51 = vrot.slane %v2700_v9, %v2708_v0 }
 0x299   : > { %v2679_v52 = vmax.f32 %v2671_v46, 0.0 }
 0x29a   : > { %v2677_v61 = vmax.f32 %v2669_v49, 0.0  ;;  %v3910_v37 = vadd.f32 %v2890_v24, %v2709_v51 }
 0x29b   : > { %2976 = vmatpush1.bf16.msra.mxu0 %v4144_v7  ;;  %v2683_v53 = vpack.c.bf16 %v2679_v52, %v2678_v26 }
 0x29c   : > { %2977 = vmatprep.subr.bf16.mxu0 %v4149_v27  ;;  %v2682_v62 = vpack.c.bf16 %v2677_v61, %v2676_v59 }
 0x29e   : > { %2835 = vmatmul.mubr.bf16.gmra.mrb[20].mxu0 %v2681_v38 }
 0x29f   : > { %2978 = vmatpush1.bf16.msra.mxu0 %v4147_v56  ;;  %2844 = vmatprep.mubr.bf16.mxu0 %v4177_v16 }
 0x2a0   : > { %2979 = vmatprep.subr.bf16.mxu0 %v4152_v12 }
 0x2a3   : > { %2980 = vmatpush1.bf16.msra.mxu0 %v4150_v2 }
 0x2a4   : > { %2981 = vmatprep.subr.bf16.mxu0 %v4155_v57 }
 0x2a6   : > { %2845 = vmatmul.mubr.bf16.gmra.mrb[24].mxu0 %v2682_v62 }
 0x2a7   : > { %2982 = vmatpush1.bf16.msra.mxu0 %v4153_v1  ;;  %2854 = vmatprep.mubr.bf16.mxu0 %v4177_v16 }
 0x2a8   : > { %2983 = vmatprep.subr.bf16.mxu0 %v4158_v4 }
 0x2ab   : > { %2984 = vmatpush1.bf16.msra.mxu0 %v4156_v5 }
 0x2ac   : > { %2985 = vmatprep.subr.bf16.mxu0 %v4161_v8 }
 0x2ae   : > { %2855 = vmatmul.mubr.bf16.gmra.mrb[28].mxu0 %v2683_v53 }
 0x2af   : > { %2986 = vmatpush1.bf16.msra.mxu0 %v4159_v60  ;;  %3005 = vmatprep.mubr.bf16.mxu0 %v4177_v16 }
 0x2b0   : > { %2987 = vmatprep.subr.bf16.mxu0 %v4164_v32 }
 0x2b3   : > { %2988 = vmatpush1.bf16.msra.mxu0 %v4162_v10 }
 0x2b6   : > { %3006 = vmatmul.mubr.bf16.vlgmr.msra.gmra.mrb[16].mxu0 %v4165_v30 }
 0x2b7   : > { %3015 = vmatprep.mubr.bf16.mxu0 %v4177_v16 }
 0x2be   : > { %3016 = vmatmul.mubr.bf16.gmra.mrb[20].mxu0 %v4166_v3 }
 0x2bf   : > { %3025 = vmatprep.mubr.bf16.mxu0 %v4177_v16 }
 0x2c6   : > { %3026 = vmatmul.mubr.bf16.gmra.mrb[24].mxu0 %v4167_v31 }
 0x2c7   : > { %3035 = vmatprep.mubr.bf16.mxu0 %v4177_v16  ;;  %v3908_v16 = vadd.f32 %v2886_v13, %v2705_v18 }
 0x2ce   : > { %3036 = vmatmul.mubr.bf16.gmra.mrb[28].mxu0 %v4168_v20 }
 0x389   : > { %v3007_v11 = vpop.f32.mrb[16].mxu0 }
 0x38a   : > { %v3909_v54 = vadd.f32 %v3908_v16, %v3007_v11  ;;  %v3009_v15 = vpop.f32.mrb[17].mxu0 }
 0x38b   : > { %v3911_v48 = vadd.f32 %v3910_v37, %v3009_v15  ;;  %v3011_v55 = vpop.f32.mrb[18].mxu0 }
 0x38c   : > { %v3062_v58 = vmax.f32 %v3909_v54, 0.0  ;;  %v3913_v17 = vadd.f32 %v3908_v16, %v3011_v55  ;;  %v3013_v14 = vpop.f32.mrb[19].mxu0 }
 0x38d   : > { %v3063_v22 = vmax.f32 %v3911_v48, 0.0  ;;  %v3915_v6 = vadd.f32 %v3910_v37, %v3013_v14 }
 0x38e   : > { %v3064_v63 = vmax.f32 %v3913_v17, 0.0 }
 0x38f   : > { %v3532_v29 = vpack.c.bf16 %v3063_v22, %v3062_v58  ;;  %v3065_v23 = vmax.f32 %v3915_v6, 0.0 }
 0x391   : > { %3126 = vst [vmem:[%s4967_s14] sm:$0xff] %v3532_v29  ;;  %v3533_v33 = vpack.c.bf16 %v3065_v23, %v3064_v63  ;;  %v3017_v34 = vpop.f32.mrb[20].mxu0 }
 0x392   : > { %v3917_v19 = vadd.f32 %v3908_v16, %v3017_v34  ;;  %v3019_v35 = vpop.f32.mrb[21].mxu0 }
 0x393   : > { %3127 = vst [vmem:[%s4967_s14 + $0x8] sm:$0xff] %v3533_v33  ;;  %v3919_v38 = vadd.f32 %v3910_v37, %v3019_v35  ;;  %v3021_v41 = vpop.f32.mrb[22].mxu0 }
 0x394   : > { %v3066_v45 = vmax.f32 %v3917_v19, 0.0  ;;  %v3921_v39 = vadd.f32 %v3908_v16, %v3021_v41  ;;  %v3023_v47 = vpop.f32.mrb[23].mxu0 }
 0x395   : > { %v3067_v28 = vmax.f32 %v3919_v38, 0.0  ;;  %v3923_v43 = vadd.f32 %v3910_v37, %v3023_v47 }
 0x396   : > { %v3068_v44 = vmax.f32 %v3921_v39, 0.0 }
 0x397   : > { %v3534_v21 = vpack.c.bf16 %v3067_v28, %v3066_v45  ;;  %v3069_v42 = vmax.f32 %v3923_v43, 0.0 }
 0x399   : > { %3128 = vst [vmem:[%s4967_s14 + $0x10] sm:$0xff] %v3534_v21  ;;  %v3535_v46 = vpack.c.bf16 %v3069_v42, %v3068_v44  ;;  %v3027_v7 = vpop.f32.mrb[24].mxu0 }
 0x39a   : > { %v3925_v49 = vadd.f32 %v3908_v16, %v3027_v7  ;;  %v3029_v27 = vpop.f32.mrb[25].mxu0 }
 0x39b   : > { %3129 = vst [vmem:[%s4967_s14 + $0x18] sm:$0xff] %v3535_v46  ;;  %v3927_v26 = vadd.f32 %v3910_v37, %v3029_v27  ;;  %v3031_v52 = vpop.f32.mrb[26].mxu0 }
 0x39c   : > { %v3070_v59 = vmax.f32 %v3925_v49, 0.0  ;;  %v3929_v61 = vadd.f32 %v3908_v16, %v3031_v52  ;;  %v3033_v56 = vpop.f32.mrb[27].mxu0 }
 0x39d   : > { %v3071_v53 = vmax.f32 %v3927_v26, 0.0  ;;  %v3931_v12 = vadd.f32 %v3910_v37, %v3033_v56 }
 0x39e   : > { %v3072_v62 = vmax.f32 %v3929_v61, 0.0 }
 0x39f   : > { %v3536_v2 = vpack.c.bf16 %v3071_v53, %v3070_v59  ;;  %v3073_v57 = vmax.f32 %v3931_v12, 0.0 }
 0x3a1   : > { %3130 = vst [vmem:[%s4967_s14 + $0x20] sm:$0xff] %v3536_v2  ;;  %v3537_v1 = vpack.c.bf16 %v3073_v57, %v3072_v62  ;;  %v3037_v4 = vpop.f32.mrb[28].mxu0 }
 0x3a2   : > { %v3933_v5 = vadd.f32 %v3908_v16, %v3037_v4  ;;  %v3039_v8 = vpop.f32.mrb[29].mxu0 }
 0x3a3   : > { %3131 = vst [vmem:[%s4967_s14 + $0x28] sm:$0xff] %v3537_v1  ;;  %v3935_v60 = vadd.f32 %v3910_v37, %v3039_v8  ;;  %v3041_v32 = vpop.f32.mrb[30].mxu0 }
 0x3a4   : > { %v3074_v10 = vmax.f32 %v3933_v5, 0.0  ;;  %v3937_v30 = vadd.f32 %v3908_v16, %v3041_v32  ;;  %v3043_v3 = vpop.f32.mrb[31].mxu0 }
 0x3a5   : > { %v3075_v31 = vmax.f32 %v3935_v60, 0.0  ;;  %v3939_v20 = vadd.f32 %v3910_v37, %v3043_v3 }
 0x3a6   : > { %v3076_v40 = vmax.f32 %v3937_v30, 0.0 }
 0x3a7   : > { %v3538_v25 = vpack.c.bf16 %v3075_v31, %v3074_v10  ;;  %v3077_v36 = vmax.f32 %v3939_v20, 0.0 }
 0x3a9   : > { %3132 = vst [vmem:[%s4967_s14 + $0x30] sm:$0xff] %v3538_v25  ;;  %v3539_v9 = vpack.c.bf16 %v3077_v36, %v3076_v40 }
 0x3ab   : > { %3133 = vst [vmem:[%s4967_s14 + $0x38] sm:$0xff] %v3539_v9 }
 0x3ac PF: > { %s19_s30 = sadd.s32 1, %s4175_s30  }
 0x3ad   : > { %p16_p4 = scmp.ge.s32.totalorder %s19_s30, 4  }
 0x3af   :  { %18 = sbr.rel (!%p16_p4) target bundleno = 1 (0x1), region = 96 }

// kernel: _lambda_.5
= control target key start
LH: loop header
LB: loop body
LE: loop exit
PB: predicated region body
PF: predicated region fallthrough
CT: control target
= control target key end

     0   :  { %s4268_s30 = smov 0   ;;  %s5050_s0 = inlined_call_operand.vmem [shape: bf16[2,8,8,256], index: 0, kind: input, shape index: {}]   ;;  %s5051_s1 = inlined_call_operand.vmem [shape: bf16[256,128], index: 1, kind: input, shape index: {}]   ;;  %s5052_s2 = inlined_call_operand.vmem [shape: f32[1,128], index: 2, kind: input, shape index: {}]   ;;  %s5053_s3 = inlined_call_operand.vmem [shape: bf16[9,128,128], index: 3, kind: input, shape index: {}]   ;;  %s5054_s4 = inlined_call_operand.vmem [shape: f32[1,128], index: 4, kind: input, shape index: {}]   ;;  %s5055_s5 = inlined_call_operand.vmem [shape: bf16[128,256], index: 5, kind: input, shape index: {}]   ;;  %s5056_s6 = inlined_call_operand.vmem [shape: f32[1,256], index: 6, kind: input, shape index: {}]   ;;  %s5057_s7 = inlined_call_operand.vmem [shape: bf16[256,128], index: 7, kind: input, shape index: {}]   ;;  %s5058_s8 = inlined_call_operand.vmem [shape: f32[1,128], index: 8, kind: input, shape index: {}]   ;;  %s5059_s9 = inlined_call_operand.vmem [shape: f32[2,8,128], index: 9, kind: output, shape index: {}]  }
   0x1 LB: > { %s3249_s10 = sadd.s32 4294967295, %s4215_s30   ;;  %p3253_p0 = scmp.ge.s32.totalorder %s4215_s30, 1  ;;  %s4215_s30 = sphi %s4268_s30, %s19_s30  }
   0x2   : > { %p287_p1 = scmp.lt.s32.totalorder %s4215_s30, 3 }
   0x4   : > { %p288_p2 = pnand %p3253_p0, %p287_p1 }
   0x5   : > { %v4053_v0 = vld [vmem:[%s5051_s1 + $0x40] sm:$0xff] (!%p288_p2)   ;;  %v4055_v2 = vld [vmem:[%s5051_s1 + $0x48] sm:$0xff] (!%p288_p2)   ;;  %p322_p3 = scmp.lt.s32.totalorder (!%p288_p2), %s3249_s10, 1  ;;  %v4057_v4 = vld [vmem:[%s5051_s1 + $0x50] sm:$0xff] (!%p288_p2)   ;;  %v4217_v34 = vmov (!%p288_p2), 0   ;;  %vm713_vm0 = vcmask (!%p288_p2), 1043456  }
   0x6   : > { %291 = sbr.rel (%p288_p2) target bundleno = 1155 (0x483), region = 56  ;;  %v4054_v1 = vld [vmem:[%s5051_s1] sm:$0xff] (!%p288_p2)   ;;  %3594 = vmatprep.subr.bf16.mxu0 (!%p288_p2), %v4053_v0  ;;  %v4056_v3 = vld [vmem:[%s5051_s1 + $0x8] sm:$0xff] (!%p288_p2)   ;;  %v4058_v5 = vld [vmem:[%s5051_s1 + $0x10] sm:$0xff] (!%p288_p2)   ;;  %590 = vst [vmem:[#allocation2 + $0x8] sm:$0xf] (!%p288_p2), %v4217_v34 }
   0x7   : > { %3595 = vmatpush3.bf16.msra.mxu0 (!%p288_p2), %v4054_v1  ;;  %v4059_v6 = vld [vmem:[%s5051_s1 + $0x58] sm:$0xff] (!%p288_p2)   ;;  %v4061_v8 = vld [vmem:[%s5051_s1 + $0x60] sm:$0xff] (!%p288_p2)   ;;  %v4063_v10 = vld [vmem:[%s5051_s1 + $0x68] sm:$0xff] (!%p288_p2)   ;;  %591 = vst [vmem:[#allocation2 + $0xc] sm:$0x1] (!%p288_p2), %v4217_v34  ;;  %vm719_vm2 = vcmask (!%p288_p2), 1040384  }
   0x8   : > { %3596 = vmatprep.subr.bf16.mxu0 (!%p288_p2), %v4055_v2  ;;  %v4060_v7 = vld [vmem:[%s5051_s1 + $0x18] sm:$0xff] (!%p288_p2)   ;;  %v4062_v9 = vld [vmem:[%s5051_s1 + $0x20] sm:$0xff] (!%p288_p2)   ;;  %v4064_v14 = vld [vmem:[%s5051_s1 + $0x28] sm:$0xff] (!%p288_p2)   ;;  %588 = vst [vmem:[#allocation2] sm:$0xf] (!%p288_p2), %v4217_v34  ;;  %vm1221_vm9 = vcmask (!%p288_p2), 1042432  }
   0x9   : > { %v4065_v15 = vld [vmem:[%s5051_s1 + $0x70] sm:$0xff] (!%p288_p2)   ;;  %v4067_v17 = vld [vmem:[%s5051_s1 + $0x78] sm:$0xff] (!%p288_p2)   ;;  %v4077_v32 = vld [vmem:[%s5053_s3 + $0xc0] sm:$0xff] (!%p288_p2)   ;;  %589 = vst [vmem:[#allocation2 + $0x4] sm:$0x1] (!%p288_p2), %v4217_v34  ;;  %vm1222_vm10 = vcmask (!%p288_p2), 1046532  }
   0xa   : > { %v4066_v16 = vld [vmem:[%s5051_s1 + $0x30] sm:$0xff] (!%p288_p2)   ;;  %v4068_v18 = vld [vmem:[%s5051_s1 + $0x38] sm:$0xff] (!%p288_p2)   ;;  %3836 = vmatprep.subr.bf16.mxu1 (!%p288_p2), %v4077_v32  ;;  %v4078_v33 = vld [vmem:[%s5053_s3 + $0xc8] sm:$0xff] (!%p288_p2)   ;;  %592 = vst [vmem:[#allocation2 + $0x10] sm:$0xf] (!%p288_p2), %v4217_v34 }
   0xb   : > { %3597 = vmatpush3.bf16.msra.mxu0 (!%p288_p2), %v4056_v3  ;;  %3837 = vmatpush3.bf16.msra.mxu1 (!%p288_p2), %v4077_v32  ;;  %593 = vst [vmem:[#allocation2 + $0x14] sm:$0x1] (!%p288_p2), %v4217_v34  ;;  %594 = vst [vmem:[#allocation2 + $0x18] sm:$0xf] (!%p288_p2), %v4217_v34  ;;  %v4079_v35 = vld [vmem:[%s5053_s3 + $0x40] sm:$0xff] (!%p288_p2)   ;;  %v4080_v36 = vld [vmem:[%s5053_s3 + $0xd0] sm:$0xff] (!%p288_p2)  }
   0xc   : > { %3598 = vmatprep.subr.bf16.mxu0 (!%p288_p2), %v4057_v4  ;;  %595 = vst [vmem:[#allocation2 + $0x1c] sm:$0x1] (!%p288_p2), %v4217_v34  ;;  %596 = vst [vmem:[#allocation2 + $0x20] sm:$0xf] (!%p288_p2), %v4217_v34  ;;  %3838 = vmatprep.subr.bf16.mxu1 (!%p288_p2), %v4078_v33  ;;  %v4081_v37 = vld [vmem:[%s5053_s3 + $0x48] sm:$0xff] (!%p288_p2)   ;;  %v4082_v38 = vld [vmem:[%s5053_s3 + $0xd8] sm:$0xff] (!%p288_p2)  }
   0xd   : > { %s5069_s10 = smov (!%p322_p3, %s3249_s10), 1  ;;  %597 = vst [vmem:[#allocation2 + $0x24] sm:$0x1] %v4217_v34  ;;  %598 = vst [vmem:[#allocation2 + $0x28] sm:$0xf] %v4217_v34  ;;  %v4083_v39 = vld [vmem:[%s5053_s3 + $0x50] sm:$0xff]  }
   0xe   : > { %s3585_s25 = sshll.u32 %s5069_s10, 6  ;;  %599 = vst [vmem:[#allocation2 + $0x2c] sm:$0x1] %v4217_v34  ;;  %600 = vst [vmem:[#allocation2 + $0x30] sm:$0xf] %v4217_v34  ;;  %v4084_v40 = vld [vmem:[%s5053_s3 + $0xe0] sm:$0xff]  }
   0xf   : > { %3599 = vmatpush3.bf16.msra.mxu0 %v4058_v5  ;;  %s4309_s13 = scalar_lea.vmem %s5050_s0, %s3585_s25  ;;  %601 = vst [vmem:[#allocation2 + $0x34] sm:$0x1] %v4217_v34  ;;  %602 = vst [vmem:[#allocation2 + $0x38] sm:$0xf] %v4217_v34  ;;  %3839 = vmatpush3.bf16.msra.mxu1 %v4078_v33  ;;  %v4085_v41 = vld [vmem:[%s5053_s3 + $0x58] sm:$0xff]   ;;  %v4086_v42 = vld [vmem:[%s5053_s3 + $0xe8] sm:$0xff]  }
  0x10   : > { %3600 = vmatprep.subr.bf16.mxu0 %v4059_v6  ;;  %v332_v11 = vld [vmem:[%s4309_s13] sm:$0xff]  ;;  %v333_v12 = vld [vmem:[%s4309_s13 + $0x8] sm:$0xff]  ;;  %v334_v19 = vld [vmem:[%s4309_s13 + $0x10] sm:$0xff]  ;;  %603 = vst [vmem:[#allocation2 + $0x3c] sm:$0x1] %v4217_v34  ;;  %3840 = vmatprep.subr.bf16.mxu1 %v4080_v36  ;;  %s3256_s27 = sshll.u32 %s5069_s10, 3 }
  0x11   : > { %v3259_v13 = vcombine.high %v332_v11, %v333_v12  ;;  %v335_v20 = vld [vmem:[%s4309_s13 + $0x18] sm:$0xff]  ;;  %v3258_v21 = vcombine.low %v332_v11, %v333_v12  ;;  %v336_v23 = vld [vmem:[%s4309_s13 + $0x20] sm:$0xff]  ;;  %v337_v24 = vld [vmem:[%s4309_s13 + $0x28] sm:$0xff]  ;;  %604 = vst [vmem:[#allocation2 + $0x40] sm:$0xf] %v4217_v34  ;;  %s330_s11 = scalar_lea.vmem %s5059_s9, %s3256_s27 }
  0x12   : > { %v3261_v22 = vcombine.high %v334_v19, %v335_v20  ;;  %v3260_v25 = vcombine.low %v334_v19, %v335_v20  ;;  %v3263_v26 = vcombine.high %v336_v23, %v337_v24  ;;  %v338_v27 = vld [vmem:[%s4309_s13 + $0x30] sm:$0xff]  ;;  %v339_v28 = vld [vmem:[%s4309_s13 + $0x38] sm:$0xff]  ;;  %v3262_v29 = vcombine.low %v336_v23, %v337_v24  ;;  %605 = vst [vmem:[#allocation2 + $0x44] sm:$0x1] %v4217_v34  ;;  %v4087_v43 = vld [vmem:[%s5053_s3 + $0x60] sm:$0xff]  }
  0x13   : > { %3601 = vmatpush3.bf16.msra.mxu0 %v4060_v7  ;;  %547 = vmatprep.mubr.bf16.mxu0 %v3259_v13  ;;  %v3265_v30 = vcombine.high %v338_v27, %v339_v28  ;;  %v3264_v31 = vcombine.low %v338_v27, %v339_v28  ;;  %606 = vst [vmem:[#allocation2 + $0x48] sm:$0xf] %v4217_v34  ;;  %607 = vst [vmem:[#allocation2 + $0x4c] sm:$0x1] %v4217_v34  ;;  %v4088_v44 = vld [vmem:[%s5053_s3 + $0xf0] sm:$0xff]   ;;  %v4090_v45 = vld [vmem:[%s5053_s3 + $0x68] sm:$0xff]  }
  0x14   : > { %3602 = vmatprep.subr.bf16.mxu0 %v4061_v8  ;;  %3841 = vmatpush3.bf16.msra.mxu1 %v4080_v36  ;;  %v4091_v46 = vld [vmem:[%s5053_s3 + $0xf8] sm:$0xff]   ;;  %v4092_v47 = vld [vmem:[%s5053_s3 + $0x70] sm:$0xff]   ;;  %v4408_v48 = vld [vmem:[%s5053_s3 + $0x100] sm:$0xff]   ;;  %vm714_vm1 = vsmask.f32 7938 }
  0x15   : > { %3842 = vmatprep.subr.bf16.mxu1 %v4082_v38  ;;  %v4095_v49 = vld [vmem:[%s5053_s3 + $0x78] sm:$0xff]   ;;  %v4417_v50 = vld [vmem:[%s5053_s3] sm:$0xff]   ;;  %v4427_v61 = vld [vmem:[#allocation2] sm:$0xf]  ;;  %vm720_vm3 = vsmask.f32 256 }
  0x16   : > { %v4423_v52 = vld [vmem:[%s5052_s2] ss:$0 sm:$0xff]  ;;  %v803_v2 = vshrl.u32 %v4427_v61, 16  ;;  %v806_v3 = vshll.u32 %v4427_v61, 16  ;;  %vm4432_vm4 = vmand %vm713_vm0, %vm714_vm1  ;;  %v716_v12 = vld [vmem:[#allocation2 + $0x8] sm:$0xf] }
  0x17   : > { %3603 = vmatpush3.bf16.msra.mxu0 %v4062_v9  ;;  %vm4438_vm5 = vmand %vm719_vm2, %vm720_vm3  ;;  %v4447_v33 = vld [vmem:[#allocation2 + $0x4] sm:$0x1]  ;;  %vm799_vm6 = vsmask.f32 3328  ;;  %vm800_vm7 = vsmask.f32 7440 }
  0x18   : > { %3604 = vmatprep.subr.bf16.mxu0 %v4063_v10  ;;  %3843 = vmatpush3.bf16.msra.mxu1 %v4082_v38  ;;  %v805_v19 = vrot.slane %v803_v2, 4  ;;  %v808_v20 = vrot.slane %v806_v3, 5  ;;  %v812_v38 = vshll.u32 %v4447_v33, 16  ;;  %v740_v3 = vld [vmem:[#allocation2 + $0x24] sm:$0x1]  ;;  %vm4480_vm8 = vmor %vm799_vm6, %vm800_vm7 }
  0x19   : > { %3844 = vmatprep.subr.bf16.mxu1 %v4084_v40  ;;  %vm4661_vm11 = vmor %vm1221_vm9, %vm1222_vm10 }
  0x1b   : > { %3605 = vmatpush3.bf16.msra.mxu0 %v4064_v14 }
  0x1c   : > { %3606 = vmatprep.subr.bf16.mxu0 %v4065_v15  ;;  %3845 = vmatpush3.bf16.msra.mxu1 %v4084_v40 }
  0x1d   : > { %3846 = vmatprep.subr.bf16.mxu1 %v4086_v42 }
  0x1f   : > { %3607 = vmatpush3.bf16.msra.mxu0 %v4066_v16  ;;  %v722_v16 = vld [vmem:[#allocation2 + $0xc] sm:$0x1] }
  0x20   : > { %3608 = vmatprep.subr.bf16.mxu0 %v4067_v17  ;;  %3847 = vmatpush3.bf16.msra.mxu1 %v4086_v42 }
  0x21   : > { %3848 = vmatprep.subr.bf16.mxu1 %v4088_v44 }
  0x23   : > { %3609 = vmatpush3.bf16.msra.mxu0 %v4068_v18 }
  0x24   : > { %3764 = vmatprep.subr.bf16.mxu0 %v4079_v35  ;;  %3849 = vmatpush3.bf16.msra.mxu1 %v4088_v44 }
  0x25   : > { %3850 = vmatprep.subr.bf16.mxu1 %v4091_v46 }
  0x26   : > { %548 = vmatmul.mubr.bf16.vlgmr.msra.gmra.mrb[0].mxu0 %v3258_v21 }
  0x27   : > { %555 = vmatprep.mubr.bf16.mxu0 %v3261_v22  ;;  %3765 = vmatpush3.bf16.msra.mxu0 %v4079_v35 }
  0x28   : > { %3766 = vmatprep.subr.bf16.mxu0 %v4081_v37  ;;  %3851 = vmatpush3.bf16.msra.mxu1 %v4091_v46 }
  0x29   : > { %3860 = vmatprep.subr.bf16.mxu1 %v4408_v48 }
  0x2b   : > { %3767 = vmatpush3.bf16.msra.mxu0 %v4081_v37 }
  0x2c   : > { %3768 = vmatprep.subr.bf16.mxu0 %v4083_v39 }
  0x2e   : > { %556 = vmatmul.mubr.bf16.gmra.mrb[4].mxu0 %v3260_v25  ;;  %v725_v25 = vld [vmem:[#allocation2 + $0x10] sm:$0xf] }
  0x2f   : > { %563 = vmatprep.mubr.bf16.mxu0 %v3263_v26  ;;  %3769 = vmatpush3.bf16.msra.mxu0 %v4083_v39  ;;  %v728_v26 = vld [vmem:[#allocation2 + $0x14] sm:$0x1] }
  0x30   : > { %3770 = vmatprep.subr.bf16.mxu0 %v4085_v41 }
  0x33   : > { %3771 = vmatpush3.bf16.msra.mxu0 %v4085_v41 }
  0x34   : > { %3772 = vmatprep.subr.bf16.mxu0 %v4087_v43 }
  0x36   : > { %564 = vmatmul.mubr.bf16.gmra.mrb[8].mxu0 %v3262_v29 }
  0x37   : > { %571 = vmatprep.mubr.bf16.mxu0 %v3265_v30  ;;  %3773 = vmatpush3.bf16.msra.mxu0 %v4087_v43  ;;  %v809_v43 = vor.u32 %v808_v20, %v805_v19 }
  0x38   : > { %3774 = vmatprep.subr.bf16.mxu0 %v4090_v45 }
  0x3b   : > { %3775 = vmatpush3.bf16.msra.mxu0 %v4090_v45 }
  0x3c   : > { %3776 = vmatprep.subr.bf16.mxu0 %v4092_v47 }
  0x3e   : > { %572 = vmatmul.mubr.bf16.gmra.mrb[12].mxu0 %v3264_v31 }
  0x3f   : > { %3777 = vmatpush3.bf16.msra.mxu0 %v4092_v47  ;;  %v731_v47 = vld [vmem:[#allocation2 + $0x18] sm:$0xf] }
  0x40   : > { %3778 = vmatprep.subr.bf16.mxu0 %v4095_v49 }
  0x43   : > { %3779 = vmatpush3.bf16.msra.mxu0 %v4095_v49  ;;  %v734_v49 = vld [vmem:[#allocation2 + $0x1c] sm:$0x1] }
  0x44   : > { %3788 = vmatprep.subr.bf16.mxu0 %v4417_v50 }
  0xf9   : > { %v3610_v51 = vpop.f32.mrb[0].mxu0 }
  0xfa   : > { %v3611_v53 = vpop.f32.mrb[1].mxu0 }
  0xfb   : > { %v3612_v54 = vadd.f32 %v3611_v53, %v3610_v51  ;;  %v3613_v55 = vpop.f32.mrb[2].mxu0 }
  0xfc   : > { %v3614_v56 = vpop.f32.mrb[3].mxu0 }
  0xfd   : > { %v550_v57 = vadd.f32 %v3612_v54, %v4423_v52  ;;  %v3615_v58 = vadd.f32 %v3614_v56, %v3613_v55 }
  0xff   : > { %v580_v59 = vmax.f32 %v550_v57, 0.0  ;;  %v553_v60 = vadd.f32 %v3615_v58, %v4423_v52  ;;  %v737_v57 = vld [vmem:[#allocation2 + $0x20] sm:$0xf] }
 0x101   : > { %v3586_v62 = vpack.c.bf16 %v580_v59, %v580_v59  ;;  %v581_v63 = vmax.f32 %v553_v60, 0.0  ;;  %v3616_v0 = vpop.f32.mrb[4].mxu0  ;;  %v4456_v60 = vrot.slane %v809_v43, 4 }
 0x102   : > { %v3617_v1 = vpop.f32.mrb[5].mxu0 }
 0x103   : > { %v633_v4 = vshrl.u32 %v3586_v62, 16  ;;  %v3587_v5 = vpack.c.bf16 %v581_v63, %v581_v63  ;;  %v3618_v6 = vadd.f32 %v3617_v1, %v3616_v0  ;;  %v3619_v7 = vpop.f32.mrb[6].mxu0  ;;  %v636_v10 = vshll.u32 %v3586_v62, 16 }
 0x104   : > { %v3620_v8 = vpop.f32.mrb[7].mxu0  ;;  %v4458_v62 = vrot.slane %v812_v38, 5 }
 0x105   : > { %v635_v9 = vrot.slane %v633_v4, 7  ;;  %v641_v13 = vshrl.u32 %v3587_v5, 16  ;;  %v558_v14 = vadd.f32 %v3618_v6, %v4423_v52  ;;  %v644_v17 = vshll.u32 %v3587_v5, 16 }
 0x106   : > { %v3621_v18 = vadd.f32 %v3620_v8, %v3619_v7 }
 0x107   : > { %v638_v21 = vor.u32 %v636_v10, %v635_v9  ;;  %v639_v22 = vrot.slane %v635_v9, 4  ;;  %v643_v23 = vrot.slane %v641_v13, 7  ;;  %v582_v24 = vmax.f32 %v558_v14, 0.0 }
 0x108   : > { %v561_v27 = vadd.f32 %v3621_v18, %v4423_v52 }
 0x109   : > { %v717_v28 = vsel %vm4432_vm4, %v638_v21, %v716_v12  ;;  %v723_v29 = vsel %vm4438_vm5, %v639_v22, %v722_v16  ;;  %v646_v30 = vor.u32 %v644_v17, %v643_v23  ;;  %v647_v31 = vrot.slane %v643_v23, 4  ;;  %v3622_v32 = vpop.f32.mrb[8].mxu0  ;;  %v743_v23 = vld [vmem:[#allocation2 + $0x28] sm:$0xf] }
 0x10a   : > { %718 = vst [vmem:[#allocation2 + $0x8] sm:$0xf] %v717_v28  ;;  %724 = vst [vmem:[#allocation2 + $0xc] sm:$0x1] %v723_v29  ;;  %v3588_v35 = vpack.c.bf16 %v582_v24, %v582_v24  ;;  %v583_v36 = vmax.f32 %v561_v27, 0.0  ;;  %v3623_v37 = vpop.f32.mrb[9].mxu0 }
 0x10b   : > { %v726_v39 = vsel %vm4432_vm4, %v646_v30, %v725_v25  ;;  %v729_v40 = vsel %vm4438_vm5, %v647_v31, %v728_v26  ;;  %v3624_v41 = vadd.f32 %v3623_v37, %v3622_v32  ;;  %v3625_v42 = vpop.f32.mrb[10].mxu0 }
 0x10c   : > { %727 = vst [vmem:[#allocation2 + $0x10] sm:$0xf] %v726_v39  ;;  %730 = vst [vmem:[#allocation2 + $0x14] sm:$0x1] %v729_v40  ;;  %v649_v44 = vshrl.u32 %v3588_v35, 16  ;;  %v3589_v45 = vpack.c.bf16 %v583_v36, %v583_v36  ;;  %v3626_v46 = vpop.f32.mrb[11].mxu0 }
 0x10d   : > { %v566_v51 = vadd.f32 %v3624_v41, %v4423_v52  ;;  %v3627_v53 = vadd.f32 %v3626_v46, %v3625_v42  ;;  %v652_v55 = vshll.u32 %v3588_v35, 16  ;;  %v746_v35 = vld [vmem:[#allocation2 + $0x2c] sm:$0x1]  ;;  %v752_v46 = vld [vmem:[#allocation2 + $0x34] sm:$0x1] }
 0x10e   : > { %v651_v54 = vrot.slane %v649_v44, 7  ;;  %v657_v56 = vshrl.u32 %v3589_v45, 16  ;;  %v660_v2 = vshll.u32 %v3589_v45, 16  ;;  %v749_v45 = vld [vmem:[#allocation2 + $0x30] sm:$0xf] }
 0x10f   : > { %v584_v58 = vmax.f32 %v566_v51, 0.0  ;;  %v569_v59 = vadd.f32 %v3627_v53, %v4423_v52  ;;  %v4157_v44 = vld [vmem:[%s5053_s3 + $0x220] sm:$0xff]  }
 0x110   : > { %v654_v63 = vor.u32 %v652_v55, %v651_v54  ;;  %v655_v0 = vrot.slane %v651_v54, 4  ;;  %v659_v1 = vrot.slane %v657_v56, 7 }
 0x111   : > { %v3590_v4 = vpack.c.bf16 %v584_v58, %v584_v58  ;;  %v585_v5 = vmax.f32 %v569_v59, 0.0  ;;  %v3628_v6 = vpop.f32.mrb[12].mxu0  ;;  %v4460_v7 = vld [vmem:[#allocation2 + $0x8] sm:$0xf]  ;;  %v4466_v14 = vld [vmem:[#allocation2 + $0xc] sm:$0x1] }
 0x112   : > { %v732_v8 = vsel %vm4432_vm4, %v654_v63, %v731_v47  ;;  %v735_v9 = vsel %vm4438_vm5, %v655_v0, %v734_v49  ;;  %v662_v10 = vor.u32 %v660_v2, %v659_v1  ;;  %v663_v12 = vrot.slane %v659_v1, 4  ;;  %v3629_v13 = vpop.f32.mrb[13].mxu0 }
 0x113   : > { %733 = vst [vmem:[#allocation2 + $0x18] sm:$0xf] %v732_v8  ;;  %736 = vst [vmem:[#allocation2 + $0x1c] sm:$0x1] %v735_v9  ;;  %v665_v16 = vshrl.u32 %v3590_v4, 16  ;;  %v668_v17 = vshll.u32 %v3590_v4, 16  ;;  %v3591_v18 = vpack.c.bf16 %v585_v5, %v585_v5  ;;  %v3630_v19 = vadd.f32 %v3629_v13, %v3628_v6 }
 0x114   : > { %v3631_v20 = vpop.f32.mrb[14].mxu0  ;;  %v738_v21 = vsel %vm4432_vm4, %v662_v10, %v737_v57  ;;  %v741_v22 = vsel %vm4438_vm5, %v663_v12, %v740_v3  ;;  %v4089_v25 = vld [vmem:[#allocation2 + $0x8] ss:$8 sps:$4 sm:$0xff]   ;;  %v817_v26 = vshrl.u32 %v4460_v7, 16  ;;  %v820_v27 = vshll.u32 %v4460_v7, 16  ;;  %v4096_v4 = vld [vmem:[%s5053_s3 + $0x108] sm:$0xff]  }
 0x115   : > { %v3632_v24 = vpop.f32.mrb[15].mxu0  ;;  %739 = vst [vmem:[#allocation2 + $0x20] sm:$0xf] %v738_v21  ;;  %742 = vst [vmem:[#allocation2 + $0x24] sm:$0x1] %v741_v22  ;;  %v667_v28 = vrot.slane %v665_v16, 7  ;;  %v574_v31 = vadd.f32 %v3630_v19, %v4423_v52  ;;  %3852 = vmatprep.mubr.bf16.mxu1 %v4089_v25 }
 0x116   : > { %v673_v29 = vshrl.u32 %v3591_v18, 16  ;;  %v676_v30 = vshll.u32 %v3591_v18, 16  ;;  %v4475_v32 = vld [vmem:[#allocation2 + $0x10] sm:$0xf]  ;;  %v3633_v36 = vadd.f32 %v3632_v24, %v3631_v20  ;;  %v819_v37 = vrot.slane %v817_v26, 4 }
 0x117   : > { %v822_v38 = vrot.slane %v820_v27, 5  ;;  %v826_v39 = vshll.u32 %v4466_v14, 16  ;;  %v670_v40 = vor.u32 %v668_v17, %v667_v28  ;;  %v671_v41 = vrot.slane %v667_v28, 4  ;;  %v4490_v58 = vld [vmem:[#allocation2 + $0x14] sm:$0x1] }
 0x118   : > { %v675_v42 = vrot.slane %v673_v29, 7  ;;  %v586_v43 = vmax.f32 %v574_v31, 0.0  ;;  %v577_v47 = vadd.f32 %v3633_v36, %v4423_v52  ;;  %v831_v53 = vshrl.u32 %v4475_v32, 16  ;;  %v755_v13 = vld [vmem:[#allocation2 + $0x38] sm:$0xf] }
 0x119   : > { %v823_v49 = vor.u32 %v822_v38, %v819_v37  ;;  %v828_v51 = vrot.slane %v826_v39, 5  ;;  %v744_v54 = vsel %vm4432_vm4, %v670_v40, %v743_v23  ;;  %v747_v55 = vsel %vm4438_vm5, %v671_v41, %v746_v35  ;;  %v758_v21 = vld [vmem:[#allocation2 + $0x3c] sm:$0x1]  ;;  %v761_v25 = vld [vmem:[#allocation2 + $0x40] sm:$0xf] }
 0x11a   : > { %v678_v56 = vor.u32 %v676_v30, %v675_v42  ;;  %v679_v57 = vrot.slane %v675_v42, 4  ;;  %745 = vst [vmem:[#allocation2 + $0x28] sm:$0xf] %v744_v54  ;;  %748 = vst [vmem:[#allocation2 + $0x2c] sm:$0x1] %v747_v55  ;;  %v3592_v59 = vpack.c.bf16 %v586_v43, %v586_v43  ;;  %v587_v63 = vmax.f32 %v577_v47, 0.0 }
 0x11b   : > { %v815_v52 = vsel %vm4480_vm8, %v4456_v60, %v4458_v62  ;;  %v824_v0 = vrot.slane %v823_v49, 4  ;;  %v4496_v1 = vld [vmem:[#allocation2 + $0x18] sm:$0xf]  ;;  %v4505_v5 = vld [vmem:[#allocation2 + $0x1c] sm:$0x1]  ;;  %v833_v6 = vrot.slane %v831_v53, 4 }
 0x11c   : > { %v750_v2 = vsel %vm4432_vm4, %v678_v56, %v749_v45  ;;  %v753_v3 = vsel %vm4438_vm5, %v679_v57, %v752_v46  ;;  %v834_v8 = vshll.u32 %v4475_v32, 16  ;;  %v681_v60 = vshrl.u32 %v3592_v59, 16  ;;  %v4094_v12 = vld [vmem:[#allocation2 + $0x18] ss:$8 sps:$4 sm:$0xff]   ;;  %v764_v26 = vld [vmem:[#allocation2 + $0x44] sm:$0x1] }
 0x11d   : > { %751 = vst [vmem:[#allocation2 + $0x30] sm:$0xf] %v750_v2  ;;  %754 = vst [vmem:[#allocation2 + $0x34] sm:$0x1] %v753_v3  ;;  %v684_v62 = vshll.u32 %v3592_v59, 16  ;;  %v3593_v9 = vpack.c.bf16 %v587_v63, %v587_v63  ;;  %v829_v10 = vsel %vm4480_vm8, %v824_v0, %v828_v51  ;;  %v840_v18 = vshll.u32 %v4490_v58, 16  ;;  %3853 = vmatmul.mubr.bf16.vlgmr.msra.gmra.mrb[0].mxu1 %v4094_v12 }
 0x11e   : > { %v3306_v16 = vcombine.low %v815_v52, %v829_v10  ;;  %v836_v17 = vrot.slane %v834_v8, 5  ;;  %v845_v19 = vshrl.u32 %v4496_v1, 16  ;;  %v683_v20 = vrot.slane %v681_v60, 7  ;;  %3861 = vmatpush3.bf16.msra.mxu1 %v4408_v48  ;;  %v4098_v38 = vld [vmem:[%s5053_s3 + $0x110] sm:$0xff]   ;;  %v1580_v49 = vld [vmem:[#allocation2 + $0x8] sm:$0xf] }
 0x11f   : > { %v689_v22 = vshrl.u32 %v3593_v9, 16  ;;  %v692_v23 = vshll.u32 %v3593_v9, 16  ;;  %v848_v24 = vshll.u32 %v4496_v1, 16  ;;  %v842_v28 = vrot.slane %v840_v18, 5  ;;  %3862 = vmatprep.subr.bf16.mxu1 %v4096_v4  ;;  %v4518_v39 = vld [vmem:[#allocation2 + $0x20] sm:$0xf] }
 0x120   : > { %3780 = vmatprep.mubr.bf16.mxu0 %v3306_v16  ;;  %v837_v27 = vor.u32 %v836_v17, %v833_v6  ;;  %v847_v29 = vrot.slane %v845_v19, 4  ;;  %v854_v30 = vshll.u32 %v4505_v5, 16  ;;  %v686_v31 = vor.u32 %v684_v62, %v683_v20  ;;  %v4526_v47 = vld [vmem:[#allocation2 + $0x24] sm:$0x1]  ;;  %v4101_v63 = vld [vmem:[%s5053_s3 + $0x118] sm:$0xff]  }
 0x121   : > { %v687_v35 = vrot.slane %v683_v20, 4  ;;  %v691_v36 = vrot.slane %v689_v22, 7  ;;  %v850_v37 = vrot.slane %v848_v24, 5  ;;  %v4520_v42 = vld [vmem:[#allocation2 + $0x28] sm:$0xf]  ;;  %v859_v54 = vshrl.u32 %v4518_v39, 16 }
 0x122   : > { %v838_v40 = vrot.slane %v837_v27, 4  ;;  %v856_v41 = vrot.slane %v854_v30, 5  ;;  %v756_v48 = vsel %vm4432_vm4, %v686_v31, %v755_v13  ;;  %3863 = vmatpush3.bf16.msra.mxu1 %v4096_v4  ;;  %v862_v55 = vshll.u32 %v4518_v39, 16  ;;  %v4540_v0 = vld [vmem:[#allocation2 + $0xc] sm:$0x1]  ;;  %v4099_v20 = vld [vmem:[%s5053_s3 + $0x8] sm:$0xff]  }
 0x123   : > { %v759_v43 = vsel %vm4438_vm5, %v687_v35, %v758_v21  ;;  %v694_v45 = vor.u32 %v692_v23, %v691_v36  ;;  %v695_v46 = vrot.slane %v691_v36, 4  ;;  %757 = vst [vmem:[#allocation2 + $0x38] sm:$0xf] %v756_v48  ;;  %v851_v51 = vor.u32 %v850_v37, %v847_v29  ;;  %3864 = vmatprep.subr.bf16.mxu1 %v4098_v38  ;;  %v4542_v11 = vld [vmem:[#allocation2 + $0x2c] sm:$0x1]  ;;  %v4103_v22 = vld [vmem:[%s5053_s3 + $0x120] sm:$0xff]  }
 0x124   : > { %760 = vst [vmem:[#allocation2 + $0x3c] sm:$0x1] %v759_v43  ;;  %v4100_v53 = vld [vmem:[#allocation2 + $0x28] ss:$8 sps:$4 sm:$0xff]   ;;  %v843_v59 = vsel %vm4480_vm8, %v838_v40, %v842_v28  ;;  %v873_v52 = vshrl.u32 %v4520_v42, 16  ;;  %v861_v15 = vrot.slane %v859_v54, 4 }
 0x125   : > { %v762_v56 = vsel %vm4432_vm4, %v694_v45, %v761_v25  ;;  %v765_v57 = vsel %vm4438_vm5, %v695_v46, %v764_v26  ;;  %v852_v2 = vrot.slane %v851_v51, 4  ;;  %3856 = vmatprep.mubr.bf16.mxu1 %v4100_v53  ;;  %v864_v3 = vrot.slane %v862_v55, 5  ;;  %v1582_v62 = vld [vmem:[#allocation2 + $0x10] sm:$0xf]  ;;  %v4549_v16 = vld [vmem:[#allocation2 + $0x14] sm:$0x1] }
 0x126   : > { %763 = vst [vmem:[#allocation2 + $0x40] sm:$0xf] %v762_v56  ;;  %766 = vst [vmem:[#allocation2 + $0x44] sm:$0x1] %v765_v57  ;;  %v876_v4 = vshll.u32 %v4520_v42, 16  ;;  %v868_v6 = vshll.u32 %v4526_v47, 16  ;;  %3865 = vmatpush3.bf16.msra.mxu1 %v4098_v38 }
 0x127   : > { %v875_v8 = vrot.slane %v873_v52, 4  ;;  %v882_v60 = vshll.u32 %v4542_v11, 16  ;;  %v1597_v9 = vshrl.u32 %v1580_v49, 16  ;;  %v857_v10 = vsel %vm4480_vm8, %v852_v2, %v856_v41  ;;  %v4551_v18 = vld [vmem:[#allocation2 + $0x30] sm:$0xf]  ;;  %3866 = vmatprep.subr.bf16.mxu1 %v4101_v63  ;;  %v4102_v36 = vld [vmem:[%s5053_s3 + $0x10] sm:$0xff]  }
 0x128   : > { %v865_v12 = vor.u32 %v864_v3, %v861_v15  ;;  %v878_v13 = vrot.slane %v876_v4, 5  ;;  %v1600_v17 = vshll.u32 %v1580_v49, 16  ;;  %v3307_v19 = vcombine.low %v843_v59, %v857_v10  ;;  %v1584_v43 = vld [vmem:[#allocation2 + $0x18] sm:$0xf]  ;;  %v4575_v55 = vld [vmem:[#allocation2 + $0x34] sm:$0x1] }
 0x129   : > { %v884_v21 = vrot.slane %v882_v60, 5  ;;  %v1599_v23 = vrot.slane %v1597_v9, 4  ;;  %v1606_v24 = vshll.u32 %v4540_v0, 16  ;;  %v1611_v28 = vshrl.u32 %v1582_v62, 16  ;;  %v4106_v54 = vld [vmem:[%s5053_s3 + $0x128] sm:$0xff]   ;;  %v4105_v10 = vld [vmem:[%s5053_s3 + $0x18] sm:$0xff]  }
 0x12a   : > { %v866_v25 = vrot.slane %v865_v12, 4  ;;  %v879_v26 = vor.u32 %v878_v13, %v875_v8  ;;  %v1602_v27 = vrot.slane %v1600_v17, 5  ;;  %3781 = vmatmul.mubr.bf16.vlgmr.msra.gmra.mrb[16].mxu0 %v3307_v19  ;;  %v870_v29 = vrot.slane %v868_v6, 5  ;;  %3867 = vmatpush3.bf16.msra.mxu1 %v4101_v63  ;;  %v4566_v48 = vld [vmem:[#allocation2 + $0x38] sm:$0xf]  ;;  %v4108_v17 = vld [vmem:[%s5053_s3 + $0x130] sm:$0xff]  }
 0x12b   : > { %v1614_v30 = vshll.u32 %v1582_v62, 16  ;;  %v1620_v31 = vshll.u32 %v4549_v16, 16  ;;  %v887_v35 = vshrl.u32 %v4551_v18, 16  ;;  %3789 = vmatpush3.bf16.msra.mxu0 %v4417_v50  ;;  %v1608_v40 = vrot.slane %v1606_v24, 5  ;;  %3868 = vmatprep.subr.bf16.mxu1 %v4103_v22  ;;  %v4578_v52 = vld [vmem:[#allocation2 + $0x3c] sm:$0x1] }
 0x12c   : > { %v880_v37 = vrot.slane %v879_v26, 4  ;;  %v1603_v38 = vor.u32 %v1602_v27, %v1599_v23  ;;  %v1613_v41 = vrot.slane %v1611_v28, 4  ;;  %3790 = vmatprep.subr.bf16.mxu0 %v4099_v20  ;;  %v871_v45 = vsel %vm4480_vm8, %v866_v25, %v870_v29  ;;  %v4582_v3 = vld [vmem:[#allocation2 + $0x1c] sm:$0x1]  ;;  %v1586_v62 = vld [vmem:[#allocation2 + $0x20] sm:$0xf] }
 0x12d   : > { %v4104_v46 = vld [vmem:[#allocation2 + $0x38] ss:$8 sps:$4 sm:$0xff]   ;;  %v1616_v49 = vrot.slane %v1614_v30, 5  ;;  %v1622_v50 = vrot.slane %v1620_v31, 5  ;;  %v889_v56 = vrot.slane %v887_v35, 4  ;;  %v890_v57 = vshll.u32 %v4551_v18, 16 }
 0x12e   : > { %v885_v51 = vsel %vm4480_vm8, %v880_v37, %v884_v21  ;;  %v1604_v53 = vrot.slane %v1603_v38, 4  ;;  %3857 = vmatmul.mubr.bf16.gmra.mrb[4].mxu1 %v4104_v46  ;;  %v896_v2 = vshll.u32 %v4575_v55, 16  ;;  %v901_v15 = vshrl.u32 %v4566_v48, 16  ;;  %v4594_v23 = vld [vmem:[#allocation2 + $0x24] sm:$0x1]  ;;  %v4107_v31 = vld [vmem:[%s5053_s3 + $0x20] sm:$0xff]  }
 0x12f   : > { %v3308_v59 = vcombine.low %v871_v45, %v885_v51  ;;  %v1617_v63 = vor.u32 %v1616_v49, %v1613_v41  ;;  %3791 = vmatpush3.bf16.msra.mxu0 %v4099_v20  ;;  %3869 = vmatpush3.bf16.msra.mxu1 %v4103_v22  ;;  %v892_v6 = vrot.slane %v890_v57, 5  ;;  %v904_v8 = vshll.u32 %v4566_v48, 16  ;;  %v1588_v29 = vld [vmem:[#allocation2 + $0x28] sm:$0xf]  ;;  %v1590_v46 = vld [vmem:[#allocation2 + $0x30] sm:$0xf] }
 0x130   : > { %v1609_v4 = vsel %vm4480_vm8, %v1604_v53, %v1608_v40  ;;  %v910_v60 = vshll.u32 %v4578_v52, 16  ;;  %3792 = vmatprep.subr.bf16.mxu0 %v4102_v36  ;;  %v898_v12 = vrot.slane %v896_v2, 5  ;;  %v903_v13 = vrot.slane %v901_v15, 4  ;;  %3870 = vmatprep.subr.bf16.mxu1 %v4106_v54  ;;  %v4111_v41 = vld [vmem:[%s5053_s3 + $0x138] sm:$0xff]   ;;  %v4110_v15 = vld [vmem:[%s5053_s3 + $0x28] sm:$0xff]  }
 0x131   : > { %3784 = vmatprep.mubr.bf16.mxu0 %v3308_v59  ;;  %v1618_v9 = vrot.slane %v1617_v63, 4  ;;  %v1625_v19 = vshrl.u32 %v1584_v43, 16  ;;  %v893_v20 = vor.u32 %v892_v6, %v889_v56  ;;  %v906_v21 = vrot.slane %v904_v8, 5  ;;  %v4608_v53 = vld [vmem:[#allocation2 + $0x2c] sm:$0x1] }
 0x132   : > { %v912_v22 = vrot.slane %v910_v60, 5  ;;  %v1628_v24 = vshll.u32 %v1584_v43, 16  ;;  %v1634_v27 = vshll.u32 %v4582_v3, 16  ;;  %v1639_v28 = vshrl.u32 %v1586_v62, 16  ;;  %v1592_v63 = vld [vmem:[#allocation2 + $0x38] sm:$0xf] }
 0x133   : > { %v1623_v25 = vsel %vm4480_vm8, %v1618_v9, %v1622_v50  ;;  %v1627_v26 = vrot.slane %v1625_v19, 4  ;;  %3793 = vmatpush3.bf16.msra.mxu0 %v4102_v36  ;;  %3871 = vmatpush3.bf16.msra.mxu1 %v4106_v54  ;;  %v894_v35 = vrot.slane %v893_v20, 4  ;;  %v907_v37 = vor.u32 %v906_v21, %v903_v13  ;;  %v1594_v13 = vld [vmem:[#allocation2 + $0x40] sm:$0xf] }
 0x134   : > { %v3410_v30 = vcombine.low %v1609_v4, %v1623_v25  ;;  %v1630_v38 = vrot.slane %v1628_v24, 5  ;;  %3794 = vmatprep.subr.bf16.mxu0 %v4105_v10  ;;  %3872 = vmatprep.subr.bf16.mxu1 %v4108_v17  ;;  %v3318_v40 = vcombine.low %v4427_v61, %v4460_v7  ;;  %v1641_v43 = vrot.slane %v1639_v28, 4  ;;  %v4612_v7 = vld [vmem:[#allocation2 + $0x34] sm:$0x1]  ;;  %v4624_v25 = vld [vmem:[#allocation2 + $0x3c] sm:$0x1] }
 0x135   : > { %v1642_v36 = vshll.u32 %v1586_v62, 16  ;;  %v1648_v45 = vshll.u32 %v4594_v23, 16  ;;  %v908_v49 = vrot.slane %v907_v37, 4  ;;  %v1636_v51 = vrot.slane %v1634_v27, 5  ;;  %v4112_v37 = vld [vmem:[%s5053_s3 + $0x30] sm:$0xff]  }
 0x136   : > { %3876 = vmatprep.mubr.bf16.mxu1 %v3410_v30  ;;  %v1631_v50 = vor.u32 %v1630_v38, %v1627_v26  ;;  %v1653_v54 = vshrl.u32 %v1588_v29, 16  ;;  %v899_v56 = vsel %vm4480_vm8, %v894_v35, %v898_v12  ;;  %v1656_v57 = vshll.u32 %v1588_v29, 16 }
 0x137   : > { %v1644_v61 = vrot.slane %v1642_v36, 5  ;;  %v1662_v59 = vshll.u32 %v4608_v53, 16  ;;  %3795 = vmatpush3.bf16.msra.mxu0 %v4105_v10  ;;  %v913_v2 = vsel %vm4480_vm8, %v908_v49, %v912_v22  ;;  %3873 = vmatpush3.bf16.msra.mxu1 %v4108_v17  ;;  %v1667_v8 = vshrl.u32 %v1590_v46, 16  ;;  %v4113_v10 = vld [vmem:[%s5053_s3 + $0x140] sm:$0xff]   ;;  %v4115_v49 = vld [vmem:[%s5053_s3 + $0x148] sm:$0xff]  }
 0x138   : > { %v1632_v4 = vrot.slane %v1631_v50, 4  ;;  %v1655_v6 = vrot.slane %v1653_v54, 4  ;;  %3796 = vmatprep.subr.bf16.mxu0 %v4107_v31  ;;  %v3309_v60 = vcombine.low %v899_v56, %v913_v2  ;;  %3874 = vmatprep.subr.bf16.mxu1 %v4111_v41  ;;  %v1650_v9 = vrot.slane %v1648_v45, 5  ;;  %v4637_v50 = vld [vmem:[#allocation2 + $0x44] sm:$0x1] }
 0x139   : > { %v1645_v62 = vor.u32 %v1644_v61, %v1641_v43  ;;  %v1658_v12 = vrot.slane %v1656_v57, 5  ;;  %v1664_v19 = vrot.slane %v1662_v59, 5  ;;  %v1669_v17 = vrot.slane %v1667_v8, 4  ;;  %v4114_v59 = vld [vmem:[%s5053_s3 + $0x38] sm:$0xff]  }
 0x13a   : > { %v1670_v20 = vshll.u32 %v1590_v46, 16  ;;  %v1676_v21 = vshll.u32 %v4612_v7, 16  ;;  %3785 = vmatmul.mubr.bf16.gmra.mrb[20].mxu0 %v3309_v60  ;;  %v1681_v26 = vshrl.u32 %v1592_v63, 16  ;;  %v1684_v27 = vshll.u32 %v1592_v63, 16 }
 0x13b   : > { %v1646_v22 = vrot.slane %v1645_v62, 4  ;;  %v1659_v24 = vor.u32 %v1658_v12, %v1655_v6  ;;  %3797 = vmatpush3.bf16.msra.mxu0 %v4107_v31  ;;  %3804 = vmatprep.mubr.bf16.mxu0 %v3318_v40  ;;  %v1637_v28 = vsel %vm4480_vm8, %v1632_v4, %v1636_v51  ;;  %v1690_v30 = vshll.u32 %v4624_v25, 16  ;;  %v1863_v6 = vld [vmem:[#allocation2 + $0x10] sm:$0xe]  ;;  %v1862_v12 = vld [vmem:[#allocation2 + $0x8] sm:$0xe] }
 0x13c   : > { %v1672_v29 = vrot.slane %v1670_v20, 5  ;;  %v1695_v35 = vshrl.u32 %v1594_v13, 16  ;;  %3798 = vmatprep.subr.bf16.mxu0 %v4110_v15  ;;  %3875 = vmatpush3.bf16.msra.mxu1 %v4111_v41  ;;  %v1683_v36 = vrot.slane %v1681_v26, 4  ;;  %v1686_v31 = vrot.slane %v1684_v27, 5  ;;  %v1197_v26 = vld [vmem:[#allocation2] sm:$0xe] }
 0x13d   : > { %v1651_v38 = vsel %vm4480_vm8, %v1646_v22, %v1650_v9  ;;  %v1660_v43 = vrot.slane %v1659_v24, 4  ;;  %3884 = vmatprep.subr.bf16.mxu1 %v4113_v10  ;;  %v1678_v46 = vrot.slane %v1676_v21, 5  ;;  %v1698_v54 = vshll.u32 %v1594_v13, 16  ;;  %v4119_v9 = vld [vmem:[%s5053_s3 + $0x150] sm:$0xff]   ;;  %v1200_v27 = vld [vmem:[#allocation2 + $0x18] sm:$0xe] }
 0x13e   : > { %v3411_v40 = vcombine.low %v1637_v28, %v1651_v38  ;;  %v1673_v45 = vor.u32 %v1672_v29, %v1669_v17  ;;  %v1687_v41 = vor.u32 %v1686_v31, %v1683_v36  ;;  %v1697_v51 = vrot.slane %v1695_v35, 4  ;;  %v4117_v17 = vld [vmem:[%s5053_s3 + $0x80] sm:$0xff]   ;;  %v1198_v29 = vld [vmem:[#allocation2 + $0x8] sm:$0xe] }
 0x13f   : > { %v1704_v56 = vshll.u32 %v4637_v50, 16  ;;  %3799 = vmatpush3.bf16.msra.mxu0 %v4110_v15  ;;  %v1665_v61 = vsel %vm4480_vm8, %v1660_v43, %v1664_v19  ;;  %v1692_v2 = vrot.slane %v1690_v30, 5  ;;  %v1700_v4 = vrot.slane %v1698_v54, 5  ;;  %v1199_v19 = vld [vmem:[#allocation2 + $0x10] sm:$0xe]  ;;  %v4120_v43 = vld [vmem:[%s5053_s3 + $0x88] sm:$0xff]  }
 0x140   : > { %3877 = vmatmul.mubr.bf16.vlgmr.msra.gmra.mrb[0].mxu1 %v3411_v40  ;;  %v1674_v57 = vrot.slane %v1673_v45, 4  ;;  %3800 = vmatprep.subr.bf16.mxu0 %v4112_v37  ;;  %v1688_v63 = vrot.slane %v1687_v41, 4  ;;  %v3423_v13 = vrot.slane %v1863_v6, 9  ;;  %v3422_v22 = vrot.slane %v1862_v12, 9  ;;  %v4130_v6 = vld [vmem:[%s5053_s3 + $0x178] sm:$0xff]  }
 0x141   : > { %3885 = vmatpush3.bf16.msra.mxu1 %v4113_v10  ;;  %v1701_v60 = vor.u32 %v1700_v4, %v1697_v51  ;;  %v1706_v62 = vrot.slane %v1704_v56, 5  ;;  %v1892_v10 = vrot.slane %v4549_v16, 5  ;;  %v1888_v24 = vrot.slane %v4540_v0, 5  ;;  %v1867_v4 = vld [vmem:[#allocation2 + $0x30] sm:$0xe] }
 0x142   : > { %v1679_v8 = vsel %vm4480_vm8, %v1674_v57, %v1678_v46  ;;  %3886 = vmatprep.subr.bf16.mxu1 %v4115_v49  ;;  %v1693_v20 = vsel %vm4480_vm8, %v1688_v63, %v1692_v2  ;;  %v3332_v30 = vrot.slane %v1199_v19, 9  ;;  %v1234_v0 = vrot.slane %v4490_v58, 5  ;;  %v4126_v57 = vld [vmem:[%s5053_s3 + $0x168] sm:$0xff]   ;;  %v4128_v63 = vld [vmem:[%s5053_s3 + $0x170] sm:$0xff]   ;;  %v1866_v2 = vld [vmem:[#allocation2 + $0x28] sm:$0xe] }
 0x143   : > { %v3412_v15 = vcombine.low %v1665_v61, %v1679_v8  ;;  %3801 = vmatpush3.bf16.msra.mxu0 %v4112_v37  ;;  %v1702_v21 = vrot.slane %v1701_v60, 4  ;;  %v1893_v37 = vsel %vm4661_vm11, %v3423_v13, %v1892_v10  ;;  %v3319_v38 = vcombine.low %v4475_v32, %v4496_v1  ;;  %v4121_v32 = vld [vmem:[%s5053_s3 + $0x158] sm:$0xff]   ;;  %v1864_v8 = vld [vmem:[#allocation2 + $0x18] sm:$0xe] }
 0x144   : > { %3802 = vmatprep.subr.bf16.mxu0 %v4114_v59  ;;  %v3330_v36 = vrot.slane %v1197_v26, 9  ;;  %v3333_v31 = vrot.slane %v1200_v27, 9  ;;  %v1238_v40 = vrot.slane %v4505_v5, 5  ;;  %v3320_v45 = vcombine.low %v4518_v39, %v4520_v42  ;;  %v4125_v61 = vld [vmem:[%s5053_s3 + $0x98] sm:$0xff]  }
 0x145   : > { %3880 = vmatprep.mubr.bf16.mxu1 %v3412_v15  ;;  %3887 = vmatpush3.bf16.msra.mxu1 %v4115_v49  ;;  %v1707_v16 = vsel %vm4480_vm8, %v1702_v21, %v1706_v62  ;;  %v1889_v46 = vsel %vm4661_vm11, %v3422_v22, %v1888_v24  ;;  %v1226_v58 = vrot.slane %v4447_v33, 5  ;;  %v3331_v1 = vrot.slane %v1198_v29, 9  ;;  %v4124_v33 = vld [vmem:[%s5053_s3 + $0x160] sm:$0xff]   ;;  %v4129_v62 = vld [vmem:[%s5053_s3 + $0xa8] sm:$0xff]   ;;  %v1869_v22 = vld [vmem:[#allocation2 + $0x40] sm:$0xe] }
 0x146   : > { %3888 = vmatprep.subr.bf16.mxu1 %v4119_v9  ;;  %v3413_v35 = vcombine.low %v1693_v20, %v1707_v16  ;;  %v3446_v49 = vcombine.low %v1889_v46, %v1893_v37  ;;  %v1230_v41 = vrot.slane %v4466_v14, 5  ;;  %v4685_v5 = vsel %vm4661_vm11, %v3332_v30, %v1234_v0  ;;  %v4123_v14 = vld [vmem:[%s5053_s3 + $0x90] sm:$0xff]   ;;  %v1868_v21 = vld [vmem:[#allocation2 + $0x38] sm:$0xe]  ;;  %v1202_v29 = vld [vmem:[#allocation2 + $0x28] sm:$0xe] }
 0x147   : > { %3803 = vmatpush3.bf16.msra.mxu0 %v4114_v59  ;;  %v4689_v39 = vsel %vm4661_vm11, %v3333_v31, %v1238_v40  ;;  %v1227_v51 = vsel %vm4661_vm11, %v3330_v36, %v1226_v58  ;;  %v3321_v56 = vcombine.low %v4551_v18, %v4566_v48  ;;  %v4127_v18 = vld [vmem:[%s5053_s3 + $0xa0] sm:$0xff]   ;;  %v1865_v48 = vld [vmem:[#allocation2 + $0x20] sm:$0xe]  ;;  %v1900_v60 = vrot.slane %v4594_v23, 5  ;;  %v4134_v16 = vld [vmem:[%s5053_s3 + $0x188] sm:$0xff]  }
 0x148   : > { %3812 = vmatprep.subr.bf16.mxu0 %v4117_v17  ;;  %3881 = vmatmul.mubr.bf16.gmra.mrb[4].mxu1 %v3413_v35  ;;  %v3355_v42 = vcombine.low %v4685_v5, %v4689_v39  ;;  %v1231_v54 = vsel %vm4661_vm11, %v3331_v1, %v1230_v41  ;;  %v3425_v15 = vrot.slane %v1865_v48, 9  ;;  %v1904_v12 = vrot.slane %v4608_v53, 5  ;;  %v4132_v23 = vld [vmem:[%s5053_s3 + $0x180] sm:$0xff]   ;;  %v4131_v20 = vld [vmem:[%s5053_s3 + $0xb0] sm:$0xff]   ;;  %v4133_v30 = vld [vmem:[%s5053_s3 + $0xb8] sm:$0xff]  }
 0x149   : > { %3889 = vmatpush3.bf16.msra.mxu1 %v4119_v9  ;;  %3900 = vmatprep.mubr.bf16.mxu1 %v3446_v49  ;;  %v3354_v59 = vcombine.low %v1227_v51, %v1231_v54  ;;  %v3426_v9 = vrot.slane %v1866_v2, 9  ;;  %v3427_v13 = vrot.slane %v1867_v4, 9  ;;  %v1908_v10 = vrot.slane %v4612_v7, 5  ;;  %v4135_v40 = vld [vmem:[%s5053_s3 + $0x190] sm:$0xff]   ;;  %v1203_v49 = vld [vmem:[#allocation2 + $0x30] sm:$0xe] }
 0x14a   : > { %3805 = vmatmul.mubr.bf16.vlgmr.msra.gmra.mrb[16].mxu0 %v3319_v38  ;;  %3890 = vmatprep.subr.bf16.mxu1 %v4121_v32  ;;  %v3424_v19 = vrot.slane %v1864_v8, 9  ;;  %v1901_v53 = vsel %vm4661_vm11, %v3425_v15, %v1900_v60  ;;  %v3428_v35 = vrot.slane %v1868_v21, 9  ;;  %v1912_v37 = vrot.slane %v4624_v25, 5  ;;  %v4139_v5 = vld [vmem:[%s5053_s3 + $0x1a8] sm:$0xff]   ;;  %v4141_v48 = vld [vmem:[%s5053_s3 + $0x1b8] sm:$0xff]   ;;  %v4143_v15 = vld [vmem:[%s5053_s3 + $0x1c0] sm:$0xff]  }
 0x14b   : > { %3808 = vmatprep.mubr.bf16.mxu0 %v3320_v45  ;;  %3813 = vmatpush3.bf16.msra.mxu0 %v4117_v17  ;;  %v1896_v17 = vrot.slane %v4582_v3, 5  ;;  %v1905_v7 = vsel %vm4661_vm11, %v3426_v9, %v1904_v12  ;;  %v1909_v3 = vsel %vm4661_vm11, %v3427_v13, %v1908_v10  ;;  %v3429_v0 = vrot.slane %v1869_v22, 9  ;;  %v4790_v9 = vld [vmem:[#allocation2 + $0x1c] sm:$0x1]  ;;  %v4792_v13 = vld [vmem:[#allocation2 + $0x14] sm:$0x1] }
 0x14c   : > { %3814 = vmatprep.subr.bf16.mxu0 %v4120_v43  ;;  %v3448_v27 = vcombine.low %v1905_v7, %v1909_v3  ;;  %v1916_v38 = vrot.slane %v4637_v50, 5  ;;  %v3335_v36 = vrot.slane %v1202_v29, 9  ;;  %v1246_v31 = vrot.slane %v4542_v11, 5  ;;  %v4142_v10 = vld [vmem:[#allocation2 + $0x20] ss:$8 sps:$4 sm:$0xff]  }
 0x14d   : > { %3891 = vmatpush3.bf16.msra.mxu1 %v4121_v32  ;;  %v1897_v24 = vsel %vm4661_vm11, %v3424_v19, %v1896_v17  ;;  %v1242_v25 = vrot.slane %v4526_v47, 5  ;;  %v1913_v50 = vsel %vm4661_vm11, %v3428_v35, %v1912_v37  ;;  %v1204_v32 = vld [vmem:[#allocation2 + $0x38] sm:$0xe]  ;;  %v4137_v47 = vld [vmem:[%s5053_s3 + $0x198] sm:$0xff]   ;;  %v1254_v51 = vrot.slane %v4578_v52, 5  ;;  %v4147_v3 = vld [vmem:[%s5053_s3 + $0x1d0] sm:$0xff]  }
 0x14e   : > { %3892 = vmatprep.subr.bf16.mxu1 %v4124_v33  ;;  %v3447_v26 = vcombine.low %v1897_v24, %v1901_v53  ;;  %v1917_v46 = vsel %vm4661_vm11, %v3429_v0, %v1916_v38  ;;  %v1247_v11 = vsel %vm4661_vm11, %v3335_v36, %v1246_v31  ;;  %v3336_v54 = vrot.slane %v1203_v49, 9  ;;  %v4145_v19 = vld [vmem:[%s5053_s3 + $0x1c8] sm:$0xff]   ;;  %v4148_v29 = vld [vmem:[%s5053_s3 + $0x1d8] sm:$0xff]   ;;  %v4149_v0 = vld [vmem:[%s5053_s3 + $0x1e0] sm:$0xff]  }
 0x14f   : > { %3815 = vmatpush3.bf16.msra.mxu0 %v4120_v43  ;;  %v1201_v43 = vld [vmem:[#allocation2 + $0x20] sm:$0xe]  ;;  %v3449_v58 = vcombine.low %v1913_v50, %v1917_v46  ;;  %v2269_v53 = vshll.u32 %v4792_v13, 16  ;;  %v2249_v35 = vld [vmem:[#allocation2 + $0x28] sm:$0xf]  ;;  %v4150_v46 = vld [vmem:[%s5053_s3 + $0x1e8] sm:$0xff]  }
 0x150   : > { %3816 = vmatprep.subr.bf16.mxu0 %v4123_v14  ;;  %v3334_v45 = vrot.slane %v1201_v43, 9  ;;  %v2253_v37 = vld [vmem:[#allocation2 + $0x38] sm:$0xf]  ;;  %v2247_v38 = vld [vmem:[#allocation2 + $0x20] sm:$0xf]  ;;  %v2302_v43 = vshrl.u32 %v2249_v35, 16 }
 0x151   : > { %3893 = vmatpush3.bf16.msra.mxu1 %v4124_v33  ;;  %v4136_v33 = vld [vmem:[#allocation2 + $0x10] ss:$8 sps:$4 sm:$0xff]   ;;  %v2271_v24 = vrot.slane %v2269_v53, 5  ;;  %v2305_v36 = vshll.u32 %v2249_v35, 16  ;;  %v2291_v50 = vshll.u32 %v2247_v38, 16 }
 0x152   : > { %3809 = vmatmul.mubr.bf16.gmra.mrb[20].mxu0 %v3321_v56  ;;  %3894 = vmatprep.subr.bf16.mxu1 %v4126_v57  ;;  %v1243_v1 = vsel %vm4661_vm11, %v3334_v45, %v1242_v25  ;;  %v1250_v56 = vrot.slane %v4575_v55, 5  ;;  %v2245_v55 = vld [vmem:[#allocation2 + $0x18] sm:$0xf]  ;;  %v2251_v31 = vld [vmem:[#allocation2 + $0x30] sm:$0xf]  ;;  %v2333_v45 = vshll.u32 %v2253_v37, 16 }
 0x153   : > { %3817 = vmatpush3.bf16.msra.mxu0 %v4123_v14  ;;  %3828 = vmatprep.mubr.bf16.mxu0 %v3354_v59  ;;  %v3356_v41 = vcombine.low %v1243_v1, %v1247_v11  ;;  %v3337_v14 = vrot.slane %v1204_v32, 9  ;;  %v2243_v59 = vld [vmem:[#allocation2 + $0x10] sm:$0xf]  ;;  %v2288_v25 = vshrl.u32 %v2247_v38, 16  ;;  %v2316_v11 = vshrl.u32 %v2251_v31, 16 }
 0x154   : > { %3818 = vmatprep.subr.bf16.mxu0 %v4125_v61  ;;  %v1251_v52 = vsel %vm4661_vm11, %v3336_v54, %v1250_v56  ;;  %v2260_v2 = vshrl.u32 %v2243_v59, 16  ;;  %v2263_v4 = vshll.u32 %v2243_v59, 16  ;;  %v2319_v32 = vshll.u32 %v2251_v31, 16  ;;  %v4823_v59 = vld [vmem:[#allocation2 + $0x3c] sm:$0x1] }
 0x155   : > { %3895 = vmatpush3.bf16.msra.mxu1 %v4126_v57  ;;  %v1255_v57 = vsel %vm4661_vm11, %v3337_v14, %v1254_v51  ;;  %v2304_v1 = vrot.slane %v2302_v43, 4  ;;  %v4151_v14 = vld [vmem:[%s5053_s3 + $0x1f0] sm:$0xff]   ;;  %v2290_v51 = vrot.slane %v2288_v25, 4  ;;  %v2293_v54 = vrot.slane %v2291_v50, 5 }
 0x156   : > { %3896 = vmatprep.subr.bf16.mxu1 %v4128_v63  ;;  %v3357_v39 = vcombine.low %v1251_v52, %v1255_v57  ;;  %v2262_v60 = vrot.slane %v2260_v2, 4  ;;  %v4818_v57 = vld [vmem:[#allocation2 + $0x24] sm:$0x1]  ;;  %v4820_v52 = vld [vmem:[#allocation2 + $0x2c] sm:$0x1]  ;;  %v2339_v2 = vshll.u32 %v4823_v59, 16 }
 0x157   : > { %3819 = vmatpush3.bf16.msra.mxu0 %v4125_v61  ;;  %v4138_v61 = vld [vmem:[%s5053_s3 + $0x1a0] sm:$0xff]   ;;  %v4164_v28 = vld [vmem:[%s5055_s5 + $0x10] ss:$8 sps:$4 sm:$0xff]  }
 0x158   : > { %3820 = vmatprep.subr.bf16.mxu0 %v4127_v18 }
 0x159   : > { %3897 = vmatpush3.bf16.msra.mxu1 %v4128_v63  ;;  %v2274_v63 = vshrl.u32 %v2245_v55, 16 }
 0x15a   : > { %3898 = vmatprep.subr.bf16.mxu1 %v4130_v6 }
 0x15b   : > { %3821 = vmatpush3.bf16.msra.mxu0 %v4127_v18  ;;  %v2277_v18 = vshll.u32 %v2245_v55, 16 }
 0x15c   : > { %3822 = vmatprep.subr.bf16.mxu0 %v4129_v62 }
 0x15d   : > { %3899 = vmatpush3.bf16.msra.mxu1 %v4130_v6  ;;  %v2276_v6 = vrot.slane %v2274_v63, 4  ;;  %v2279_v8 = vrot.slane %v2277_v18, 5 }
 0x15e   : > { %3908 = vmatprep.subr.bf16.mxu1 %v4132_v23 }
 0x15f   : > { %3823 = vmatpush3.bf16.msra.mxu0 %v4129_v62  ;;  %v2265_v62 = vrot.slane %v2263_v4, 5  ;;  %v2280_v12 = vor.u32 %v2279_v8, %v2276_v6  ;;  %v2294_v4 = vor.u32 %v2293_v54, %v2290_v51  ;;  %v4826_v6 = vld [vmem:[#allocation2 + $0x34] sm:$0x1] }
 0x160   : > { %3824 = vmatprep.subr.bf16.mxu0 %v4131_v20  ;;  %3901 = vmatmul.mubr.bf16.vlgmr.msra.gmra.mrb[0].mxu1 %v3447_v26 }
 0x161   : > { %3904 = vmatprep.mubr.bf16.mxu1 %v3448_v27  ;;  %3909 = vmatpush3.bf16.msra.mxu1 %v4132_v23  ;;  %v2266_v17 = vor.u32 %v2265_v62, %v2262_v60  ;;  %v2283_v23 = vshll.u32 %v4790_v9, 16  ;;  %v2281_v7 = vrot.slane %v2280_v12, 4  ;;  %v4146_v27 = vld [vmem:[#allocation2 + $0x40] ss:$8 sps:$4 sm:$0xff]   ;;  %v2297_v60 = vshll.u32 %v4818_v57, 16 }
 0x162   : > { %3910 = vmatprep.subr.bf16.mxu1 %v4134_v16  ;;  %v2325_v12 = vshll.u32 %v4826_v6, 16 }
 0x163   : > { %3825 = vmatpush3.bf16.msra.mxu0 %v4131_v20  ;;  %v4144_v20 = vld [vmem:[#allocation2 + $0x30] ss:$8 sps:$4 sm:$0xff]   ;;  %v2267_v21 = vrot.slane %v2266_v17, 4  ;;  %v2285_v22 = vrot.slane %v2283_v23, 5 }
 0x164   : > { %3826 = vmatprep.subr.bf16.mxu0 %v4133_v30 }
 0x165   : > { %3911 = vmatpush3.bf16.msra.mxu1 %v4134_v16  ;;  %v2286_v26 = vsel %vm4480_vm8, %v2281_v7, %v2285_v22  ;;  %v2272_v16 = vsel %vm4480_vm8, %v2267_v21, %v2271_v24  ;;  %v2341_v7 = vrot.slane %v2339_v2, 5  ;;  %v4833_v21 = vld [vmem:[#allocation2 + $0x4c] sm:$0x1]  ;;  %v4153_v22 = vld [vmem:[%s5053_s3 + $0x200] sm:$0xff]   ;;  %v2563_v2 = vrot.slane %v4820_v52, 5 }
 0x166   : > { %3912 = vmatprep.subr.bf16.mxu1 %v4135_v40 }
 0x167   : > { %3827 = vmatpush3.bf16.msra.mxu0 %v4133_v30  ;;  %v3502_v30 = vcombine.low %v2272_v16, %v2286_v26  ;;  %v2327_v26 = vrot.slane %v2325_v12, 5 }
 0x168   : > { %3905 = vmatmul.mubr.bf16.gmra.mrb[4].mxu1 %v3449_v58  ;;  %v2257_v58 = vld [vmem:[#allocation2 + $0x48] sm:$0xf] }
 0x169   : > { %3913 = vmatpush3.bf16.msra.mxu1 %v4135_v40  ;;  %3924 = vmatprep.mubr.bf16.mxu1 %v4136_v33  ;;  %v2330_v40 = vshrl.u32 %v2253_v37, 16  ;;  %v2255_v33 = vld [vmem:[#allocation2 + $0x40] sm:$0xf]  ;;  %v2358_v56 = vshrl.u32 %v2257_v58, 16 }
 0x16a   : > { %3829 = vmatmul.mubr.bf16.vlgmr.msra.gmra.mrb[16].mxu0 %v3355_v42  ;;  %3914 = vmatprep.subr.bf16.mxu1 %v4137_v47  ;;  %v4140_v42 = vld [vmem:[%s5053_s3 + $0x1b0] sm:$0xff]   ;;  %v2344_v63 = vshrl.u32 %v2255_v33, 16  ;;  %v2347_v18 = vshll.u32 %v2255_v33, 16  ;;  %v2551_v33 = vrot.slane %v4792_v13, 5 }
 0x16b   : > { %3832 = vmatprep.mubr.bf16.mxu0 %v3356_v41  ;;  %v2332_v49 = vrot.slane %v2330_v40, 4  ;;  %v2335_v41 = vrot.slane %v2333_v45, 5  ;;  %v2360_v8 = vrot.slane %v2358_v56, 4  ;;  %v4154_v45 = vld [vmem:[%s5053_s3 + $0x208] sm:$0xff]  }
 0x16c   : > { %v2346_v23 = vrot.slane %v2344_v63, 4  ;;  %v4160_v63 = vld [vmem:[%s5053_s3 + $0x238] sm:$0xff]  }
 0x16d   : > { %3915 = vmatpush3.bf16.msra.mxu1 %v4137_v47  ;;  %v2307_v47 = vrot.slane %v2305_v36, 5  ;;  %v2526_v36 = vld [vmem:[#allocation2 + $0x18] sm:$0xe] }
 0x16e   : > { %3916 = vmatprep.subr.bf16.mxu1 %v4138_v61 }
 0x16f   : > { %v2308_v55 = vor.u32 %v2307_v47, %v2304_v1  ;;  %v3515_v1 = vrot.slane %v2526_v36, 9  ;;  %v2555_v47 = vrot.slane %v4790_v9, 5  ;;  %v4176_v36 = vld [vmem:[%s5055_s5 + $0x50] ss:$8 sps:$4 sm:$0xff]  }
 0x171   : > { %3917 = vmatpush3.bf16.msra.mxu1 %v4138_v61  ;;  %v2361_v61 = vshll.u32 %v2257_v58, 16  ;;  %v2525_v58 = vld [vmem:[#allocation2 + $0x10] sm:$0xe]  ;;  %v2556_v54 = vsel %vm4661_vm11, %v3515_v1, %v2555_v47 }
 0x172   : > { %3833 = vmatmul.mubr.bf16.gmra.mrb[20].mxu0 %v3357_v39  ;;  %3918 = vmatprep.subr.bf16.mxu1 %v4139_v5  ;;  %v2321_v39 = vrot.slane %v2319_v32, 5 }
 0x173   : > { %2902 = vmatprep.mubr.bf16.mxu0 %v4217_v34 }
 0x175   : > { %3919 = vmatpush3.bf16.msra.mxu1 %v4139_v5  ;;  %v2318_v5 = vrot.slane %v2316_v11, 4 }
 0x176   : > { %3920 = vmatprep.subr.bf16.mxu1 %v4140_v42 }
 0x177   : > { %v2322_v62 = vor.u32 %v2321_v39, %v2318_v5  ;;  %v4158_v5 = vld [vmem:[%s5053_s3 + $0x228] sm:$0xff]   ;;  %v4159_v39 = vld [vmem:[%s5053_s3 + $0x230] sm:$0xff]  }
 0x179   : > { %3921 = vmatpush3.bf16.msra.mxu1 %v4140_v42  ;;  %v2311_v42 = vshll.u32 %v4820_v52, 16  ;;  %v2323_v24 = vrot.slane %v2322_v62, 4  ;;  %v2559_v62 = vrot.slane %v4818_v57, 5  ;;  %v2531_v52 = vld [vmem:[#allocation2 + $0x40] sm:$0xe] }
 0x17a   : > { %3922 = vmatprep.subr.bf16.mxu1 %v4141_v48 }
 0x17b   : > { %v2313_v17 = vrot.slane %v2311_v42, 5  ;;  %v2328_v40 = vsel %vm4480_vm8, %v2323_v24, %v2327_v26  ;;  %v2530_v42 = vld [vmem:[#allocation2 + $0x38] sm:$0xe] }
 0x17d   : > { %3923 = vmatpush3.bf16.msra.mxu1 %v4141_v48  ;;  %v2336_v48 = vor.u32 %v2335_v41, %v2332_v49  ;;  %v4155_v49 = vld [vmem:[%s5053_s3 + $0x210] sm:$0xff]   ;;  %v3514_v41 = vrot.slane %v2525_v58, 9 }
 0x17e   : > { %3932 = vmatprep.subr.bf16.mxu1 %v4143_v15 }
 0x17f   : > { %v2337_v53 = vrot.slane %v2336_v48, 4  ;;  %v2552_v56 = vsel %vm4661_vm11, %v3514_v41, %v2551_v33 }
 0x180   : > { %3925 = vmatmul.mubr.bf16.vlgmr.msra.gmra.mrb[0].mxu1 %v4142_v10  ;;  %v2363_v10 = vrot.slane %v2361_v61, 5  ;;  %v4156_v61 = vld [vmem:[%s5053_s3 + $0x218] sm:$0xff]   ;;  %v3538_v13 = vcombine.low %v2552_v56, %v2556_v54 }
 0x181   : > { %3928 = vmatprep.mubr.bf16.mxu1 %v4144_v20  ;;  %3933 = vmatpush3.bf16.msra.mxu1 %v4143_v15  ;;  %v4152_v15 = vld [vmem:[%s5053_s3 + $0x1f8] sm:$0xff]   ;;  %v2349_v20 = vrot.slane %v2347_v18, 5  ;;  %v2342_v38 = vsel %vm4480_vm8, %v2337_v53, %v2341_v7  ;;  %v2527_v18 = vld [vmem:[#allocation2 + $0x20] sm:$0xe] }
 0x182   : > { %3934 = vmatprep.subr.bf16.mxu1 %v4145_v19  ;;  %v2364_v16 = vor.u32 %v2363_v10, %v2360_v8  ;;  %v3504_v50 = vcombine.low %v2328_v40, %v2342_v38  ;;  %v3519_v8 = vrot.slane %v2530_v42, 9  ;;  %v2567_v10 = vrot.slane %v4826_v6, 5  ;;  %v4175_v38 = vld [vmem:[%s5055_s5 + $0x44] ss:$8 sps:$4 sm:$0xff]   ;;  %v4179_v40 = vld [vmem:[%s5055_s5 + $0x60] ss:$8 sps:$4 sm:$0xff]  }
 0x183   : > { %v2350_v37 = vor.u32 %v2349_v20, %v2346_v23 }
 0x184   : > { %v2365_v25 = vrot.slane %v2364_v16, 4 }
 0x185   : > { %3935 = vmatpush3.bf16.msra.mxu1 %v4145_v19  ;;  %v2309_v19 = vrot.slane %v2308_v55, 4  ;;  %v2528_v55 = vld [vmem:[#allocation2 + $0x28] sm:$0xe] }
 0x186   : > { %3936 = vmatprep.subr.bf16.mxu1 %v4147_v3  ;;  %v3517_v48 = vrot.slane %v2528_v55, 9 }
 0x187   : > { %v2314_v35 = vsel %vm4480_vm8, %v2309_v19, %v2313_v17  ;;  %v2532_v17 = vld [vmem:[#allocation2 + $0x48] sm:$0xe] }
 0x188   : > { %3929 = vmatmul.mubr.bf16.gmra.mrb[4].mxu1 %v4146_v27  ;;  %v4838_v27 = vld [vmem:[#allocation2 + $0x44] sm:$0x1]  ;;  %v2564_v19 = vsel %vm4661_vm11, %v3517_v48, %v2563_v2  ;;  %v3521_v53 = vrot.slane %v2532_v17, 9 }
 0x189   : > { %3937 = vmatpush3.bf16.msra.mxu1 %v4147_v3  ;;  %3948 = vmatprep.mubr.bf16.mxu1 %v3502_v30  ;;  %v2295_v3 = vrot.slane %v2294_v4, 4  ;;  %v2299_v30 = vrot.slane %v2297_v60, 5  ;;  %v2529_v4 = vld [vmem:[#allocation2 + $0x30] sm:$0xe]  ;;  %v3516_v60 = vrot.slane %v2527_v18, 9  ;;  %v2575_v6 = vrot.slane %v4838_v27, 5 }
 0x18a   : > { %3938 = vmatprep.subr.bf16.mxu1 %v4148_v29  ;;  %v3518_v12 = vrot.slane %v2529_v4, 9 }
 0x18b   : > { %v2300_v43 = vsel %vm4480_vm8, %v2295_v3, %v2299_v30  ;;  %v3520_v3 = vrot.slane %v2531_v52, 9  ;;  %v4163_v30 = vld [vmem:[%s5055_s5 + $0x4] ss:$8 sps:$4 sm:$0xff]  }
 0x18c   : > { %v3503_v31 = vcombine.low %v2300_v43, %v2314_v35  ;;  %v2568_v57 = vsel %vm4661_vm11, %v3518_v12, %v2567_v10  ;;  %2870 = vmatprep.subr.bf16.mxu0 %v4163_v30  ;;  %v4167_v35 = vld [vmem:[%s5055_s5 + $0x20] ss:$8 sps:$4 sm:$0xff]  }
 0x18d   : > { %3939 = vmatpush3.bf16.msra.mxu1 %v4148_v29  ;;  %v2367_v29 = vshll.u32 %v4833_v21, 16  ;;  %v2576_v24 = vsel %vm4661_vm11, %v3520_v3, %v2575_v6  ;;  %v4173_v43 = vld [vmem:[%s5055_s5 + $0x40] ss:$8 sps:$4 sm:$0xff]  }
 0x18e   : > { %3940 = vmatprep.subr.bf16.mxu1 %v4149_v0  ;;  %v4188_v30 = vld [vmem:[%s5057_s7 + $0x8] sm:$0xff]  }
 0x18f   : > { %v2369_v32 = vrot.slane %v2367_v29, 5  ;;  %v4161_v29 = vld [vmem:[%s5055_s5] ss:$8 sps:$4 sm:$0xff]  }
 0x190   : > { %2871 = vmatpush1.bf16.msra.mxu0 %v4161_v29  ;;  %v4187_v29 = vld [vmem:[%s5057_s7 + $0x48] sm:$0xff]  }
 0x191   : > { %3941 = vmatpush3.bf16.msra.mxu1 %v4149_v0  ;;  %v2353_v0 = vshll.u32 %v4838_v27, 16  ;;  %v2370_v51 = vsel %vm4480_vm8, %v2365_v25, %v2369_v32  ;;  %v4169_v27 = vld [vmem:[%s5055_s5 + $0x24] ss:$8 sps:$4 sm:$0xff]   ;;  %v4182_v25 = vld [vmem:[%s5055_s5 + $0x70] ss:$8 sps:$4 sm:$0xff]  }
 0x192   : > { %3942 = vmatprep.subr.bf16.mxu1 %v4150_v46 }
 0x193   : > { %v2355_v11 = vrot.slane %v2353_v0, 5  ;;  %v4170_v0 = vld [vmem:[%s5055_s5 + $0x30] ss:$8 sps:$4 sm:$0xff]  }
 0x195   : > { %3943 = vmatpush3.bf16.msra.mxu1 %v4150_v46  ;;  %v2351_v46 = vrot.slane %v2350_v37, 4  ;;  %v4172_v37 = vld [vmem:[%s5055_s5 + $0x34] ss:$8 sps:$4 sm:$0xff]  }
 0x196   : > { %3944 = vmatprep.subr.bf16.mxu1 %v4151_v14 }
 0x199   : > { %3945 = vmatpush3.bf16.msra.mxu1 %v4151_v14  ;;  %v2356_v14 = vsel %vm4480_vm8, %v2351_v46, %v2355_v11 }
 0x19a   : > { %3946 = vmatprep.subr.bf16.mxu1 %v4152_v15  ;;  %v3505_v9 = vcombine.low %v2356_v14, %v2370_v51  ;;  %v3550_v14 = vld [vmem:[%s5054_s4] ss:$0 sm:$0xff] }
 0x19d   : > { %3947 = vmatpush3.bf16.msra.mxu1 %v4152_v15  ;;  %v2571_v15 = vrot.slane %v4823_v59, 5  ;;  %v2560_v59 = vsel %vm4661_vm11, %v3516_v60, %v2559_v62 }
 0x19e   : > { %3956 = vmatprep.subr.bf16.mxu1 %v4153_v22  ;;  %v3539_v20 = vcombine.low %v2560_v59, %v2564_v19 }
 0x19f   : > { %v2572_v23 = vsel %vm4661_vm11, %v3519_v8, %v2571_v15 }
 0x1a0   : > { %3949 = vmatmul.mubr.bf16.vlgmr.msra.gmra.mrb[0].mxu1 %v3503_v31  ;;  %v3540_v7 = vcombine.low %v2568_v57, %v2572_v23  ;;  %v4178_v31 = vld [vmem:[%s5055_s5 + $0x54] ss:$8 sps:$4 sm:$0xff]  }
 0x1a1   : > { %3952 = vmatprep.mubr.bf16.mxu1 %v3504_v50  ;;  %3957 = vmatpush3.bf16.msra.mxu1 %v4153_v22  ;;  %v2579_v22 = vrot.slane %v4833_v21, 5  ;;  %v4166_v21 = vld [vmem:[%s5055_s5 + $0x14] ss:$8 sps:$4 sm:$0xff]  }
 0x1a2   : > { %3958 = vmatprep.subr.bf16.mxu1 %v4154_v45  ;;  %2872 = vmatprep.subr.bf16.mxu0 %v4166_v21  ;;  %v4184_v50 = vld [vmem:[%s5055_s5 + $0x74] ss:$8 sps:$4 sm:$0xff]  }
 0x1a3   : > { %v2580_v26 = vsel %vm4661_vm11, %v3521_v53, %v2579_v22  ;;  %2873 = vmatpush1.bf16.msra.mxu0 %v4164_v28  ;;  %v4190_v21 = vld [vmem:[%s5057_s7 + $0x10] sm:$0xff]   ;;  %v4191_v28 = vld [vmem:[%s5057_s7 + $0x58] sm:$0xff]  }
 0x1a4   : > { %v3541_v16 = vcombine.low %v2576_v24, %v2580_v26  ;;  %2874 = vmatprep.subr.bf16.mxu0 %v4169_v27  ;;  %v4185_v26 = vld [vmem:[%s5057_s7 + $0x40] sm:$0xff]   ;;  %v4192_v27 = vld [vmem:[%s5057_s7 + $0x18] sm:$0xff]  }
 0x1a5   : > { %3959 = vmatpush3.bf16.msra.mxu1 %v4154_v45  ;;  %v4181_v45 = vld [vmem:[%s5055_s5 + $0x64] ss:$8 sps:$4 sm:$0xff]  }
 0x1a6   : > { %3960 = vmatprep.subr.bf16.mxu1 %v4155_v49 }
 0x1a7   : > { %2875 = vmatpush1.bf16.msra.mxu0 %v4167_v35  ;;  %v4193_v35 = vld [vmem:[%s5057_s7 + $0x60] sm:$0xff]  }
 0x1a8   : > { %3953 = vmatmul.mubr.bf16.gmra.mrb[4].mxu1 %v3505_v9  ;;  %2876 = vmatprep.subr.bf16.mxu0 %v4172_v37  ;;  %v4194_v37 = vld [vmem:[%s5057_s7 + $0x20] sm:$0xff]  }
 0x1a9   : > { %3961 = vmatpush3.bf16.msra.mxu1 %v4155_v49  ;;  %3972 = vmatprep.mubr.bf16.mxu1 %v3538_v13 }
 0x1aa   : > { %3962 = vmatprep.subr.bf16.mxu1 %v4156_v61 }
 0x1ab   : > { %2877 = vmatpush1.bf16.msra.mxu0 %v4170_v0  ;;  %v4195_v0 = vld [vmem:[%s5057_s7 + $0x68] sm:$0xff]  }
 0x1ac   : > { %2878 = vmatprep.subr.bf16.mxu0 %v4175_v38  ;;  %v4196_v38 = vld [vmem:[%s5057_s7 + $0x28] sm:$0xff]  }
 0x1ad   : > { %3963 = vmatpush3.bf16.msra.mxu1 %v4156_v61 }
 0x1ae   : > { %3964 = vmatprep.subr.bf16.mxu1 %v4157_v44 }
 0x1af   : > { %2879 = vmatpush1.bf16.msra.mxu0 %v4173_v43  ;;  %v4197_v43 = vld [vmem:[%s5057_s7 + $0x70] sm:$0xff]  }
 0x1b0   : > { %2880 = vmatprep.subr.bf16.mxu0 %v4178_v31  ;;  %v4199_v31 = vld [vmem:[%s5057_s7 + $0x78] sm:$0xff]  }
 0x1b1   : > { %3965 = vmatpush3.bf16.msra.mxu1 %v4157_v44 }
 0x1b2   : > { %3966 = vmatprep.subr.bf16.mxu1 %v4158_v5 }
 0x1b3   : > { %2881 = vmatpush1.bf16.msra.mxu0 %v4176_v36  ;;  %v4198_v36 = vld [vmem:[%s5057_s7 + $0x30] sm:$0xff]  }
 0x1b4   : > { %2882 = vmatprep.subr.bf16.mxu0 %v4181_v45  ;;  %v2780_v45 = vlaneseq }
 0x1b5   : > { %3967 = vmatpush3.bf16.msra.mxu1 %v4158_v5 }
 0x1b6   : > { %3968 = vmatprep.subr.bf16.mxu1 %v4159_v39 }
 0x1b7   : > { %2883 = vmatpush1.bf16.msra.mxu0 %v4179_v40  ;;  %v4200_v40 = vld [vmem:[%s5057_s7 + $0x38] sm:$0xff]  }
 0x1b8   : > { %2884 = vmatprep.subr.bf16.mxu0 %v4184_v50 }
 0x1b9   : > { %3969 = vmatpush3.bf16.msra.mxu1 %v4159_v39 }
 0x1ba   : > { %3970 = vmatprep.subr.bf16.mxu1 %v4160_v63 }
 0x1bb   : > { %2885 = vmatpush1.bf16.msra.mxu0 %v4182_v25  ;;  %v5001_v25 = vshrl.u32 %v2780_v45, 7 }
 0x1bc   : > { %3742 = vmatprep.subr.bf16.mxu0 %v4185_v26 }
 0x1bd   : > { %3971 = vmatpush3.bf16.msra.mxu1 %v4160_v63  ;;  %v2782_v50 = vsub.s32 0, %v5001_v25 }
 0x1c0   : > { %3973 = vmatmul.mubr.bf16.vlgmr.msra.gmra.mrb[0].mxu1 %v3539_v20 }
 0x1c1   : > { %3976 = vmatprep.mubr.bf16.mxu1 %v3540_v7 }
 0x1c8   : > { %3977 = vmatmul.mubr.bf16.gmra.mrb[4].mxu1 %v3541_v16  ;;  %v4186_v16 = vld [vmem:[%s5057_s7] sm:$0xff]  }
 0x23d   : > { %v3830_v46 = vpop.f32.mrb[16].mxu0 }
 0x23e   : > { %v1371_v11 = vpop.f32.mrb[17].mxu0 }
 0x23f   : > { %v3831_v32 = vpop.f32.mrb[18].mxu0 }
 0x240   : > { %v1374_v58 = vpop.f32.mrb[19].mxu0 }
 0x245   : > { %v3834_v1 = vpop.f32.mrb[20].mxu0 }
 0x246   : > { %v1387_v47 = vpop.f32.mrb[21].mxu0 }
 0x247   : > { %v3835_v49 = vpop.f32.mrb[22].mxu0 }
 0x248   : > { %v1390_v41 = vpop.f32.mrb[23].mxu0 }
 0x293   : > { %v3974_v33 = vpop.f32.mrb[0].mxu1 }
 0x294   : > { %v3980_v51 = vadd.f32 %v3974_v33, %v3830_v46  ;;  %v2696_v54 = vpop.f32.mrb[1].mxu1  ;;  %v2778_v46 = vld [vmem:[%s5056_s6] sm:$0x3] }
 0x295   : > { %v3981_v9 = vadd.f32 %v2696_v54, %v1371_v11  ;;  %v3975_v56 = vpop.f32.mrb[2].mxu1  ;;  %v2786_v11 = vsub.s32 1, %v5001_v25 }
 0x296   : > { %v2744_v61 = vadd.f32 %v3980_v51, %v3550_v14  ;;  %v3982_v13 = vadd.f32 %v3975_v56, %v3831_v32  ;;  %v2699_v44 = vpop.f32.mrb[3].mxu1  ;;  %v5010_v32 = vrot.slane %v2778_v46, %v2782_v50  ;;  %v4202_v51 = vld [vmem:[%s4309_s13 + $0x8] sm:$0xff] }
 0x297   : > { %v2742_v5 = vadd.f32 %v3981_v9, %v3550_v14  ;;  %v3983_v39 = vadd.f32 %v2699_v44, %v1374_v58  ;;  %v5012_v58 = vrot.slane %v2778_v46, %v2786_v11  ;;  %v2945_v54 = vunpack.c.l.bf16 %v4202_v51 }
 0x298   : > { %v2745_v55 = vadd.f32 %v3982_v13, %v3550_v14  ;;  %v2752_v63 = vmax.f32 %v2744_v61, 0.0  ;;  %v2946_v61 = vunpack.c.h.bf16 %v4202_v51 }
 0x299   : > { %v2743_v42 = vadd.f32 %v3983_v39, %v3550_v14  ;;  %v2750_v48 = vmax.f32 %v2742_v5, 0.0 }
 0x29a   : > { %v2753_v18 = vmax.f32 %v2745_v55, 0.0 }
 0x29b   : > { %v2751_v2 = vmax.f32 %v2743_v42, 0.0  ;;  %v3978_v4 = vpop.f32.mrb[4].mxu1 }
 0x29c   : > { %v3984_v8 = vadd.f32 %v3978_v4, %v3834_v1  ;;  %v2712_v15 = vpop.f32.mrb[5].mxu1  ;;  %v2759_v60 = vpack.c.bf16 %v2753_v18, %v2752_v63  ;;  %v4201_v1 = vld [vmem:[%s4309_s13] sm:$0xff] }
 0x29d   : > { %v2758_v62 = vpack.c.bf16 %v2751_v2, %v2750_v48  ;;  %v3985_v12 = vadd.f32 %v2712_v15, %v1387_v47  ;;  %v3979_v10 = vpop.f32.mrb[6].mxu1  ;;  %v2943_v47 = vunpack.c.l.bf16 %v4201_v1  ;;  %v4203_v2 = vld [vmem:[%s4309_s13 + $0x10] sm:$0xff] }
 0x29e   : > { %v2748_v19 = vadd.f32 %v3984_v8, %v3550_v14  ;;  %v3986_v17 = vadd.f32 %v3979_v10, %v3835_v49  ;;  %v2715_v23 = vpop.f32.mrb[7].mxu1  ;;  %v2947_v4 = vunpack.c.l.bf16 %v4203_v2 }
 0x29f   : > { %v2746_v52 = vadd.f32 %v3985_v12, %v3550_v14  ;;  %v3987_v59 = vadd.f32 %v2715_v23, %v1390_v41  ;;  %2903 = vmatmul.mubr.bf16.vlgmr.msra.gmra.mrb[24].mxu0 %v2758_v62  ;;  %v2944_v41 = vunpack.c.h.bf16 %v4201_v1  ;;  %v2948_v62 = vunpack.c.h.bf16 %v4203_v2 }
 0x2a0   : > { %v2749_v20 = vadd.f32 %v3986_v17, %v3550_v14  ;;  %2912 = vmatprep.mubr.bf16.mxu0 %v4217_v34  ;;  %v2756_v53 = vmax.f32 %v2748_v19, 0.0  ;;  %3743 = vmatpush3.bf16.msra.mxu0 %v4186_v16  ;;  %v4204_v17 = vld [vmem:[%s4309_s13 + $0x18] sm:$0xff] }
 0x2a1   : > { %v2747_v57 = vadd.f32 %v3987_v59, %v3550_v14  ;;  %v2754_v3 = vmax.f32 %v2746_v52, 0.0  ;;  %3744 = vmatprep.subr.bf16.mxu0 %v4187_v29  ;;  %v2949_v23 = vunpack.c.l.bf16 %v4204_v17 }
 0x2a2   : > { %v2757_v7 = vmax.f32 %v2749_v20, 0.0 }
 0x2a3   : > { %v2755_v6 = vmax.f32 %v2747_v57, 0.0  ;;  %v2950_v57 = vunpack.c.h.bf16 %v4204_v17 }
 0x2a4   : > { %v2761_v22 = vpack.c.bf16 %v2757_v7, %v2756_v53  ;;  %3745 = vmatpush3.bf16.msra.mxu0 %v4188_v30 }
 0x2a5   : > { %v2760_v24 = vpack.c.bf16 %v2755_v6, %v2754_v3 }
 0x2a7   : > { %2913 = vmatmul.mubr.bf16.gmra.mrb[28].mxu0 %v2759_v60 }
 0x2a8   : > { %2922 = vmatprep.mubr.bf16.mxu0 %v4217_v34 }
 0x2af   : > { %2923 = vmatmul.mubr.bf16.gmra.mrb[32].mxu0 %v2760_v24 }
 0x2b0   : > { %2932 = vmatprep.mubr.bf16.mxu0 %v4217_v34  ;;  %v4189_v34 = vld [vmem:[%s5057_s7 + $0x50] sm:$0xff]  }
 0x2b1   : > { %3746 = vmatprep.subr.bf16.mxu0 %v4189_v34 }
 0x2b2   : > { %3747 = vmatpush3.bf16.msra.mxu0 %v4190_v21  ;;  %v4205_v21 = vld [vmem:[%s4309_s13 + $0x20] sm:$0xff] }
 0x2b3   : > { %3748 = vmatprep.subr.bf16.mxu0 %v4191_v28  ;;  %v2951_v28 = vunpack.c.l.bf16 %v4205_v21 }
 0x2b6   : > { %3749 = vmatpush3.bf16.msra.mxu0 %v4192_v27 }
 0x2b7   : > { %2933 = vmatmul.mubr.bf16.gmra.mrb[36].mxu0 %v2761_v22  ;;  %3750 = vmatprep.subr.bf16.mxu0 %v4193_v35 }
 0x2ba   : > { %3751 = vmatpush3.bf16.msra.mxu0 %v4194_v37 }
 0x2bb   : > { %3752 = vmatprep.subr.bf16.mxu0 %v4195_v0  ;;  %v2952_v0 = vunpack.c.h.bf16 %v4205_v21 }
 0x2be   : > { %3753 = vmatpush3.bf16.msra.mxu0 %v4196_v38 }
 0x2bf   : > { %3754 = vmatprep.subr.bf16.mxu0 %v4197_v43 }
 0x2c2   : > { %3755 = vmatpush3.bf16.msra.mxu0 %v4198_v36 }
 0x2c3   : > { %3756 = vmatprep.subr.bf16.mxu0 %v4199_v31  ;;  %v4206_v31 = vld [vmem:[%s4309_s13 + $0x28] sm:$0xff] }
 0x2c4   : > { %v2954_v1 = vunpack.c.h.bf16 %v4206_v31 }
 0x2c6   : > { %3757 = vmatpush3.bf16.msra.mxu0 %v4200_v40  ;;  %v2953_v40 = vunpack.c.l.bf16 %v4206_v31 }
 0x372   : > { %v2904_v49 = vpop.f32.mrb[24].mxu0 }
 0x373   : > { %v2905_v33 = vadd.f32 %v2904_v49, %v5010_v32  ;;  %v2906_v14 = vpop.f32.mrb[25].mxu0 }
 0x374   : > { %v2907_v9 = vadd.f32 %v2906_v14, %v5012_v58  ;;  %v2908_v56 = vpop.f32.mrb[26].mxu0 }
 0x375   : > { %v2959_v13 = vadd.f32 %v2943_v47, %v2905_v33  ;;  %v2909_v44 = vadd.f32 %v2908_v56, %v5010_v32  ;;  %v2910_v5 = vpop.f32.mrb[27].mxu0 }
 0x376   : > { %v2960_v39 = vadd.f32 %v2944_v41, %v2907_v9  ;;  %v2911_v55 = vadd.f32 %v2910_v5, %v5012_v58 }
 0x377   : > { %v2961_v42 = vadd.f32 %v2945_v54, %v2909_v44  ;;  %v2975_v18 = vmax.f32 %v2959_v13, 0.0  ;;  %v4207_v44 = vld [vmem:[%s4309_s13 + $0x30] sm:$0xff] }
 0x378   : > { %v2962_v63 = vadd.f32 %v2946_v61, %v2911_v55  ;;  %v2976_v8 = vmax.f32 %v2960_v39, 0.0  ;;  %v2955_v5 = vunpack.c.l.bf16 %v4207_v44 }
 0x379   : > { %v2977_v48 = vmax.f32 %v2961_v42, 0.0 }
 0x37a   : > { %v2978_v15 = vmax.f32 %v2962_v63, 0.0  ;;  %v2914_v60 = vpop.f32.mrb[28].mxu0  ;;  %v2956_v63 = vunpack.c.h.bf16 %v4207_v44 }
 0x37b   : > { %v2991_v12 = vadd.f32 %v2977_v48, %v2975_v18  ;;  %v2915_v10 = vadd.f32 %v2914_v60, %v5010_v32  ;;  %v2916_v19 = vpop.f32.mrb[29].mxu0 }
 0x37c   : > { %v3004_v52 = vadd.f32 %v2978_v15, %v2976_v8  ;;  %v2917_v59 = vadd.f32 %v2916_v19, %v5012_v58  ;;  %v2918_v20 = vpop.f32.mrb[30].mxu0 }
 0x37d   : > { %v2963_v53 = vadd.f32 %v2947_v4, %v2915_v10  ;;  %v2919_v7 = vadd.f32 %v2918_v20, %v5010_v32  ;;  %v2920_v3 = vpop.f32.mrb[31].mxu0  ;;  %v4208_v4 = vld [vmem:[%s4309_s13 + $0x38] sm:$0xff] }
 0x37e   : > { %v2964_v6 = vadd.f32 %v2948_v62, %v2917_v59  ;;  %v2921_v22 = vadd.f32 %v2920_v3, %v5012_v58  ;;  %v2957_v8 = vunpack.c.l.bf16 %v4208_v4 }
 0x37f   : > { %v2979_v24 = vmax.f32 %v2963_v53, 0.0  ;;  %v2965_v26 = vadd.f32 %v2949_v23, %v2919_v7 }
 0x380   : > { %v2980_v16 = vmax.f32 %v2964_v6, 0.0  ;;  %v2966_v29 = vadd.f32 %v2950_v57, %v2921_v22 }
 0x381   : > { %v2992_v30 = vadd.f32 %v2991_v12, %v2979_v24  ;;  %v2981_v34 = vmax.f32 %v2965_v26, 0.0  ;;  %v2958_v12 = vunpack.c.h.bf16 %v4208_v4 }
 0x382   : > { %v3005_v27 = vadd.f32 %v3004_v52, %v2980_v16  ;;  %v2982_v35 = vmax.f32 %v2966_v29, 0.0  ;;  %v2924_v37 = vpop.f32.mrb[32].mxu0 }
 0x383   : > { %v2993_v38 = vadd.f32 %v2992_v30, %v2981_v34  ;;  %v2925_v43 = vadd.f32 %v2924_v37, %v5010_v32  ;;  %v2926_v36 = vpop.f32.mrb[33].mxu0 }
 0x384   : > { %v3006_v45 = vadd.f32 %v3005_v27, %v2982_v35  ;;  %v2927_v46 = vadd.f32 %v2926_v36, %v5012_v58  ;;  %v2928_v11 = vpop.f32.mrb[34].mxu0 }
 0x385   : > { %v2967_v47 = vadd.f32 %v2951_v28, %v2925_v43  ;;  %v2929_v49 = vadd.f32 %v2928_v11, %v5010_v32  ;;  %v2930_v41 = vpop.f32.mrb[35].mxu0 }
 0x386   : > { %v2968_v33 = vadd.f32 %v2952_v0, %v2927_v46  ;;  %v2931_v14 = vadd.f32 %v2930_v41, %v5012_v58 }
 0x387   : > { %v2983_v51 = vmax.f32 %v2967_v47, 0.0  ;;  %v2969_v54 = vadd.f32 %v2953_v40, %v2929_v49 }
 0x388   : > { %v2984_v9 = vmax.f32 %v2968_v33, 0.0  ;;  %v2970_v56 = vadd.f32 %v2954_v1, %v2931_v14 }
 0x389   : > { %v2994_v61 = vadd.f32 %v2993_v38, %v2983_v51  ;;  %v2985_v13 = vmax.f32 %v2969_v54, 0.0 }
 0x38a   : > { %v3007_v39 = vadd.f32 %v3006_v45, %v2984_v9  ;;  %v2986_v55 = vmax.f32 %v2970_v56, 0.0  ;;  %v2934_v42 = vpop.f32.mrb[36].mxu0  ;;  %v3054_v45 = vld [vmem:[%s5058_s8] sm:$0x1] }
 0x38b   : > { %v2995_v18 = vadd.f32 %v2994_v61, %v2985_v13  ;;  %v2935_v48 = vadd.f32 %v2934_v42, %v5010_v32  ;;  %v2936_v2 = vpop.f32.mrb[37].mxu0 }
 0x38c   : > { %v3008_v15 = vadd.f32 %v3007_v39, %v2986_v55  ;;  %v2937_v60 = vadd.f32 %v2936_v2, %v5012_v58  ;;  %v2938_v62 = vpop.f32.mrb[38].mxu0 }
 0x38d   : > { %v2971_v10 = vadd.f32 %v2955_v5, %v2935_v48  ;;  %v2939_v19 = vadd.f32 %v2938_v62, %v5010_v32  ;;  %v2940_v17 = vpop.f32.mrb[39].mxu0 }
 0x38e   : > { %v2972_v23 = vadd.f32 %v2956_v63, %v2937_v60  ;;  %v2941_v52 = vadd.f32 %v2940_v17, %v5012_v58 }
 0x38f   : > { %v2987_v59 = vmax.f32 %v2971_v10, 0.0  ;;  %v2973_v20 = vadd.f32 %v2957_v8, %v2939_v19 }
 0x390   : > { %v2988_v57 = vmax.f32 %v2972_v23, 0.0  ;;  %v2974_v53 = vadd.f32 %v2958_v12, %v2941_v52 }
 0x391   : > { %v2996_v7 = vadd.f32 %v2995_v18, %v2987_v59  ;;  %v2989_v3 = vmax.f32 %v2973_v20, 0.0 }
 0x392   : > { %v3009_v6 = vadd.f32 %v3008_v15, %v2988_v57  ;;  %v2990_v22 = vmax.f32 %v2974_v53, 0.0 }
 0x393   : > { %v2997_v24 = vadd.f32 %v2996_v7, %v2989_v3 }
 0x394   : > { %v3010_v26 = vadd.f32 %v3009_v6, %v2990_v22 }
 0x395   : > { %v2998_v16 = vrot.slane %v2997_v24, 4 }
 0x396   : > { %v3011_v29 = vrot.slane %v3010_v26, 4 }
 0x397   : > { %v2999_v30 = vadd.f32 %v2998_v16, %v2997_v24 }
 0x398   : > { %v3012_v34 = vadd.f32 %v3011_v29, %v3010_v26 }
 0x399   : > { %v3000_v21 = vrot.slane %v2999_v30, 2 }
 0x39a   : > { %v3013_v32 = vrot.slane %v3012_v34, 2 }
 0x39b   : > { %v3001_v28 = vadd.f32 %v3000_v21, %v2999_v30 }
 0x39c   : > { %v3014_v27 = vadd.f32 %v3013_v32, %v3012_v34 }
 0x39d   : > { %v3002_v58 = vrot.slane %v3001_v28, 1 }
 0x39e   : > { %v3015_v35 = vrot.slane %v3014_v27, 1 }
 0x39f   : > { %v3003_v37 = vadd.f32 %v3002_v58, %v3001_v28 }
 0x3a0   : > { %v3016_v0 = vadd.f32 %v3015_v35, %v3014_v27 }
 0x3a1   : > { %v3018_v38 = vmul.f32 0.015625, %v3003_v37 }
 0x3a2   : > { %v3019_v43 = vmul.f32 0.015625, %v3016_v0 }
 0x3a3   : > { %v3020_v31 = vpack.c.bf16 %v3018_v38, %v3018_v38 }
 0x3a4   : > { %v3021_v36 = vpack.c.bf16 %v3019_v43, %v3019_v43 }
 0x3a6   : > { %3183 = vmatprep.mubr.bf16.mxu0 %v3021_v36 }
 0x3a7   : > { %3184 = vmatmul.mubr.bf16.vlgmr.msra.gmra.mrb[40].mxu0 %v3020_v31 }
 0x47a   : > { %v3758_v40 = vpop.f32.mrb[40].mxu0 }
 0x47b   : > { %v3759_v46 = vpop.f32.mrb[41].mxu0 }
 0x47c   : > { %v3760_v11 = vadd.f32 %v3759_v46, %v3758_v40  ;;  %v3761_v1 = vpop.f32.mrb[42].mxu0 }
 0x47d   : > { %v3762_v47 = vpop.f32.mrb[43].mxu0 }
 0x47e   : > { %v3186_v49 = vadd.f32 %v3760_v11, %v3054_v45 }
 0x480   : > { %v3194_v41 = vrot.slane %v3186_v49, %v2782_v50 }
 0x482   : > { %3195 = vst [vmem:[%s330_s11] sm:$0xff] %v3194_v41 }
 0x483 PF: > { %s19_s30 = sadd.s32 1, %s4215_s30  }
 0x484   : > { %p16_p4 = scmp.ge.s32.totalorder %s19_s30, 4  }
 0x486   :  { %18 = sbr.rel (!%p16_p4) target bundleno = 1 (0x1), region = 96 }

</bundles_post_ra>
